<compile_context>
chip_gen: v5e
topology: v5e:2x2
jax: 0.10.0
libtpu: 0.0.40
codegen_flags: <defaults>
</compile_context>

<pallas_src>
import jax
import jax.numpy as jnp
from jax import lax
from jax.experimental import pallas as pl
from jax.experimental.pallas import tpu as pltpu

BN_EPS = 1e-5
# MXU operand dtype for the conv matmuls (fp32 accumulation everywhere).
# jnp.float32 gives an exact-fp32 parity path against the PyTorch reference.
MXU_DTYPE = jnp.bfloat16


# ------------------------- in-kernel building blocks -------------------------

def _edge_masks(rows, cache):
    """(rows,1) 0/1 columns that zero the wrapped row of a +/-1 sublane roll."""
    if rows not in cache:
        r = lax.broadcasted_iota(jnp.int32, (rows, 1), 0)
        cache[rows] = ((r != 0).astype(jnp.float32),          # kills row 0 (top pad)
                       (r != rows - 1).astype(jnp.float32))   # kills last row (bottom pad)
    return cache[rows]


def _res_block(blk, x, masks):
    """Fused ResBlock on a lane-dense (rows, W*C) slab (BN folded on host, see prep)."""
    mt, mb = masks
    rows = x.shape[0]

    # ReluConv1: 1x1 conv (BN1 folded into weights) + bias + ReLU.
    z = jnp.dot(x.astype(MXU_DTYPE), blk["w1"][...],
                preferred_element_type=jnp.float32)
    z = jnp.maximum(z + blk["aux"][0:1, :], 0.0)

    # ReluConv2 pre-BN as a channelwise affine (kept out of the conv weights so the
    # conv's zero padding applies to the BN *output*, exactly like PyTorch).
    z = z * blk["aux"][1:2, :] + blk["aux"][2:3, :]

    # ReluConv2: 3x3 conv = 3 banded matmuls over row-shifted slabs.  H taps / zero
    # padding via sublane pltpu.roll (XLU) + cheap (rows,1) mask multiply.
    z_dn = pltpu.roll(z, shift=1, axis=0) * mt          # z[h-1], zeroed at top row
    z_up = pltpu.roll(z, shift=rows - 1, axis=0) * mb   # z[h+1], zeroed at bottom row
    acc = jnp.dot(z_dn.astype(MXU_DTYPE), blk["w2"][0],
                  preferred_element_type=jnp.float32)
    acc = acc + jnp.dot(z.astype(MXU_DTYPE), blk["w2"][1],
                        preferred_element_type=jnp.float32)
    acc = acc + jnp.dot(z_up.astype(MXU_DTYPE), blk["w2"][2],
                        preferred_element_type=jnp.float32)
    u = jnp.maximum(acc + blk["aux"][3:4, :], 0.0)

    # ReluConv3: 1x1 conv (BN3 folded) + bias + ReLU, then identity residual add.
    y = jnp.dot(u.astype(MXU_DTYPE), blk["w3"][...],
                preferred_element_type=jnp.float32)
    y = jnp.maximum(y + blk["b3"][...], 0.0)
    return y + x


def _maxpool2x2(x, prep):
    """2x2 stride-2 max-pool of a lane-dense (rows, W*C) slab -> (rows/2, W*C/2)."""
    rows = x.shape[0]
    # Pair-max along rows: rm[h] = max(x[h], x[h+1]) (wrapped last row never selected).
    rm = jnp.maximum(x, pltpu.roll(x, shift=rows - 1, axis=0))
    rm = jnp.dot(prep["pool_P"][...], rm, preferred_element_type=jnp.float32)
    # Pair-max along W: route even / odd C-blocks with 0/1 matrices, then max.
    a = jnp.dot(rm, prep["pool_Se"][...], preferred_element_type=jnp.float32)
    b = jnp.dot(rm, prep["pool_So"][...], preferred_element_type=jnp.float32)
    return jnp.maximum(a, b)


def _upsample2x_add(y, skip, prep):
    """Nearest 2x upsample of (rows/2, W*C/2) -> (rows, W*C), plus skip add."""
    wide = jnp.dot(y, prep["up_E"][...], preferred_element_type=jnp.float32)
    return jnp.dot(prep["up_U"][...], wide, preferred_element_type=jnp.float32) + skip


def _hourglass_body(prep, x, mask_cache):
    """One hourglass level; the nesting recursion is unrolled at trace time."""
    rows = x.shape[0]
    m_full = _edge_masks(rows, mask_cache)
    m_half = _edge_masks(rows // 2, mask_cache)

    skip = x
    for blk in prep["skipper"]:
        skip = _res_block(blk, skip, m_full)

    y = _maxpool2x2(x, prep)
    for blk in prep["down"]:
        y = _res_block(blk, y, m_half)
    inner = prep["inner"]
    if isinstance(inner, dict):                       # nested hourglass
        y = _hourglass_body(inner, y, mask_cache)
    else:                                             # innermost res group
        for blk in inner:
            y = _res_block(blk, y, m_half)
    for blk in prep["up"]:
        y = _res_block(blk, y, m_half)

    return _upsample2x_add(y, skip, prep)


# ------------------------------ fused forward --------------------------------

def hourglass_forward(prep, x):
    """x: (N, H, W, C) NHWC.  One fully-fused pallas_call; grid=(N,) 'parallel'."""
    N, H, W, C = x.shape
    WC = W * C
    leaves, treedef = jax.tree_util.tree_flatten(prep)
    n_leaves = len(leaves)

    def kernel(*refs):
        x_ref = refs[0]
        o_ref = refs[1 + n_leaves]
        prep_refs = jax.tree_util.tree_unflatten(treedef, refs[1:1 + n_leaves])
        y = _hourglass_body(prep_refs, x_ref[...], {})
        o_ref[...] = y.astype(o_ref.dtype)

    def _full_spec(arr):
        nd = arr.ndim
        return pl.BlockSpec(arr.shape, lambda n, _nd=nd: (0,) * _nd)

    out = pl.pallas_call(
        kernel,
        out_shape=jax.ShapeDtypeStruct((N, H, WC), x.dtype),
        grid=(N,),
        in_specs=[pl.BlockSpec((None, H, WC), lambda n: (n, 0, 0))]
                 + [_full_spec(l) for l in leaves],
        out_specs=pl.BlockSpec((None, H, WC), lambda n: (n, 0, 0)),
        compiler_params=pltpu.CompilerParams(
            dimension_semantics=("parallel",)),
    )(x.reshape(N, H, WC), *leaves)
    return out.reshape(N, H, W, C)


# --------------------------- raw parameters ---------------------------------

def init_relu_conv(key, cin, cout, k):
    ks = jax.random.split(key, 6)
    gamma = 1.0 + 0.1 * jax.random.normal(ks[0], (cin,), jnp.float32)
    beta = 0.1 * jax.random.normal(ks[1], (cin,), jnp.float32)
    rmean = 0.1 * jax.random.normal(ks[2], (cin,), jnp.float32)
    rvar = 1.0 + 0.5 * jax.random.uniform(ks[3], (cin,), jnp.float32)
    fan_in = float(cin * k * k)
    wshape = (cin, cout) if k == 1 else (3, 3, cin, cout)       # HWIO for 3x3
    w = jax.random.normal(ks[4], wshape, jnp.float32) / jnp.sqrt(fan_in)
    b = 0.1 * jax.random.normal(ks[5], (cout,), jnp.float32)
    return {"gamma": gamma, "beta": beta, "mean": rmean, "var": rvar, "w": w, "b": b}


def init_res_block(key, c):
    mid = max(c // 2, 1)
    k1, k2, k3 = jax.random.split(key, 3)
    return {"rc1": init_relu_conv(k1, c, mid, 1),
            "rc2": init_relu_conv(k2, mid, mid, 3),
            "rc3": init_relu_conv(k3, mid, c, 1)}


def init_res_group(key, c, num):
    return [init_res_block(k, c) for k in jax.random.split(key, num)]


def init_hourglass(key, channels, group_res_num, nesting_times):
    k1, k2, k3, k4 = jax.random.split(key, 4)
    inner = (init_hourglass(k3, channels, group_res_num, nesting_times - 1)
             if nesting_times > 1 else init_res_group(k3, channels, group_res_num))
    return {"skipper": init_res_group(k1, channels, group_res_num),
            "down": init_res_group(k2, channels, group_res_num),
            "inner": inner,
            "up": init_res_group(k4, channels, group_res_num)}


# ----------------- host-side prep: BN folding + matrix expansion -------------

def _bn_scale_shift(p):
    scale = p["gamma"] * lax.rsqrt(p["var"] + BN_EPS)
    shift = p["beta"] - p["mean"] * scale
    return scale, shift


def _block_diag(w, W):
    # (Cin, Cout) -> (W*Cin, W*Cout): W independent copies of the 1x1 channel mix.
    return jnp.kron(jnp.eye(W, dtype=w.dtype), w)


def _banded(w3x3, W):
    # (3, 3, Cm, Co) -> (3, W*Cm, W*Co): per dy tap, a band matrix carrying the three
    # dx taps AND the zero padding in the W direction.
    bands = []
    for dy in range(3):
        band = sum(jnp.kron(jnp.eye(W, k=1 - dx, dtype=w3x3.dtype), w3x3[dy, dx])
                   for dx in range(3))
        bands.append(band)
    return jnp.stack(bands, axis=0)


def prep_res_block(p, W):
    rc1, rc2, rc3 = p["rc1"], p["rc2"], p["rc3"]
    s1, t1 = _bn_scale_shift(rc1)
    s2, t2 = _bn_scale_shift(rc2)
    s3, t3 = _bn_scale_shift(rc3)
    # Fold BN1 / BN3 (no padding involved) directly into the 1x1 conv weights/biases.
    w1f = s1[:, None] * rc1["w"]
    b1f = t1 @ rc1["w"] + rc1["b"]
    w3f = s3[:, None] * rc3["w"]
    b3f = t3 @ rc3["w"] + rc3["b"]
    aux = jnp.stack([jnp.tile(b1f, W), jnp.tile(s2, W),
                     jnp.tile(t2, W), jnp.tile(rc2["b"], W)], axis=0)
    return {"w1": _block_diag(w1f, W).astype(MXU_DTYPE),
            "w2": _banded(rc2["w"], W).astype(MXU_DTYPE),
            "w3": _block_diag(w3f, W).astype(MXU_DTYPE),
            "aux": aux.astype(jnp.float32),
            "b3": jnp.tile(b3f, W)[None, :].astype(jnp.float32)}


def prep_res_group(blocks, W):
    return [prep_res_block(b, W) for b in blocks]


# 0/1 routing matrices (kept fp32 => exact selection/duplication) for the in-kernel
# max-pool and nearest-upsample on lane-dense slabs.

def _pool_row_select(H):
    # (H//2, H): output row i <- input row 2*i (of the row-pair-maxed slab).
    return (jnp.arange(H)[None, :] == 2 * jnp.arange(H // 2)[:, None]
            ).astype(jnp.float32)


def _pool_lane_select(WC, C, odd):
    # (WC, WC//2): output lane w*C+c <- input lane (2*w+odd)*C + c.
    j = jnp.arange(WC)[:, None]
    k = jnp.arange(WC // 2)[None, :]
    src = (2 * (k // C) + odd) * C + (k % C)
    return (j == src).astype(jnp.float32)


def _up_row_dup(H):
    # (H, H//2): output row j <- input row j//2.
    return (jnp.arange(H)[:, None] // 2 == jnp.arange(H // 2)[None, :]
            ).astype(jnp.float32)


def _up_lane_dup(WC, C):
    # (WC//2, WC): output lane (2*w+s)*C+c <- input lane w*C+c.
    i = jnp.arange(WC // 2)[:, None]
    j = jnp.arange(WC)[None, :]
    src = (j // (2 * C)) * C + (j % C)
    return (i == src).astype(jnp.float32)


def prepare_hourglass(params, H, W, C):
    assert H % 2 == 0 and W % 2 == 0, (
        f"spatial dims {H}x{W} must be divisible by 2 at every nesting level")
    Hd, Wd = H // 2, W // 2
    inner = params["inner"]
    return {
        "skipper": prep_res_group(params["skipper"], W),
        "down": prep_res_group(params["down"], Wd),
        "inner": (prep_res_group(inner, Wd) if isinstance(inner, list)
                  else prepare_hourglass(inner, Hd, Wd, C)),
        "up": prep_res_group(params["up"], Wd),
        "pool_P": _pool_row_select(H),
        "pool_Se": _pool_lane_select(W * C, C, 0),
        "pool_So": _pool_lane_select(W * C, C, 1),
        "up_U": _up_row_dup(H),
        "up_E": _up_lane_dup(W * C, C),
    }


# ------------------------------- driver --------------------------------------

if __name__ == "__main__":
    key = jax.random.PRNGKey(0)
    kp, kx = jax.random.split(key)

    channels, group_res_num, nesting_times = 4, 1, 2
    N, H, W = 2, 32, 32

    params = init_hourglass(kp, channels, group_res_num, nesting_times)
    prepped = prepare_hourglass(params, H, W, channels)   # BN folding + routing mats (once)

    x_nchw = jax.random.normal(kx, (N, channels, H, W), jnp.float32)  # PyTorch layout

    @jax.jit
    def forward(prepped, x_nchw):
        x = jnp.transpose(x_nchw, (0, 2, 3, 1))   # NCHW -> NHWC (model boundary only)
        y = hourglass_forward(prepped, x)
        return jnp.transpose(y, (0, 3, 1, 2))     # back to NCHW

    out = forward(prepped, x_nchw)
    jax.block_until_ready(out)

    assert out.shape == x_nchw.shape and out.dtype == jnp.float32
    print("KERNEL_OK")
</pallas_src>

<mosaic_0001>
module attributes {stable_mosaic.version = 11 : i64} {
  func.func @kernel(%arg0: i32, %arg1: memref<1x32x128xf32, #tpu.memory_space<vmem>>, %arg2: memref<4x32xf32, #tpu.memory_space<vmem>>, %arg3: memref<1x64xf32, #tpu.memory_space<vmem>>, %arg4: memref<64x32xbf16, #tpu.memory_space<vmem>>, %arg5: memref<3x32x32xbf16, #tpu.memory_space<vmem>>, %arg6: memref<32x64xbf16, #tpu.memory_space<vmem>>, %arg7: memref<4x16xf32, #tpu.memory_space<vmem>>, %arg8: memref<1x32xf32, #tpu.memory_space<vmem>>, %arg9: memref<32x16xbf16, #tpu.memory_space<vmem>>, %arg10: memref<3x16x16xbf16, #tpu.memory_space<vmem>>, %arg11: memref<16x32xbf16, #tpu.memory_space<vmem>>, %arg12: memref<4x16xf32, #tpu.memory_space<vmem>>, %arg13: memref<1x32xf32, #tpu.memory_space<vmem>>, %arg14: memref<32x16xbf16, #tpu.memory_space<vmem>>, %arg15: memref<3x16x16xbf16, #tpu.memory_space<vmem>>, %arg16: memref<16x32xbf16, #tpu.memory_space<vmem>>, %arg17: memref<8x16xf32, #tpu.memory_space<vmem>>, %arg18: memref<64x32xf32, #tpu.memory_space<vmem>>, %arg19: memref<64x32xf32, #tpu.memory_space<vmem>>, %arg20: memref<4x32xf32, #tpu.memory_space<vmem>>, %arg21: memref<1x64xf32, #tpu.memory_space<vmem>>, %arg22: memref<64x32xbf16, #tpu.memory_space<vmem>>, %arg23: memref<3x32x32xbf16, #tpu.memory_space<vmem>>, %arg24: memref<32x64xbf16, #tpu.memory_space<vmem>>, %arg25: memref<4x16xf32, #tpu.memory_space<vmem>>, %arg26: memref<1x32xf32, #tpu.memory_space<vmem>>, %arg27: memref<32x16xbf16, #tpu.memory_space<vmem>>, %arg28: memref<3x16x16xbf16, #tpu.memory_space<vmem>>, %arg29: memref<16x32xbf16, #tpu.memory_space<vmem>>, %arg30: memref<32x64xf32, #tpu.memory_space<vmem>>, %arg31: memref<16x8xf32, #tpu.memory_space<vmem>>, %arg32: memref<16x32xf32, #tpu.memory_space<vmem>>, %arg33: memref<128x64xf32, #tpu.memory_space<vmem>>, %arg34: memref<128x64xf32, #tpu.memory_space<vmem>>, %arg35: memref<4x64xf32, #tpu.memory_space<vmem>>, %arg36: memref<1x128xf32, #tpu.memory_space<vmem>>, %arg37: memref<128x64xbf16, #tpu.memory_space<vmem>>, %arg38: memref<3x64x64xbf16, #tpu.memory_space<vmem>>, %arg39: memref<64x128xbf16, #tpu.memory_space<vmem>>, %arg40: memref<4x32xf32, #tpu.memory_space<vmem>>, %arg41: memref<1x64xf32, #tpu.memory_space<vmem>>, %arg42: memref<64x32xbf16, #tpu.memory_space<vmem>>, %arg43: memref<3x32x32xbf16, #tpu.memory_space<vmem>>, %arg44: memref<32x64xbf16, #tpu.memory_space<vmem>>, %arg45: memref<64x128xf32, #tpu.memory_space<vmem>>, %arg46: memref<32x16xf32, #tpu.memory_space<vmem>>, %arg47: memref<1x32x128xf32, #tpu.memory_space<vmem>>) attributes {dimension_semantics = [#tpu.dimension_semantics<parallel>], iteration_bounds = array<i64: 2>, scalar_prefetch = 0 : i64, scratch_operands = 0 : i64, tpu.core_type = #tpu.core_type<tc>, window_params = [{transform_indices = @transform_0, window_bounds = array<i64: 1, 32, 128>}, {pipeline_mode = #tpu.pipeline_mode<synchronous>, transform_indices = @transform_1, window_bounds = array<i64: 4, 32>}, {pipeline_mode = #tpu.pipeline_mode<synchronous>, transform_indices = @transform_2, window_bounds = array<i64: 1, 64>}, {pipeline_mode = #tpu.pipeline_mode<synchronous>, transform_indices = @transform_3, window_bounds = array<i64: 64, 32>}, {pipeline_mode = #tpu.pipeline_mode<synchronous>, transform_indices = @transform_4, window_bounds = array<i64: 3, 32, 32>}, {pipeline_mode = #tpu.pipeline_mode<synchronous>, transform_indices = @transform_5, window_bounds = array<i64: 32, 64>}, {pipeline_mode = #tpu.pipeline_mode<synchronous>, transform_indices = @transform_6, window_bounds = array<i64: 4, 16>}, {pipeline_mode = #tpu.pipeline_mode<synchronous>, transform_indices = @transform_7, window_bounds = array<i64: 1, 32>}, {pipeline_mode = #tpu.pipeline_mode<synchronous>, transform_indices = @transform_8, window_bounds = array<i64: 32, 16>}, {pipeline_mode = #tpu.pipeline_mode<synchronous>, transform_indices = @transform_9, window_bounds = array<i64: 3, 16, 16>}, {pipeline_mode = #tpu.pipeline_mode<synchronous>, transform_indices = @transform_10, window_bounds = array<i64: 16, 32>}, {pipeline_mode = #tpu.pipeline_mode<synchronous>, transform_indices = @transform_11, window_bounds = array<i64: 4, 16>}, {pipeline_mode = #tpu.pipeline_mode<synchronous>, transform_indices = @transform_12, window_bounds = array<i64: 1, 32>}, {pipeline_mode = #tpu.pipeline_mode<synchronous>, transform_indices = @transform_13, window_bounds = array<i64: 32, 16>}, {pipeline_mode = #tpu.pipeline_mode<synchronous>, transform_indices = @transform_14, window_bounds = array<i64: 3, 16, 16>}, {pipeline_mode = #tpu.pipeline_mode<synchronous>, transform_indices = @transform_15, window_bounds = array<i64: 16, 32>}, {pipeline_mode = #tpu.pipeline_mode<synchronous>, transform_indices = @transform_16, window_bounds = array<i64: 8, 16>}, {pipeline_mode = #tpu.pipeline_mode<synchronous>, transform_indices = @transform_17, window_bounds = array<i64: 64, 32>}, {pipeline_mode = #tpu.pipeline_mode<synchronous>, transform_indices = @transform_18, window_bounds = array<i64: 64, 32>}, {pipeline_mode = #tpu.pipeline_mode<synchronous>, transform_indices = @transform_19, window_bounds = array<i64: 4, 32>}, {pipeline_mode = #tpu.pipeline_mode<synchronous>, transform_indices = @transform_20, window_bounds = array<i64: 1, 64>}, {pipeline_mode = #tpu.pipeline_mode<synchronous>, transform_indices = @transform_21, window_bounds = array<i64: 64, 32>}, {pipeline_mode = #tpu.pipeline_mode<synchronous>, transform_indices = @transform_22, window_bounds = array<i64: 3, 32, 32>}, {pipeline_mode = #tpu.pipeline_mode<synchronous>, transform_indices = @transform_23, window_bounds = array<i64: 32, 64>}, {pipeline_mode = #tpu.pipeline_mode<synchronous>, transform_indices = @transform_24, window_bounds = array<i64: 4, 16>}, {pipeline_mode = #tpu.pipeline_mode<synchronous>, transform_indices = @transform_25, window_bounds = array<i64: 1, 32>}, {pipeline_mode = #tpu.pipeline_mode<synchronous>, transform_indices = @transform_26, window_bounds = array<i64: 32, 16>}, {pipeline_mode = #tpu.pipeline_mode<synchronous>, transform_indices = @transform_27, window_bounds = array<i64: 3, 16, 16>}, {pipeline_mode = #tpu.pipeline_mode<synchronous>, transform_indices = @transform_28, window_bounds = array<i64: 16, 32>}, {pipeline_mode = #tpu.pipeline_mode<synchronous>, transform_indices = @transform_29, window_bounds = array<i64: 32, 64>}, {pipeline_mode = #tpu.pipeline_mode<synchronous>, transform_indices = @transform_30, window_bounds = array<i64: 16, 8>}, {pipeline_mode = #tpu.pipeline_mode<synchronous>, transform_indices = @transform_31, window_bounds = array<i64: 16, 32>}, {pipeline_mode = #tpu.pipeline_mode<synchronous>, transform_indices = @transform_32, window_bounds = array<i64: 128, 64>}, {pipeline_mode = #tpu.pipeline_mode<synchronous>, transform_indices = @transform_33, window_bounds = array<i64: 128, 64>}, {pipeline_mode = #tpu.pipeline_mode<synchronous>, transform_indices = @transform_34, window_bounds = array<i64: 4, 64>}, {pipeline_mode = #tpu.pipeline_mode<synchronous>, transform_indices = @transform_35, window_bounds = array<i64: 1, 128>}, {pipeline_mode = #tpu.pipeline_mode<synchronous>, transform_indices = @transform_36, window_bounds = array<i64: 128, 64>}, {pipeline_mode = #tpu.pipeline_mode<synchronous>, transform_indices = @transform_37, window_bounds = array<i64: 3, 64, 64>}, {pipeline_mode = #tpu.pipeline_mode<synchronous>, transform_indices = @transform_38, window_bounds = array<i64: 64, 128>}, {pipeline_mode = #tpu.pipeline_mode<synchronous>, transform_indices = @transform_39, window_bounds = array<i64: 4, 32>}, {pipeline_mode = #tpu.pipeline_mode<synchronous>, transform_indices = @transform_40, window_bounds = array<i64: 1, 64>}, {pipeline_mode = #tpu.pipeline_mode<synchronous>, transform_indices = @transform_41, window_bounds = array<i64: 64, 32>}, {pipeline_mode = #tpu.pipeline_mode<synchronous>, transform_indices = @transform_42, window_bounds = array<i64: 3, 32, 32>}, {pipeline_mode = #tpu.pipeline_mode<synchronous>, transform_indices = @transform_43, window_bounds = array<i64: 32, 64>}, {pipeline_mode = #tpu.pipeline_mode<synchronous>, transform_indices = @transform_44, window_bounds = array<i64: 64, 128>}, {pipeline_mode = #tpu.pipeline_mode<synchronous>, transform_indices = @transform_45, window_bounds = array<i64: 32, 16>}, {transform_indices = @transform_46, window_bounds = array<i64: 1, 32, 128>}]} {
    %c0 = arith.constant 0 : index
    %c0_0 = arith.constant 0 : index
    %c0_1 = arith.constant 0 : index
    %0 = vector.load %arg1[%c0, %c0_0, %c0_1] : memref<1x32x128xf32, #tpu.memory_space<vmem>>, vector<1x32x128xf32>
    %1 = vector.shape_cast %0 : vector<1x32x128xf32> to vector<32x128xf32>
    %2 = tpu.iota {dimensions = array<i32: 0>} : vector<32x1xi32>
    %c0_i32 = arith.constant 0 : i32
    %3 = vector.broadcast %c0_i32 : i32 to vector<32x1xi32>
    %4 = arith.cmpi ne, %2, %3 : vector<32x1xi32>
    %5 = arith.extui %4 : vector<32x1xi1> to vector<32x1xi32>
    %6 = arith.sitofp %5 : vector<32x1xi32> to vector<32x1xf32>
    %c31_i32 = arith.constant 31 : i32
    %7 = vector.broadcast %c31_i32 : i32 to vector<32x1xi32>
    %8 = arith.cmpi ne, %2, %7 : vector<32x1xi32>
    %9 = arith.extui %8 : vector<32x1xi1> to vector<32x1xi32>
    %10 = arith.sitofp %9 : vector<32x1xi32> to vector<32x1xf32>
    %11 = tpu.iota {dimensions = array<i32: 0>} : vector<16x1xi32>
    %c0_i32_2 = arith.constant 0 : i32
    %12 = vector.broadcast %c0_i32_2 : i32 to vector<16x1xi32>
    %13 = arith.cmpi ne, %11, %12 : vector<16x1xi32>
    %14 = arith.extui %13 : vector<16x1xi1> to vector<16x1xi32>
    %15 = arith.sitofp %14 : vector<16x1xi32> to vector<16x1xf32>
    %c15_i32 = arith.constant 15 : i32
    %16 = vector.broadcast %c15_i32 : i32 to vector<16x1xi32>
    %17 = arith.cmpi ne, %11, %16 : vector<16x1xi32>
    %18 = arith.extui %17 : vector<16x1xi1> to vector<16x1xi32>
    %19 = arith.sitofp %18 : vector<16x1xi32> to vector<16x1xf32>
    %20 = arith.truncf %1 : vector<32x128xf32> to vector<32x128xbf16>
    %c0_3 = arith.constant 0 : index
    %c0_4 = arith.constant 0 : index
    %21 = vector.load %arg37[%c0_3, %c0_4] : memref<128x64xbf16, #tpu.memory_space<vmem>>, vector<128x64xbf16>
    %cst = arith.constant dense<0.000000e+00> : vector<32x64xf32>
    %22 = tpu.matmul %20, %21, %cst {dimension_numbers = #tpu.dot_dimension_numbers<[1], [0], [0], [1], [0, 0, 1, 1], [], []>} : vector<32x128xbf16>, vector<128x64xbf16>, vector<32x64xf32> -> vector<32x64xf32>
    %c0_5 = arith.constant 0 : index
    %c0_6 = arith.constant 0 : index
    %23 = vector.load %arg35[%c0_5, %c0_6] : memref<4x64xf32, #tpu.memory_space<vmem>>, vector<1x64xf32>
    %24 = vector.broadcast %23 : vector<1x64xf32> to vector<32x64xf32>
    %25 = arith.addf %22, %24 : vector<32x64xf32>
    %cst_7 = arith.constant 0.000000e+00 : f32
    %26 = vector.broadcast %cst_7 : f32 to vector<32x64xf32>
    %27 = arith.maximumf %25, %26 : vector<32x64xf32>
    %c1 = arith.constant 1 : index
    %c0_8 = arith.constant 0 : index
    %28 = vector.load %arg35[%c1, %c0_8] : memref<4x64xf32, #tpu.memory_space<vmem>>, vector<1x64xf32>
    %29 = vector.broadcast %28 : vector<1x64xf32> to vector<32x64xf32>
    %30 = arith.mulf %27, %29 : vector<32x64xf32>
    %c2 = arith.constant 2 : index
    %c0_9 = arith.constant 0 : index
    %31 = vector.load %arg35[%c2, %c0_9] : memref<4x64xf32, #tpu.memory_space<vmem>>, vector<1x64xf32>
    %32 = vector.broadcast %31 : vector<1x64xf32> to vector<32x64xf32>
    %33 = arith.addf %30, %32 : vector<32x64xf32>
    %c1_i32 = arith.constant 1 : i32
    %34 = tpu.dynamic_rotate %33 by %c1_i32 dim 0 : vector<32x64xf32>, i32 -> vector<32x64xf32>
    %35 = vector.broadcast %6 : vector<32x1xf32> to vector<32x64xf32>
    %36 = arith.mulf %34, %35 : vector<32x64xf32>
    %c31_i32_10 = arith.constant 31 : i32
    %37 = tpu.dynamic_rotate %33 by %c31_i32_10 dim 0 : vector<32x64xf32>, i32 -> vector<32x64xf32>
    %38 = vector.broadcast %10 : vector<32x1xf32> to vector<32x64xf32>
    %39 = arith.mulf %37, %38 : vector<32x64xf32>
    %40 = arith.truncf %36 : vector<32x64xf32> to vector<32x64xbf16>
    %c0_11 = arith.constant 0 : index
    %c0_12 = arith.constant 0 : index
    %c0_13 = arith.constant 0 : index
    %41 = vector.load %arg38[%c0_11, %c0_12, %c0_13] : memref<3x64x64xbf16, #tpu.memory_space<vmem>>, vector<1x64x64xbf16>
    %42 = vector.shape_cast %41 : vector<1x64x64xbf16> to vector<64x64xbf16>
    %cst_14 = arith.constant dense<0.000000e+00> : vector<32x64xf32>
    %43 = tpu.matmul %40, %42, %cst_14 {dimension_numbers = #tpu.dot_dimension_numbers<[1], [0], [0], [1], [0, 0, 1, 1], [], []>} : vector<32x64xbf16>, vector<64x64xbf16>, vector<32x64xf32> -> vector<32x64xf32>
    %44 = arith.truncf %33 : vector<32x64xf32> to vector<32x64xbf16>
    %c1_15 = arith.constant 1 : index
    %c0_16 = arith.constant 0 : index
    %c0_17 = arith.constant 0 : index
    %45 = vector.load %arg38[%c1_15, %c0_16, %c0_17] : memref<3x64x64xbf16, #tpu.memory_space<vmem>>, vector<1x64x64xbf16>
    %46 = vector.shape_cast %45 : vector<1x64x64xbf16> to vector<64x64xbf16>
    %cst_18 = arith.constant dense<0.000000e+00> : vector<32x64xf32>
    %47 = tpu.matmul %44, %46, %cst_18 {dimension_numbers = #tpu.dot_dimension_numbers<[1], [0], [0], [1], [0, 0, 1, 1], [], []>} : vector<32x64xbf16>, vector<64x64xbf16>, vector<32x64xf32> -> vector<32x64xf32>
    %48 = arith.addf %43, %47 : vector<32x64xf32>
    %49 = arith.truncf %39 : vector<32x64xf32> to vector<32x64xbf16>
    %c2_19 = arith.constant 2 : index
    %c0_20 = arith.constant 0 : index
    %c0_21 = arith.constant 0 : index
    %50 = vector.load %arg38[%c2_19, %c0_20, %c0_21] : memref<3x64x64xbf16, #tpu.memory_space<vmem>>, vector<1x64x64xbf16>
    %51 = vector.shape_cast %50 : vector<1x64x64xbf16> to vector<64x64xbf16>
    %cst_22 = arith.constant dense<0.000000e+00> : vector<32x64xf32>
    %52 = tpu.matmul %49, %51, %cst_22 {dimension_numbers = #tpu.dot_dimension_numbers<[1], [0], [0], [1], [0, 0, 1, 1], [], []>} : vector<32x64xbf16>, vector<64x64xbf16>, vector<32x64xf32> -> vector<32x64xf32>
    %53 = arith.addf %48, %52 : vector<32x64xf32>
    %c3 = arith.constant 3 : index
    %c0_23 = arith.constant 0 : index
    %54 = vector.load %arg35[%c3, %c0_23] : memref<4x64xf32, #tpu.memory_space<vmem>>, vector<1x64xf32>
    %55 = vector.broadcast %54 : vector<1x64xf32> to vector<32x64xf32>
    %56 = arith.addf %53, %55 : vector<32x64xf32>
    %cst_24 = arith.constant 0.000000e+00 : f32
    %57 = vector.broadcast %cst_24 : f32 to vector<32x64xf32>
    %58 = arith.maximumf %56, %57 : vector<32x64xf32>
    %59 = arith.truncf %58 : vector<32x64xf32> to vector<32x64xbf16>
    %c0_25 = arith.constant 0 : index
    %c0_26 = arith.constant 0 : index
    %60 = vector.load %arg39[%c0_25, %c0_26] : memref<64x128xbf16, #tpu.memory_space<vmem>>, vector<64x128xbf16>
    %cst_27 = arith.constant dense<0.000000e+00> : vector<32x128xf32>
    %61 = tpu.matmul %59, %60, %cst_27 {dimension_numbers = #tpu.dot_dimension_numbers<[1], [0], [0], [1], [0, 0, 1, 1], [], []>} : vector<32x64xbf16>, vector<64x128xbf16>, vector<32x128xf32> -> vector<32x128xf32>
    %c0_28 = arith.constant 0 : index
    %c0_29 = arith.constant 0 : index
    %62 = vector.load %arg36[%c0_28, %c0_29] : memref<1x128xf32, #tpu.memory_space<vmem>>, vector<1x128xf32>
    %63 = vector.broadcast %62 : vector<1x128xf32> to vector<32x128xf32>
    %64 = arith.addf %61, %63 : vector<32x128xf32>
    %cst_30 = arith.constant 0.000000e+00 : f32
    %65 = vector.broadcast %cst_30 : f32 to vector<32x128xf32>
    %66 = arith.maximumf %64, %65 : vector<32x128xf32>
    %67 = arith.addf %66, %1 : vector<32x128xf32>
    %c31_i32_31 = arith.constant 31 : i32
    %68 = tpu.dynamic_rotate %1 by %c31_i32_31 dim 0 : vector<32x128xf32>, i32 -> vector<32x128xf32>
    %69 = arith.maximumf %1, %68 : vector<32x128xf32>
    %c0_32 = arith.constant 0 : index
    %c0_33 = arith.constant 0 : index
    %70 = vector.load %arg32[%c0_32, %c0_33] : memref<16x32xf32, #tpu.memory_space<vmem>>, vector<16x32xf32>
    %cst_34 = arith.constant dense<0.000000e+00> : vector<16x128xf32>
    %71 = tpu.matmul %70, %69, %cst_34 {dimension_numbers = #tpu.dot_dimension_numbers<[1], [0], [0], [1], [0, 0, 1, 1], [], []>} : vector<16x32xf32>, vector<32x128xf32>, vector<16x128xf32> -> vector<16x128xf32>
    %c0_35 = arith.constant 0 : index
    %c0_36 = arith.constant 0 : index
    %72 = vector.load %arg33[%c0_35, %c0_36] : memref<128x64xf32, #tpu.memory_space<vmem>>, vector<128x64xf32>
    %cst_37 = arith.constant dense<0.000000e+00> : vector<16x64xf32>
    %73 = tpu.matmul %71, %72, %cst_37 {dimension_numbers = #tpu.dot_dimension_numbers<[1], [0], [0], [1], [0, 0, 1, 1], [], []>} : vector<16x128xf32>, vector<128x64xf32>, vector<16x64xf32> -> vector<16x64xf32>
    %c0_38 = arith.constant 0 : index
    %c0_39 = arith.constant 0 : index
    %74 = vector.load %arg34[%c0_38, %c0_39] : memref<128x64xf32, #tpu.memory_space<vmem>>, vector<128x64xf32>
    %cst_40 = arith.constant dense<0.000000e+00> : vector<16x64xf32>
    %75 = tpu.matmul %71, %74, %cst_40 {dimension_numbers = #tpu.dot_dimension_numbers<[1], [0], [0], [1], [0, 0, 1, 1], [], []>} : vector<16x128xf32>, vector<128x64xf32>, vector<16x64xf32> -> vector<16x64xf32>
    %76 = arith.maximumf %73, %75 : vector<16x64xf32>
    %77 = arith.truncf %76 : vector<16x64xf32> to vector<16x64xbf16>
    %c0_41 = arith.constant 0 : index
    %c0_42 = arith.constant 0 : index
    %78 = vector.load %arg4[%c0_41, %c0_42] : memref<64x32xbf16, #tpu.memory_space<vmem>>, vector<64x32xbf16>
    %cst_43 = arith.constant dense<0.000000e+00> : vector<16x32xf32>
    %79 = tpu.matmul %77, %78, %cst_43 {dimension_numbers = #tpu.dot_dimension_numbers<[1], [0], [0], [1], [0, 0, 1, 1], [], []>} : vector<16x64xbf16>, vector<64x32xbf16>, vector<16x32xf32> -> vector<16x32xf32>
    %c0_44 = arith.constant 0 : index
    %c0_45 = arith.constant 0 : index
    %80 = vector.load %arg2[%c0_44, %c0_45] : memref<4x32xf32, #tpu.memory_space<vmem>>, vector<1x32xf32>
    %81 = vector.broadcast %80 : vector<1x32xf32> to vector<16x32xf32>
    %82 = arith.addf %79, %81 : vector<16x32xf32>
    %cst_46 = arith.constant 0.000000e+00 : f32
    %83 = vector.broadcast %cst_46 : f32 to vector<16x32xf32>
    %84 = arith.maximumf %82, %83 : vector<16x32xf32>
    %c1_47 = arith.constant 1 : index
    %c0_48 = arith.constant 0 : index
    %85 = vector.load %arg2[%c1_47, %c0_48] : memref<4x32xf32, #tpu.memory_space<vmem>>, vector<1x32xf32>
    %86 = vector.broadcast %85 : vector<1x32xf32> to vector<16x32xf32>
    %87 = arith.mulf %84, %86 : vector<16x32xf32>
    %c2_49 = arith.constant 2 : index
    %c0_50 = arith.constant 0 : index
    %88 = vector.load %arg2[%c2_49, %c0_50] : memref<4x32xf32, #tpu.memory_space<vmem>>, vector<1x32xf32>
    %89 = vector.broadcast %88 : vector<1x32xf32> to vector<16x32xf32>
    %90 = arith.addf %87, %89 : vector<16x32xf32>
    %c1_i32_51 = arith.constant 1 : i32
    %91 = tpu.dynamic_rotate %90 by %c1_i32_51 dim 0 : vector<16x32xf32>, i32 -> vector<16x32xf32>
    %92 = vector.broadcast %15 : vector<16x1xf32> to vector<16x32xf32>
    %93 = arith.mulf %91, %92 : vector<16x32xf32>
    %c15_i32_52 = arith.constant 15 : i32
    %94 = tpu.dynamic_rotate %90 by %c15_i32_52 dim 0 : vector<16x32xf32>, i32 -> vector<16x32xf32>
    %95 = vector.broadcast %19 : vector<16x1xf32> to vector<16x32xf32>
    %96 = arith.mulf %94, %95 : vector<16x32xf32>
    %97 = arith.truncf %93 : vector<16x32xf32> to vector<16x32xbf16>
    %c0_53 = arith.constant 0 : index
    %c0_54 = arith.constant 0 : index
    %c0_55 = arith.constant 0 : index
    %98 = vector.load %arg5[%c0_53, %c0_54, %c0_55] : memref<3x32x32xbf16, #tpu.memory_space<vmem>>, vector<1x32x32xbf16>
    %99 = vector.shape_cast %98 : vector<1x32x32xbf16> to vector<32x32xbf16>
    %cst_56 = arith.constant dense<0.000000e+00> : vector<16x32xf32>
    %100 = tpu.matmul %97, %99, %cst_56 {dimension_numbers = #tpu.dot_dimension_numbers<[1], [0], [0], [1], [0, 0, 1, 1], [], []>} : vector<16x32xbf16>, vector<32x32xbf16>, vector<16x32xf32> -> vector<16x32xf32>
    %101 = arith.truncf %90 : vector<16x32xf32> to vector<16x32xbf16>
    %c1_57 = arith.constant 1 : index
    %c0_58 = arith.constant 0 : index
    %c0_59 = arith.constant 0 : index
    %102 = vector.load %arg5[%c1_57, %c0_58, %c0_59] : memref<3x32x32xbf16, #tpu.memory_space<vmem>>, vector<1x32x32xbf16>
    %103 = vector.shape_cast %102 : vector<1x32x32xbf16> to vector<32x32xbf16>
    %cst_60 = arith.constant dense<0.000000e+00> : vector<16x32xf32>
    %104 = tpu.matmul %101, %103, %cst_60 {dimension_numbers = #tpu.dot_dimension_numbers<[1], [0], [0], [1], [0, 0, 1, 1], [], []>} : vector<16x32xbf16>, vector<32x32xbf16>, vector<16x32xf32> -> vector<16x32xf32>
    %105 = arith.addf %100, %104 : vector<16x32xf32>
    %106 = arith.truncf %96 : vector<16x32xf32> to vector<16x32xbf16>
    %c2_61 = arith.constant 2 : index
    %c0_62 = arith.constant 0 : index
    %c0_63 = arith.constant 0 : index
    %107 = vector.load %arg5[%c2_61, %c0_62, %c0_63] : memref<3x32x32xbf16, #tpu.memory_space<vmem>>, vector<1x32x32xbf16>
    %108 = vector.shape_cast %107 : vector<1x32x32xbf16> to vector<32x32xbf16>
    %cst_64 = arith.constant dense<0.000000e+00> : vector<16x32xf32>
    %109 = tpu.matmul %106, %108, %cst_64 {dimension_numbers = #tpu.dot_dimension_numbers<[1], [0], [0], [1], [0, 0, 1, 1], [], []>} : vector<16x32xbf16>, vector<32x32xbf16>, vector<16x32xf32> -> vector<16x32xf32>
    %110 = arith.addf %105, %109 : vector<16x32xf32>
    %c3_65 = arith.constant 3 : index
    %c0_66 = arith.constant 0 : index
    %111 = vector.load %arg2[%c3_65, %c0_66] : memref<4x32xf32, #tpu.memory_space<vmem>>, vector<1x32xf32>
    %112 = vector.broadcast %111 : vector<1x32xf32> to vector<16x32xf32>
    %113 = arith.addf %110, %112 : vector<16x32xf32>
    %cst_67 = arith.constant 0.000000e+00 : f32
    %114 = vector.broadcast %cst_67 : f32 to vector<16x32xf32>
    %115 = arith.maximumf %113, %114 : vector<16x32xf32>
    %116 = arith.truncf %115 : vector<16x32xf32> to vector<16x32xbf16>
    %c0_68 = arith.constant 0 : index
    %c0_69 = arith.constant 0 : index
    %117 = vector.load %arg6[%c0_68, %c0_69] : memref<32x64xbf16, #tpu.memory_space<vmem>>, vector<32x64xbf16>
    %cst_70 = arith.constant dense<0.000000e+00> : vector<16x64xf32>
    %118 = tpu.matmul %116, %117, %cst_70 {dimension_numbers = #tpu.dot_dimension_numbers<[1], [0], [0], [1], [0, 0, 1, 1], [], []>} : vector<16x32xbf16>, vector<32x64xbf16>, vector<16x64xf32> -> vector<16x64xf32>
    %c0_71 = arith.constant 0 : index
    %c0_72 = arith.constant 0 : index
    %119 = vector.load %arg3[%c0_71, %c0_72] : memref<1x64xf32, #tpu.memory_space<vmem>>, vector<1x64xf32>
    %120 = vector.broadcast %119 : vector<1x64xf32> to vector<16x64xf32>
    %121 = arith.addf %118, %120 : vector<16x64xf32>
    %cst_73 = arith.constant 0.000000e+00 : f32
    %122 = vector.broadcast %cst_73 : f32 to vector<16x64xf32>
    %123 = arith.maximumf %121, %122 : vector<16x64xf32>
    %124 = arith.addf %123, %76 : vector<16x64xf32>
    %125 = tpu.iota {dimensions = array<i32: 0>} : vector<8x1xi32>
    %c0_i32_74 = arith.constant 0 : i32
    %126 = vector.broadcast %c0_i32_74 : i32 to vector<8x1xi32>
    %127 = arith.cmpi ne, %125, %126 : vector<8x1xi32>
    %128 = arith.extui %127 : vector<8x1xi1> to vector<8x1xi32>
    %129 = arith.sitofp %128 : vector<8x1xi32> to vector<8x1xf32>
    %c7_i32 = arith.constant 7 : i32
    %130 = vector.broadcast %c7_i32 : i32 to vector<8x1xi32>
    %131 = arith.cmpi ne, %125, %130 : vector<8x1xi32>
    %132 = arith.extui %131 : vector<8x1xi1> to vector<8x1xi32>
    %133 = arith.sitofp %132 : vector<8x1xi32> to vector<8x1xf32>
    %134 = arith.truncf %124 : vector<16x64xf32> to vector<16x64xbf16>
    %c0_75 = arith.constant 0 : index
    %c0_76 = arith.constant 0 : index
    %135 = vector.load %arg22[%c0_75, %c0_76] : memref<64x32xbf16, #tpu.memory_space<vmem>>, vector<64x32xbf16>
    %cst_77 = arith.constant dense<0.000000e+00> : vector<16x32xf32>
    %136 = tpu.matmul %134, %135, %cst_77 {dimension_numbers = #tpu.dot_dimension_numbers<[1], [0], [0], [1], [0, 0, 1, 1], [], []>} : vector<16x64xbf16>, vector<64x32xbf16>, vector<16x32xf32> -> vector<16x32xf32>
    %c0_78 = arith.constant 0 : index
    %c0_79 = arith.constant 0 : index
    %137 = vector.load %arg20[%c0_78, %c0_79] : memref<4x32xf32, #tpu.memory_space<vmem>>, vector<1x32xf32>
    %138 = vector.broadcast %137 : vector<1x32xf32> to vector<16x32xf32>
    %139 = arith.addf %136, %138 : vector<16x32xf32>
    %cst_80 = arith.constant 0.000000e+00 : f32
    %140 = vector.broadcast %cst_80 : f32 to vector<16x32xf32>
    %141 = arith.maximumf %139, %140 : vector<16x32xf32>
    %c1_81 = arith.constant 1 : index
    %c0_82 = arith.constant 0 : index
    %142 = vector.load %arg20[%c1_81, %c0_82] : memref<4x32xf32, #tpu.memory_space<vmem>>, vector<1x32xf32>
    %143 = vector.broadcast %142 : vector<1x32xf32> to vector<16x32xf32>
    %144 = arith.mulf %141, %143 : vector<16x32xf32>
    %c2_83 = arith.constant 2 : index
    %c0_84 = arith.constant 0 : index
    %145 = vector.load %arg20[%c2_83, %c0_84] : memref<4x32xf32, #tpu.memory_space<vmem>>, vector<1x32xf32>
    %146 = vector.broadcast %145 : vector<1x32xf32> to vector<16x32xf32>
    %147 = arith.addf %144, %146 : vector<16x32xf32>
    %c1_i32_85 = arith.constant 1 : i32
    %148 = tpu.dynamic_rotate %147 by %c1_i32_85 dim 0 : vector<16x32xf32>, i32 -> vector<16x32xf32>
    %149 = vector.broadcast %15 : vector<16x1xf32> to vector<16x32xf32>
    %150 = arith.mulf %148, %149 : vector<16x32xf32>
    %c15_i32_86 = arith.constant 15 : i32
    %151 = tpu.dynamic_rotate %147 by %c15_i32_86 dim 0 : vector<16x32xf32>, i32 -> vector<16x32xf32>
    %152 = vector.broadcast %19 : vector<16x1xf32> to vector<16x32xf32>
    %153 = arith.mulf %151, %152 : vector<16x32xf32>
    %154 = arith.truncf %150 : vector<16x32xf32> to vector<16x32xbf16>
    %c0_87 = arith.constant 0 : index
    %c0_88 = arith.constant 0 : index
    %c0_89 = arith.constant 0 : index
    %155 = vector.load %arg23[%c0_87, %c0_88, %c0_89] : memref<3x32x32xbf16, #tpu.memory_space<vmem>>, vector<1x32x32xbf16>
    %156 = vector.shape_cast %155 : vector<1x32x32xbf16> to vector<32x32xbf16>
    %cst_90 = arith.constant dense<0.000000e+00> : vector<16x32xf32>
    %157 = tpu.matmul %154, %156, %cst_90 {dimension_numbers = #tpu.dot_dimension_numbers<[1], [0], [0], [1], [0, 0, 1, 1], [], []>} : vector<16x32xbf16>, vector<32x32xbf16>, vector<16x32xf32> -> vector<16x32xf32>
    %158 = arith.truncf %147 : vector<16x32xf32> to vector<16x32xbf16>
    %c1_91 = arith.constant 1 : index
    %c0_92 = arith.constant 0 : index
    %c0_93 = arith.constant 0 : index
    %159 = vector.load %arg23[%c1_91, %c0_92, %c0_93] : memref<3x32x32xbf16, #tpu.memory_space<vmem>>, vector<1x32x32xbf16>
    %160 = vector.shape_cast %159 : vector<1x32x32xbf16> to vector<32x32xbf16>
    %cst_94 = arith.constant dense<0.000000e+00> : vector<16x32xf32>
    %161 = tpu.matmul %158, %160, %cst_94 {dimension_numbers = #tpu.dot_dimension_numbers<[1], [0], [0], [1], [0, 0, 1, 1], [], []>} : vector<16x32xbf16>, vector<32x32xbf16>, vector<16x32xf32> -> vector<16x32xf32>
    %162 = arith.addf %157, %161 : vector<16x32xf32>
    %163 = arith.truncf %153 : vector<16x32xf32> to vector<16x32xbf16>
    %c2_95 = arith.constant 2 : index
    %c0_96 = arith.constant 0 : index
    %c0_97 = arith.constant 0 : index
    %164 = vector.load %arg23[%c2_95, %c0_96, %c0_97] : memref<3x32x32xbf16, #tpu.memory_space<vmem>>, vector<1x32x32xbf16>
    %165 = vector.shape_cast %164 : vector<1x32x32xbf16> to vector<32x32xbf16>
    %cst_98 = arith.constant dense<0.000000e+00> : vector<16x32xf32>
    %166 = tpu.matmul %163, %165, %cst_98 {dimension_numbers = #tpu.dot_dimension_numbers<[1], [0], [0], [1], [0, 0, 1, 1], [], []>} : vector<16x32xbf16>, vector<32x32xbf16>, vector<16x32xf32> -> vector<16x32xf32>
    %167 = arith.addf %162, %166 : vector<16x32xf32>
    %c3_99 = arith.constant 3 : index
    %c0_100 = arith.constant 0 : index
    %168 = vector.load %arg20[%c3_99, %c0_100] : memref<4x32xf32, #tpu.memory_space<vmem>>, vector<1x32xf32>
    %169 = vector.broadcast %168 : vector<1x32xf32> to vector<16x32xf32>
    %170 = arith.addf %167, %169 : vector<16x32xf32>
    %cst_101 = arith.constant 0.000000e+00 : f32
    %171 = vector.broadcast %cst_101 : f32 to vector<16x32xf32>
    %172 = arith.maximumf %170, %171 : vector<16x32xf32>
    %173 = arith.truncf %172 : vector<16x32xf32> to vector<16x32xbf16>
    %c0_102 = arith.constant 0 : index
    %c0_103 = arith.constant 0 : index
    %174 = vector.load %arg24[%c0_102, %c0_103] : memref<32x64xbf16, #tpu.memory_space<vmem>>, vector<32x64xbf16>
    %cst_104 = arith.constant dense<0.000000e+00> : vector<16x64xf32>
    %175 = tpu.matmul %173, %174, %cst_104 {dimension_numbers = #tpu.dot_dimension_numbers<[1], [0], [0], [1], [0, 0, 1, 1], [], []>} : vector<16x32xbf16>, vector<32x64xbf16>, vector<16x64xf32> -> vector<16x64xf32>
    %c0_105 = arith.constant 0 : index
    %c0_106 = arith.constant 0 : index
    %176 = vector.load %arg21[%c0_105, %c0_106] : memref<1x64xf32, #tpu.memory_space<vmem>>, vector<1x64xf32>
    %177 = vector.broadcast %176 : vector<1x64xf32> to vector<16x64xf32>
    %178 = arith.addf %175, %177 : vector<16x64xf32>
    %cst_107 = arith.constant 0.000000e+00 : f32
    %179 = vector.broadcast %cst_107 : f32 to vector<16x64xf32>
    %180 = arith.maximumf %178, %179 : vector<16x64xf32>
    %181 = arith.addf %180, %124 : vector<16x64xf32>
    %c15_i32_108 = arith.constant 15 : i32
    %182 = tpu.dynamic_rotate %124 by %c15_i32_108 dim 0 : vector<16x64xf32>, i32 -> vector<16x64xf32>
    %183 = arith.maximumf %124, %182 : vector<16x64xf32>
    %c0_109 = arith.constant 0 : index
    %c0_110 = arith.constant 0 : index
    %184 = vector.load %arg17[%c0_109, %c0_110] : memref<8x16xf32, #tpu.memory_space<vmem>>, vector<8x16xf32>
    %cst_111 = arith.constant dense<0.000000e+00> : vector<8x64xf32>
    %185 = tpu.matmul %184, %183, %cst_111 {dimension_numbers = #tpu.dot_dimension_numbers<[1], [0], [0], [1], [0, 0, 1, 1], [], []>} : vector<8x16xf32>, vector<16x64xf32>, vector<8x64xf32> -> vector<8x64xf32>
    %c0_112 = arith.constant 0 : index
    %c0_113 = arith.constant 0 : index
    %186 = vector.load %arg18[%c0_112, %c0_113] : memref<64x32xf32, #tpu.memory_space<vmem>>, vector<64x32xf32>
    %cst_114 = arith.constant dense<0.000000e+00> : vector<8x32xf32>
    %187 = tpu.matmul %185, %186, %cst_114 {dimension_numbers = #tpu.dot_dimension_numbers<[1], [0], [0], [1], [0, 0, 1, 1], [], []>} : vector<8x64xf32>, vector<64x32xf32>, vector<8x32xf32> -> vector<8x32xf32>
    %c0_115 = arith.constant 0 : index
    %c0_116 = arith.constant 0 : index
    %188 = vector.load %arg19[%c0_115, %c0_116] : memref<64x32xf32, #tpu.memory_space<vmem>>, vector<64x32xf32>
    %cst_117 = arith.constant dense<0.000000e+00> : vector<8x32xf32>
    %189 = tpu.matmul %185, %188, %cst_117 {dimension_numbers = #tpu.dot_dimension_numbers<[1], [0], [0], [1], [0, 0, 1, 1], [], []>} : vector<8x64xf32>, vector<64x32xf32>, vector<8x32xf32> -> vector<8x32xf32>
    %190 = arith.maximumf %187, %189 : vector<8x32xf32>
    %191 = arith.truncf %190 : vector<8x32xf32> to vector<8x32xbf16>
    %c0_118 = arith.constant 0 : index
    %c0_119 = arith.constant 0 : index
    %192 = vector.load %arg9[%c0_118, %c0_119] : memref<32x16xbf16, #tpu.memory_space<vmem>>, vector<32x16xbf16>
    %cst_120 = arith.constant dense<0.000000e+00> : vector<8x16xf32>
    %193 = tpu.matmul %191, %192, %cst_120 {dimension_numbers = #tpu.dot_dimension_numbers<[1], [0], [0], [1], [0, 0, 1, 1], [], []>} : vector<8x32xbf16>, vector<32x16xbf16>, vector<8x16xf32> -> vector<8x16xf32>
    %c0_121 = arith.constant 0 : index
    %c0_122 = arith.constant 0 : index
    %194 = vector.load %arg7[%c0_121, %c0_122] : memref<4x16xf32, #tpu.memory_space<vmem>>, vector<1x16xf32>
    %195 = vector.broadcast %194 : vector<1x16xf32> to vector<8x16xf32>
    %196 = arith.addf %193, %195 : vector<8x16xf32>
    %cst_123 = arith.constant 0.000000e+00 : f32
    %197 = vector.broadcast %cst_123 : f32 to vector<8x16xf32>
    %198 = arith.maximumf %196, %197 : vector<8x16xf32>
    %c1_124 = arith.constant 1 : index
    %c0_125 = arith.constant 0 : index
    %199 = vector.load %arg7[%c1_124, %c0_125] : memref<4x16xf32, #tpu.memory_space<vmem>>, vector<1x16xf32>
    %200 = vector.broadcast %199 : vector<1x16xf32> to vector<8x16xf32>
    %201 = arith.mulf %198, %200 : vector<8x16xf32>
    %c2_126 = arith.constant 2 : index
    %c0_127 = arith.constant 0 : index
    %202 = vector.load %arg7[%c2_126, %c0_127] : memref<4x16xf32, #tpu.memory_space<vmem>>, vector<1x16xf32>
    %203 = vector.broadcast %202 : vector<1x16xf32> to vector<8x16xf32>
    %204 = arith.addf %201, %203 : vector<8x16xf32>
    %c1_i32_128 = arith.constant 1 : i32
    %205 = tpu.dynamic_rotate %204 by %c1_i32_128 dim 0 : vector<8x16xf32>, i32 -> vector<8x16xf32>
    %206 = vector.broadcast %129 : vector<8x1xf32> to vector<8x16xf32>
    %207 = arith.mulf %205, %206 : vector<8x16xf32>
    %c7_i32_129 = arith.constant 7 : i32
    %208 = tpu.dynamic_rotate %204 by %c7_i32_129 dim 0 : vector<8x16xf32>, i32 -> vector<8x16xf32>
    %209 = vector.broadcast %133 : vector<8x1xf32> to vector<8x16xf32>
    %210 = arith.mulf %208, %209 : vector<8x16xf32>
    %211 = arith.truncf %207 : vector<8x16xf32> to vector<8x16xbf16>
    %c0_130 = arith.constant 0 : index
    %c0_131 = arith.constant 0 : index
    %c0_132 = arith.constant 0 : index
    %212 = vector.load %arg10[%c0_130, %c0_131, %c0_132] : memref<3x16x16xbf16, #tpu.memory_space<vmem>>, vector<1x16x16xbf16>
    %213 = vector.shape_cast %212 : vector<1x16x16xbf16> to vector<16x16xbf16>
    %cst_133 = arith.constant dense<0.000000e+00> : vector<8x16xf32>
    %214 = tpu.matmul %211, %213, %cst_133 {dimension_numbers = #tpu.dot_dimension_numbers<[1], [0], [0], [1], [0, 0, 1, 1], [], []>} : vector<8x16xbf16>, vector<16x16xbf16>, vector<8x16xf32> -> vector<8x16xf32>
    %215 = arith.truncf %204 : vector<8x16xf32> to vector<8x16xbf16>
    %c1_134 = arith.constant 1 : index
    %c0_135 = arith.constant 0 : index
    %c0_136 = arith.constant 0 : index
    %216 = vector.load %arg10[%c1_134, %c0_135, %c0_136] : memref<3x16x16xbf16, #tpu.memory_space<vmem>>, vector<1x16x16xbf16>
    %217 = vector.shape_cast %216 : vector<1x16x16xbf16> to vector<16x16xbf16>
    %cst_137 = arith.constant dense<0.000000e+00> : vector<8x16xf32>
    %218 = tpu.matmul %215, %217, %cst_137 {dimension_numbers = #tpu.dot_dimension_numbers<[1], [0], [0], [1], [0, 0, 1, 1], [], []>} : vector<8x16xbf16>, vector<16x16xbf16>, vector<8x16xf32> -> vector<8x16xf32>
    %219 = arith.addf %214, %218 : vector<8x16xf32>
    %220 = arith.truncf %210 : vector<8x16xf32> to vector<8x16xbf16>
    %c2_138 = arith.constant 2 : index
    %c0_139 = arith.constant 0 : index
    %c0_140 = arith.constant 0 : index
    %221 = vector.load %arg10[%c2_138, %c0_139, %c0_140] : memref<3x16x16xbf16, #tpu.memory_space<vmem>>, vector<1x16x16xbf16>
    %222 = vector.shape_cast %221 : vector<1x16x16xbf16> to vector<16x16xbf16>
    %cst_141 = arith.constant dense<0.000000e+00> : vector<8x16xf32>
    %223 = tpu.matmul %220, %222, %cst_141 {dimension_numbers = #tpu.dot_dimension_numbers<[1], [0], [0], [1], [0, 0, 1, 1], [], []>} : vector<8x16xbf16>, vector<16x16xbf16>, vector<8x16xf32> -> vector<8x16xf32>
    %224 = arith.addf %219, %223 : vector<8x16xf32>
    %c3_142 = arith.constant 3 : index
    %c0_143 = arith.constant 0 : index
    %225 = vector.load %arg7[%c3_142, %c0_143] : memref<4x16xf32, #tpu.memory_space<vmem>>, vector<1x16xf32>
    %226 = vector.broadcast %225 : vector<1x16xf32> to vector<8x16xf32>
    %227 = arith.addf %224, %226 : vector<8x16xf32>
    %cst_144 = arith.constant 0.000000e+00 : f32
    %228 = vector.broadcast %cst_144 : f32 to vector<8x16xf32>
    %229 = arith.maximumf %227, %228 : vector<8x16xf32>
    %230 = arith.truncf %229 : vector<8x16xf32> to vector<8x16xbf16>
    %c0_145 = arith.constant 0 : index
    %c0_146 = arith.constant 0 : index
    %231 = vector.load %arg11[%c0_145, %c0_146] : memref<16x32xbf16, #tpu.memory_space<vmem>>, vector<16x32xbf16>
    %cst_147 = arith.constant dense<0.000000e+00> : vector<8x32xf32>
    %232 = tpu.matmul %230, %231, %cst_147 {dimension_numbers = #tpu.dot_dimension_numbers<[1], [0], [0], [1], [0, 0, 1, 1], [], []>} : vector<8x16xbf16>, vector<16x32xbf16>, vector<8x32xf32> -> vector<8x32xf32>
    %c0_148 = arith.constant 0 : index
    %c0_149 = arith.constant 0 : index
    %233 = vector.load %arg8[%c0_148, %c0_149] : memref<1x32xf32, #tpu.memory_space<vmem>>, vector<1x32xf32>
    %234 = vector.broadcast %233 : vector<1x32xf32> to vector<8x32xf32>
    %235 = arith.addf %232, %234 : vector<8x32xf32>
    %cst_150 = arith.constant 0.000000e+00 : f32
    %236 = vector.broadcast %cst_150 : f32 to vector<8x32xf32>
    %237 = arith.maximumf %235, %236 : vector<8x32xf32>
    %238 = arith.addf %237, %190 : vector<8x32xf32>
    %239 = arith.truncf %238 : vector<8x32xf32> to vector<8x32xbf16>
    %c0_151 = arith.constant 0 : index
    %c0_152 = arith.constant 0 : index
    %240 = vector.load %arg14[%c0_151, %c0_152] : memref<32x16xbf16, #tpu.memory_space<vmem>>, vector<32x16xbf16>
    %cst_153 = arith.constant dense<0.000000e+00> : vector<8x16xf32>
    %241 = tpu.matmul %239, %240, %cst_153 {dimension_numbers = #tpu.dot_dimension_numbers<[1], [0], [0], [1], [0, 0, 1, 1], [], []>} : vector<8x32xbf16>, vector<32x16xbf16>, vector<8x16xf32> -> vector<8x16xf32>
    %c0_154 = arith.constant 0 : index
    %c0_155 = arith.constant 0 : index
    %242 = vector.load %arg12[%c0_154, %c0_155] : memref<4x16xf32, #tpu.memory_space<vmem>>, vector<1x16xf32>
    %243 = vector.broadcast %242 : vector<1x16xf32> to vector<8x16xf32>
    %244 = arith.addf %241, %243 : vector<8x16xf32>
    %cst_156 = arith.constant 0.000000e+00 : f32
    %245 = vector.broadcast %cst_156 : f32 to vector<8x16xf32>
    %246 = arith.maximumf %244, %245 : vector<8x16xf32>
    %c1_157 = arith.constant 1 : index
    %c0_158 = arith.constant 0 : index
    %247 = vector.load %arg12[%c1_157, %c0_158] : memref<4x16xf32, #tpu.memory_space<vmem>>, vector<1x16xf32>
    %248 = vector.broadcast %247 : vector<1x16xf32> to vector<8x16xf32>
    %249 = arith.mulf %246, %248 : vector<8x16xf32>
    %c2_159 = arith.constant 2 : index
    %c0_160 = arith.constant 0 : index
    %250 = vector.load %arg12[%c2_159, %c0_160] : memref<4x16xf32, #tpu.memory_space<vmem>>, vector<1x16xf32>
    %251 = vector.broadcast %250 : vector<1x16xf32> to vector<8x16xf32>
    %252 = arith.addf %249, %251 : vector<8x16xf32>
    %c1_i32_161 = arith.constant 1 : i32
    %253 = tpu.dynamic_rotate %252 by %c1_i32_161 dim 0 : vector<8x16xf32>, i32 -> vector<8x16xf32>
    %254 = vector.broadcast %129 : vector<8x1xf32> to vector<8x16xf32>
    %255 = arith.mulf %253, %254 : vector<8x16xf32>
    %c7_i32_162 = arith.constant 7 : i32
    %256 = tpu.dynamic_rotate %252 by %c7_i32_162 dim 0 : vector<8x16xf32>, i32 -> vector<8x16xf32>
    %257 = vector.broadcast %133 : vector<8x1xf32> to vector<8x16xf32>
    %258 = arith.mulf %256, %257 : vector<8x16xf32>
    %259 = arith.truncf %255 : vector<8x16xf32> to vector<8x16xbf16>
    %c0_163 = arith.constant 0 : index
    %c0_164 = arith.constant 0 : index
    %c0_165 = arith.constant 0 : index
    %260 = vector.load %arg15[%c0_163, %c0_164, %c0_165] : memref<3x16x16xbf16, #tpu.memory_space<vmem>>, vector<1x16x16xbf16>
    %261 = vector.shape_cast %260 : vector<1x16x16xbf16> to vector<16x16xbf16>
    %cst_166 = arith.constant dense<0.000000e+00> : vector<8x16xf32>
    %262 = tpu.matmul %259, %261, %cst_166 {dimension_numbers = #tpu.dot_dimension_numbers<[1], [0], [0], [1], [0, 0, 1, 1], [], []>} : vector<8x16xbf16>, vector<16x16xbf16>, vector<8x16xf32> -> vector<8x16xf32>
    %263 = arith.truncf %252 : vector<8x16xf32> to vector<8x16xbf16>
    %c1_167 = arith.constant 1 : index
    %c0_168 = arith.constant 0 : index
    %c0_169 = arith.constant 0 : index
    %264 = vector.load %arg15[%c1_167, %c0_168, %c0_169] : memref<3x16x16xbf16, #tpu.memory_space<vmem>>, vector<1x16x16xbf16>
    %265 = vector.shape_cast %264 : vector<1x16x16xbf16> to vector<16x16xbf16>
    %cst_170 = arith.constant dense<0.000000e+00> : vector<8x16xf32>
    %266 = tpu.matmul %263, %265, %cst_170 {dimension_numbers = #tpu.dot_dimension_numbers<[1], [0], [0], [1], [0, 0, 1, 1], [], []>} : vector<8x16xbf16>, vector<16x16xbf16>, vector<8x16xf32> -> vector<8x16xf32>
    %267 = arith.addf %262, %266 : vector<8x16xf32>
    %268 = arith.truncf %258 : vector<8x16xf32> to vector<8x16xbf16>
    %c2_171 = arith.constant 2 : index
    %c0_172 = arith.constant 0 : index
    %c0_173 = arith.constant 0 : index
    %269 = vector.load %arg15[%c2_171, %c0_172, %c0_173] : memref<3x16x16xbf16, #tpu.memory_space<vmem>>, vector<1x16x16xbf16>
    %270 = vector.shape_cast %269 : vector<1x16x16xbf16> to vector<16x16xbf16>
    %cst_174 = arith.constant dense<0.000000e+00> : vector<8x16xf32>
    %271 = tpu.matmul %268, %270, %cst_174 {dimension_numbers = #tpu.dot_dimension_numbers<[1], [0], [0], [1], [0, 0, 1, 1], [], []>} : vector<8x16xbf16>, vector<16x16xbf16>, vector<8x16xf32> -> vector<8x16xf32>
    %272 = arith.addf %267, %271 : vector<8x16xf32>
    %c3_175 = arith.constant 3 : index
    %c0_176 = arith.constant 0 : index
    %273 = vector.load %arg12[%c3_175, %c0_176] : memref<4x16xf32, #tpu.memory_space<vmem>>, vector<1x16xf32>
    %274 = vector.broadcast %273 : vector<1x16xf32> to vector<8x16xf32>
    %275 = arith.addf %272, %274 : vector<8x16xf32>
    %cst_177 = arith.constant 0.000000e+00 : f32
    %276 = vector.broadcast %cst_177 : f32 to vector<8x16xf32>
    %277 = arith.maximumf %275, %276 : vector<8x16xf32>
    %278 = arith.truncf %277 : vector<8x16xf32> to vector<8x16xbf16>
    %c0_178 = arith.constant 0 : index
    %c0_179 = arith.constant 0 : index
    %279 = vector.load %arg16[%c0_178, %c0_179] : memref<16x32xbf16, #tpu.memory_space<vmem>>, vector<16x32xbf16>
    %cst_180 = arith.constant dense<0.000000e+00> : vector<8x32xf32>
    %280 = tpu.matmul %278, %279, %cst_180 {dimension_numbers = #tpu.dot_dimension_numbers<[1], [0], [0], [1], [0, 0, 1, 1], [], []>} : vector<8x16xbf16>, vector<16x32xbf16>, vector<8x32xf32> -> vector<8x32xf32>
    %c0_181 = arith.constant 0 : index
    %c0_182 = arith.constant 0 : index
    %281 = vector.load %arg13[%c0_181, %c0_182] : memref<1x32xf32, #tpu.memory_space<vmem>>, vector<1x32xf32>
    %282 = vector.broadcast %281 : vector<1x32xf32> to vector<8x32xf32>
    %283 = arith.addf %280, %282 : vector<8x32xf32>
    %cst_183 = arith.constant 0.000000e+00 : f32
    %284 = vector.broadcast %cst_183 : f32 to vector<8x32xf32>
    %285 = arith.maximumf %283, %284 : vector<8x32xf32>
    %286 = arith.addf %285, %238 : vector<8x32xf32>
    %287 = arith.truncf %286 : vector<8x32xf32> to vector<8x32xbf16>
    %c0_184 = arith.constant 0 : index
    %c0_185 = arith.constant 0 : index
    %288 = vector.load %arg27[%c0_184, %c0_185] : memref<32x16xbf16, #tpu.memory_space<vmem>>, vector<32x16xbf16>
    %cst_186 = arith.constant dense<0.000000e+00> : vector<8x16xf32>
    %289 = tpu.matmul %287, %288, %cst_186 {dimension_numbers = #tpu.dot_dimension_numbers<[1], [0], [0], [1], [0, 0, 1, 1], [], []>} : vector<8x32xbf16>, vector<32x16xbf16>, vector<8x16xf32> -> vector<8x16xf32>
    %c0_187 = arith.constant 0 : index
    %c0_188 = arith.constant 0 : index
    %290 = vector.load %arg25[%c0_187, %c0_188] : memref<4x16xf32, #tpu.memory_space<vmem>>, vector<1x16xf32>
    %291 = vector.broadcast %290 : vector<1x16xf32> to vector<8x16xf32>
    %292 = arith.addf %289, %291 : vector<8x16xf32>
    %cst_189 = arith.constant 0.000000e+00 : f32
    %293 = vector.broadcast %cst_189 : f32 to vector<8x16xf32>
    %294 = arith.maximumf %292, %293 : vector<8x16xf32>
    %c1_190 = arith.constant 1 : index
    %c0_191 = arith.constant 0 : index
    %295 = vector.load %arg25[%c1_190, %c0_191] : memref<4x16xf32, #tpu.memory_space<vmem>>, vector<1x16xf32>
    %296 = vector.broadcast %295 : vector<1x16xf32> to vector<8x16xf32>
    %297 = arith.mulf %294, %296 : vector<8x16xf32>
    %c2_192 = arith.constant 2 : index
    %c0_193 = arith.constant 0 : index
    %298 = vector.load %arg25[%c2_192, %c0_193] : memref<4x16xf32, #tpu.memory_space<vmem>>, vector<1x16xf32>
    %299 = vector.broadcast %298 : vector<1x16xf32> to vector<8x16xf32>
    %300 = arith.addf %297, %299 : vector<8x16xf32>
    %c1_i32_194 = arith.constant 1 : i32
    %301 = tpu.dynamic_rotate %300 by %c1_i32_194 dim 0 : vector<8x16xf32>, i32 -> vector<8x16xf32>
    %302 = vector.broadcast %129 : vector<8x1xf32> to vector<8x16xf32>
    %303 = arith.mulf %301, %302 : vector<8x16xf32>
    %c7_i32_195 = arith.constant 7 : i32
    %304 = tpu.dynamic_rotate %300 by %c7_i32_195 dim 0 : vector<8x16xf32>, i32 -> vector<8x16xf32>
    %305 = vector.broadcast %133 : vector<8x1xf32> to vector<8x16xf32>
    %306 = arith.mulf %304, %305 : vector<8x16xf32>
    %307 = arith.truncf %303 : vector<8x16xf32> to vector<8x16xbf16>
    %c0_196 = arith.constant 0 : index
    %c0_197 = arith.constant 0 : index
    %c0_198 = arith.constant 0 : index
    %308 = vector.load %arg28[%c0_196, %c0_197, %c0_198] : memref<3x16x16xbf16, #tpu.memory_space<vmem>>, vector<1x16x16xbf16>
    %309 = vector.shape_cast %308 : vector<1x16x16xbf16> to vector<16x16xbf16>
    %cst_199 = arith.constant dense<0.000000e+00> : vector<8x16xf32>
    %310 = tpu.matmul %307, %309, %cst_199 {dimension_numbers = #tpu.dot_dimension_numbers<[1], [0], [0], [1], [0, 0, 1, 1], [], []>} : vector<8x16xbf16>, vector<16x16xbf16>, vector<8x16xf32> -> vector<8x16xf32>
    %311 = arith.truncf %300 : vector<8x16xf32> to vector<8x16xbf16>
    %c1_200 = arith.constant 1 : index
    %c0_201 = arith.constant 0 : index
    %c0_202 = arith.constant 0 : index
    %312 = vector.load %arg28[%c1_200, %c0_201, %c0_202] : memref<3x16x16xbf16, #tpu.memory_space<vmem>>, vector<1x16x16xbf16>
    %313 = vector.shape_cast %312 : vector<1x16x16xbf16> to vector<16x16xbf16>
    %cst_203 = arith.constant dense<0.000000e+00> : vector<8x16xf32>
    %314 = tpu.matmul %311, %313, %cst_203 {dimension_numbers = #tpu.dot_dimension_numbers<[1], [0], [0], [1], [0, 0, 1, 1], [], []>} : vector<8x16xbf16>, vector<16x16xbf16>, vector<8x16xf32> -> vector<8x16xf32>
    %315 = arith.addf %310, %314 : vector<8x16xf32>
    %316 = arith.truncf %306 : vector<8x16xf32> to vector<8x16xbf16>
    %c2_204 = arith.constant 2 : index
    %c0_205 = arith.constant 0 : index
    %c0_206 = arith.constant 0 : index
    %317 = vector.load %arg28[%c2_204, %c0_205, %c0_206] : memref<3x16x16xbf16, #tpu.memory_space<vmem>>, vector<1x16x16xbf16>
    %318 = vector.shape_cast %317 : vector<1x16x16xbf16> to vector<16x16xbf16>
    %cst_207 = arith.constant dense<0.000000e+00> : vector<8x16xf32>
    %319 = tpu.matmul %316, %318, %cst_207 {dimension_numbers = #tpu.dot_dimension_numbers<[1], [0], [0], [1], [0, 0, 1, 1], [], []>} : vector<8x16xbf16>, vector<16x16xbf16>, vector<8x16xf32> -> vector<8x16xf32>
    %320 = arith.addf %315, %319 : vector<8x16xf32>
    %c3_208 = arith.constant 3 : index
    %c0_209 = arith.constant 0 : index
    %321 = vector.load %arg25[%c3_208, %c0_209] : memref<4x16xf32, #tpu.memory_space<vmem>>, vector<1x16xf32>
    %322 = vector.broadcast %321 : vector<1x16xf32> to vector<8x16xf32>
    %323 = arith.addf %320, %322 : vector<8x16xf32>
    %cst_210 = arith.constant 0.000000e+00 : f32
    %324 = vector.broadcast %cst_210 : f32 to vector<8x16xf32>
    %325 = arith.maximumf %323, %324 : vector<8x16xf32>
    %326 = arith.truncf %325 : vector<8x16xf32> to vector<8x16xbf16>
    %c0_211 = arith.constant 0 : index
    %c0_212 = arith.constant 0 : index
    %327 = vector.load %arg29[%c0_211, %c0_212] : memref<16x32xbf16, #tpu.memory_space<vmem>>, vector<16x32xbf16>
    %cst_213 = arith.constant dense<0.000000e+00> : vector<8x32xf32>
    %328 = tpu.matmul %326, %327, %cst_213 {dimension_numbers = #tpu.dot_dimension_numbers<[1], [0], [0], [1], [0, 0, 1, 1], [], []>} : vector<8x16xbf16>, vector<16x32xbf16>, vector<8x32xf32> -> vector<8x32xf32>
    %c0_214 = arith.constant 0 : index
    %c0_215 = arith.constant 0 : index
    %329 = vector.load %arg26[%c0_214, %c0_215] : memref<1x32xf32, #tpu.memory_space<vmem>>, vector<1x32xf32>
    %330 = vector.broadcast %329 : vector<1x32xf32> to vector<8x32xf32>
    %331 = arith.addf %328, %330 : vector<8x32xf32>
    %cst_216 = arith.constant 0.000000e+00 : f32
    %332 = vector.broadcast %cst_216 : f32 to vector<8x32xf32>
    %333 = arith.maximumf %331, %332 : vector<8x32xf32>
    %334 = arith.addf %333, %286 : vector<8x32xf32>
    %c0_217 = arith.constant 0 : index
    %c0_218 = arith.constant 0 : index
    %335 = vector.load %arg30[%c0_217, %c0_218] : memref<32x64xf32, #tpu.memory_space<vmem>>, vector<32x64xf32>
    %cst_219 = arith.constant dense<0.000000e+00> : vector<8x64xf32>
    %336 = tpu.matmul %334, %335, %cst_219 {dimension_numbers = #tpu.dot_dimension_numbers<[1], [0], [0], [1], [0, 0, 1, 1], [], []>} : vector<8x32xf32>, vector<32x64xf32>, vector<8x64xf32> -> vector<8x64xf32>
    %c0_220 = arith.constant 0 : index
    %c0_221 = arith.constant 0 : index
    %337 = vector.load %arg31[%c0_220, %c0_221] : memref<16x8xf32, #tpu.memory_space<vmem>>, vector<16x8xf32>
    %cst_222 = arith.constant dense<0.000000e+00> : vector<16x64xf32>
    %338 = tpu.matmul %337, %336, %cst_222 {dimension_numbers = #tpu.dot_dimension_numbers<[1], [0], [0], [1], [0, 0, 1, 1], [], []>} : vector<16x8xf32>, vector<8x64xf32>, vector<16x64xf32> -> vector<16x64xf32>
    %339 = arith.addf %338, %181 : vector<16x64xf32>
    %340 = arith.truncf %339 : vector<16x64xf32> to vector<16x64xbf16>
    %c0_223 = arith.constant 0 : index
    %c0_224 = arith.constant 0 : index
    %341 = vector.load %arg42[%c0_223, %c0_224] : memref<64x32xbf16, #tpu.memory_space<vmem>>, vector<64x32xbf16>
    %cst_225 = arith.constant dense<0.000000e+00> : vector<16x32xf32>
    %342 = tpu.matmul %340, %341, %cst_225 {dimension_numbers = #tpu.dot_dimension_numbers<[1], [0], [0], [1], [0, 0, 1, 1], [], []>} : vector<16x64xbf16>, vector<64x32xbf16>, vector<16x32xf32> -> vector<16x32xf32>
    %c0_226 = arith.constant 0 : index
    %c0_227 = arith.constant 0 : index
    %343 = vector.load %arg40[%c0_226, %c0_227] : memref<4x32xf32, #tpu.memory_space<vmem>>, vector<1x32xf32>
    %344 = vector.broadcast %343 : vector<1x32xf32> to vector<16x32xf32>
    %345 = arith.addf %342, %344 : vector<16x32xf32>
    %cst_228 = arith.constant 0.000000e+00 : f32
    %346 = vector.broadcast %cst_228 : f32 to vector<16x32xf32>
    %347 = arith.maximumf %345, %346 : vector<16x32xf32>
    %c1_229 = arith.constant 1 : index
    %c0_230 = arith.constant 0 : index
    %348 = vector.load %arg40[%c1_229, %c0_230] : memref<4x32xf32, #tpu.memory_space<vmem>>, vector<1x32xf32>
    %349 = vector.broadcast %348 : vector<1x32xf32> to vector<16x32xf32>
    %350 = arith.mulf %347, %349 : vector<16x32xf32>
    %c2_231 = arith.constant 2 : index
    %c0_232 = arith.constant 0 : index
    %351 = vector.load %arg40[%c2_231, %c0_232] : memref<4x32xf32, #tpu.memory_space<vmem>>, vector<1x32xf32>
    %352 = vector.broadcast %351 : vector<1x32xf32> to vector<16x32xf32>
    %353 = arith.addf %350, %352 : vector<16x32xf32>
    %c1_i32_233 = arith.constant 1 : i32
    %354 = tpu.dynamic_rotate %353 by %c1_i32_233 dim 0 : vector<16x32xf32>, i32 -> vector<16x32xf32>
    %355 = vector.broadcast %15 : vector<16x1xf32> to vector<16x32xf32>
    %356 = arith.mulf %354, %355 : vector<16x32xf32>
    %c15_i32_234 = arith.constant 15 : i32
    %357 = tpu.dynamic_rotate %353 by %c15_i32_234 dim 0 : vector<16x32xf32>, i32 -> vector<16x32xf32>
    %358 = vector.broadcast %19 : vector<16x1xf32> to vector<16x32xf32>
    %359 = arith.mulf %357, %358 : vector<16x32xf32>
    %360 = arith.truncf %356 : vector<16x32xf32> to vector<16x32xbf16>
    %c0_235 = arith.constant 0 : index
    %c0_236 = arith.constant 0 : index
    %c0_237 = arith.constant 0 : index
    %361 = vector.load %arg43[%c0_235, %c0_236, %c0_237] : memref<3x32x32xbf16, #tpu.memory_space<vmem>>, vector<1x32x32xbf16>
    %362 = vector.shape_cast %361 : vector<1x32x32xbf16> to vector<32x32xbf16>
    %cst_238 = arith.constant dense<0.000000e+00> : vector<16x32xf32>
    %363 = tpu.matmul %360, %362, %cst_238 {dimension_numbers = #tpu.dot_dimension_numbers<[1], [0], [0], [1], [0, 0, 1, 1], [], []>} : vector<16x32xbf16>, vector<32x32xbf16>, vector<16x32xf32> -> vector<16x32xf32>
    %364 = arith.truncf %353 : vector<16x32xf32> to vector<16x32xbf16>
    %c1_239 = arith.constant 1 : index
    %c0_240 = arith.constant 0 : index
    %c0_241 = arith.constant 0 : index
    %365 = vector.load %arg43[%c1_239, %c0_240, %c0_241] : memref<3x32x32xbf16, #tpu.memory_space<vmem>>, vector<1x32x32xbf16>
    %366 = vector.shape_cast %365 : vector<1x32x32xbf16> to vector<32x32xbf16>
    %cst_242 = arith.constant dense<0.000000e+00> : vector<16x32xf32>
    %367 = tpu.matmul %364, %366, %cst_242 {dimension_numbers = #tpu.dot_dimension_numbers<[1], [0], [0], [1], [0, 0, 1, 1], [], []>} : vector<16x32xbf16>, vector<32x32xbf16>, vector<16x32xf32> -> vector<16x32xf32>
    %368 = arith.addf %363, %367 : vector<16x32xf32>
    %369 = arith.truncf %359 : vector<16x32xf32> to vector<16x32xbf16>
    %c2_243 = arith.constant 2 : index
    %c0_244 = arith.constant 0 : index
    %c0_245 = arith.constant 0 : index
    %370 = vector.load %arg43[%c2_243, %c0_244, %c0_245] : memref<3x32x32xbf16, #tpu.memory_space<vmem>>, vector<1x32x32xbf16>
    %371 = vector.shape_cast %370 : vector<1x32x32xbf16> to vector<32x32xbf16>
    %cst_246 = arith.constant dense<0.000000e+00> : vector<16x32xf32>
    %372 = tpu.matmul %369, %371, %cst_246 {dimension_numbers = #tpu.dot_dimension_numbers<[1], [0], [0], [1], [0, 0, 1, 1], [], []>} : vector<16x32xbf16>, vector<32x32xbf16>, vector<16x32xf32> -> vector<16x32xf32>
    %373 = arith.addf %368, %372 : vector<16x32xf32>
    %c3_247 = arith.constant 3 : index
    %c0_248 = arith.constant 0 : index
    %374 = vector.load %arg40[%c3_247, %c0_248] : memref<4x32xf32, #tpu.memory_space<vmem>>, vector<1x32xf32>
    %375 = vector.broadcast %374 : vector<1x32xf32> to vector<16x32xf32>
    %376 = arith.addf %373, %375 : vector<16x32xf32>
    %cst_249 = arith.constant 0.000000e+00 : f32
    %377 = vector.broadcast %cst_249 : f32 to vector<16x32xf32>
    %378 = arith.maximumf %376, %377 : vector<16x32xf32>
    %379 = arith.truncf %378 : vector<16x32xf32> to vector<16x32xbf16>
    %c0_250 = arith.constant 0 : index
    %c0_251 = arith.constant 0 : index
    %380 = vector.load %arg44[%c0_250, %c0_251] : memref<32x64xbf16, #tpu.memory_space<vmem>>, vector<32x64xbf16>
    %cst_252 = arith.constant dense<0.000000e+00> : vector<16x64xf32>
    %381 = tpu.matmul %379, %380, %cst_252 {dimension_numbers = #tpu.dot_dimension_numbers<[1], [0], [0], [1], [0, 0, 1, 1], [], []>} : vector<16x32xbf16>, vector<32x64xbf16>, vector<16x64xf32> -> vector<16x64xf32>
    %c0_253 = arith.constant 0 : index
    %c0_254 = arith.constant 0 : index
    %382 = vector.load %arg41[%c0_253, %c0_254] : memref<1x64xf32, #tpu.memory_space<vmem>>, vector<1x64xf32>
    %383 = vector.broadcast %382 : vector<1x64xf32> to vector<16x64xf32>
    %384 = arith.addf %381, %383 : vector<16x64xf32>
    %cst_255 = arith.constant 0.000000e+00 : f32
    %385 = vector.broadcast %cst_255 : f32 to vector<16x64xf32>
    %386 = arith.maximumf %384, %385 : vector<16x64xf32>
    %387 = arith.addf %386, %339 : vector<16x64xf32>
    %c0_256 = arith.constant 0 : index
    %c0_257 = arith.constant 0 : index
    %388 = vector.load %arg45[%c0_256, %c0_257] : memref<64x128xf32, #tpu.memory_space<vmem>>, vector<64x128xf32>
    %cst_258 = arith.constant dense<0.000000e+00> : vector<16x128xf32>
    %389 = tpu.matmul %387, %388, %cst_258 {dimension_numbers = #tpu.dot_dimension_numbers<[1], [0], [0], [1], [0, 0, 1, 1], [], []>} : vector<16x64xf32>, vector<64x128xf32>, vector<16x128xf32> -> vector<16x128xf32>
    %c0_259 = arith.constant 0 : index
    %c0_260 = arith.constant 0 : index
    %390 = vector.load %arg46[%c0_259, %c0_260] : memref<32x16xf32, #tpu.memory_space<vmem>>, vector<32x16xf32>
    %cst_261 = arith.constant dense<0.000000e+00> : vector<32x128xf32>
    %391 = tpu.matmul %390, %389, %cst_261 {dimension_numbers = #tpu.dot_dimension_numbers<[1], [0], [0], [1], [0, 0, 1, 1], [], []>} : vector<32x16xf32>, vector<16x128xf32>, vector<32x128xf32> -> vector<32x128xf32>
    %392 = arith.addf %391, %67 : vector<32x128xf32>
    %c0_262 = arith.constant 0 : index
    %c0_263 = arith.constant 0 : index
    %c0_264 = arith.constant 0 : index
    %393 = vector.load %arg47[%c0_262, %c0_263, %c0_264] : memref<1x32x128xf32, #tpu.memory_space<vmem>>, vector<1x32x128xf32>
    %394 = vector.shape_cast %393 : vector<1x32x128xf32> to vector<32x128xf32>
    %395 = vector.shape_cast %392 : vector<32x128xf32> to vector<1x32x128xf32>
    tpu.vector_store %arg47[%c0_262, %c0_263, %c0_264], %395 {strides = array<i32>} : memref<1x32x128xf32, #tpu.memory_space<vmem>>, vector<1x32x128xf32>,
    return
  }
  func.func @transform_0(%arg0: i32) -> (i32, i32, i32) {
    %c0_i32 = arith.constant 0 : i32
    %c0_i32_0 = arith.constant 0 : i32
    %c0_i32_1 = arith.constant 0 : i32
    return %arg0, %c0_i32, %c0_i32_0 : i32, i32, i32
  }
  func.func @transform_1(%arg0: i32) -> (i32, i32) {
    %c0_i32 = arith.constant 0 : i32
    %c0_i32_0 = arith.constant 0 : i32
    %c0_i32_1 = arith.constant 0 : i32
    return %c0_i32, %c0_i32_0 : i32, i32
  }
  func.func @transform_2(%arg0: i32) -> (i32, i32) {
    %c0_i32 = arith.constant 0 : i32
    %c0_i32_0 = arith.constant 0 : i32
    %c0_i32_1 = arith.constant 0 : i32
    return %c0_i32, %c0_i32_0 : i32, i32
  }
  func.func @transform_3(%arg0: i32) -> (i32, i32) {
    %c0_i32 = arith.constant 0 : i32
    %c0_i32_0 = arith.constant 0 : i32
    %c0_i32_1 = arith.constant 0 : i32
    return %c0_i32, %c0_i32_0 : i32, i32
  }
  func.func @transform_4(%arg0: i32) -> (i32, i32, i32) {
    %c0_i32 = arith.constant 0 : i32
    %c0_i32_0 = arith.constant 0 : i32
    %c0_i32_1 = arith.constant 0 : i32
    %c0_i32_2 = arith.constant 0 : i32
    return %c0_i32, %c0_i32_0, %c0_i32_1 : i32, i32, i32
  }
  func.func @transform_5(%arg0: i32) -> (i32, i32) {
    %c0_i32 = arith.constant 0 : i32
    %c0_i32_0 = arith.constant 0 : i32
    %c0_i32_1 = arith.constant 0 : i32
    return %c0_i32, %c0_i32_0 : i32, i32
  }
  func.func @transform_6(%arg0: i32) -> (i32, i32) {
    %c0_i32 = arith.constant 0 : i32
    %c0_i32_0 = arith.constant 0 : i32
    %c0_i32_1 = arith.constant 0 : i32
    return %c0_i32, %c0_i32_0 : i32, i32
  }
  func.func @transform_7(%arg0: i32) -> (i32, i32) {
    %c0_i32 = arith.constant 0 : i32
    %c0_i32_0 = arith.constant 0 : i32
    %c0_i32_1 = arith.constant 0 : i32
    return %c0_i32, %c0_i32_0 : i32, i32
  }
  func.func @transform_8(%arg0: i32) -> (i32, i32) {
    %c0_i32 = arith.constant 0 : i32
    %c0_i32_0 = arith.constant 0 : i32
    %c0_i32_1 = arith.constant 0 : i32
    return %c0_i32, %c0_i32_0 : i32, i32
  }
  func.func @transform_9(%arg0: i32) -> (i32, i32, i32) {
    %c0_i32 = arith.constant 0 : i32
    %c0_i32_0 = arith.constant 0 : i32
    %c0_i32_1 = arith.constant 0 : i32
    %c0_i32_2 = arith.constant 0 : i32
    return %c0_i32, %c0_i32_0, %c0_i32_1 : i32, i32, i32
  }
  func.func @transform_10(%arg0: i32) -> (i32, i32) {
    %c0_i32 = arith.constant 0 : i32
    %c0_i32_0 = arith.constant 0 : i32
    %c0_i32_1 = arith.constant 0 : i32
    return %c0_i32, %c0_i32_0 : i32, i32
  }
  func.func @transform_11(%arg0: i32) -> (i32, i32) {
    %c0_i32 = arith.constant 0 : i32
    %c0_i32_0 = arith.constant 0 : i32
    %c0_i32_1 = arith.constant 0 : i32
    return %c0_i32, %c0_i32_0 : i32, i32
  }
  func.func @transform_12(%arg0: i32) -> (i32, i32) {
    %c0_i32 = arith.constant 0 : i32
    %c0_i32_0 = arith.constant 0 : i32
    %c0_i32_1 = arith.constant 0 : i32
    return %c0_i32, %c0_i32_0 : i32, i32
  }
  func.func @transform_13(%arg0: i32) -> (i32, i32) {
    %c0_i32 = arith.constant 0 : i32
    %c0_i32_0 = arith.constant 0 : i32
    %c0_i32_1 = arith.constant 0 : i32
    return %c0_i32, %c0_i32_0 : i32, i32
  }
  func.func @transform_14(%arg0: i32) -> (i32, i32, i32) {
    %c0_i32 = arith.constant 0 : i32
    %c0_i32_0 = arith.constant 0 : i32
    %c0_i32_1 = arith.constant 0 : i32
    %c0_i32_2 = arith.constant 0 : i32
    return %c0_i32, %c0_i32_0, %c0_i32_1 : i32, i32, i32
  }
  func.func @transform_15(%arg0: i32) -> (i32, i32) {
    %c0_i32 = arith.constant 0 : i32
    %c0_i32_0 = arith.constant 0 : i32
    %c0_i32_1 = arith.constant 0 : i32
    return %c0_i32, %c0_i32_0 : i32, i32
  }
  func.func @transform_16(%arg0: i32) -> (i32, i32) {
    %c0_i32 = arith.constant 0 : i32
    %c0_i32_0 = arith.constant 0 : i32
    %c0_i32_1 = arith.constant 0 : i32
    return %c0_i32, %c0_i32_0 : i32, i32
  }
  func.func @transform_17(%arg0: i32) -> (i32, i32) {
    %c0_i32 = arith.constant 0 : i32
    %c0_i32_0 = arith.constant 0 : i32
    %c0_i32_1 = arith.constant 0 : i32
    return %c0_i32, %c0_i32_0 : i32, i32
  }
  func.func @transform_18(%arg0: i32) -> (i32, i32) {
    %c0_i32 = arith.constant 0 : i32
    %c0_i32_0 = arith.constant 0 : i32
    %c0_i32_1 = arith.constant 0 : i32
    return %c0_i32, %c0_i32_0 : i32, i32
  }
  func.func @transform_19(%arg0: i32) -> (i32, i32) {
    %c0_i32 = arith.constant 0 : i32
    %c0_i32_0 = arith.constant 0 : i32
    %c0_i32_1 = arith.constant 0 : i32
    return %c0_i32, %c0_i32_0 : i32, i32
  }
  func.func @transform_20(%arg0: i32) -> (i32, i32) {
    %c0_i32 = arith.constant 0 : i32
    %c0_i32_0 = arith.constant 0 : i32
    %c0_i32_1 = arith.constant 0 : i32
    return %c0_i32, %c0_i32_0 : i32, i32
  }
  func.func @transform_21(%arg0: i32) -> (i32, i32) {
    %c0_i32 = arith.constant 0 : i32
    %c0_i32_0 = arith.constant 0 : i32
    %c0_i32_1 = arith.constant 0 : i32
    return %c0_i32, %c0_i32_0 : i32, i32
  }
  func.func @transform_22(%arg0: i32) -> (i32, i32, i32) {
    %c0_i32 = arith.constant 0 : i32
    %c0_i32_0 = arith.constant 0 : i32
    %c0_i32_1 = arith.constant 0 : i32
    %c0_i32_2 = arith.constant 0 : i32
    return %c0_i32, %c0_i32_0, %c0_i32_1 : i32, i32, i32
  }
  func.func @transform_23(%arg0: i32) -> (i32, i32) {
    %c0_i32 = arith.constant 0 : i32
    %c0_i32_0 = arith.constant 0 : i32
    %c0_i32_1 = arith.constant 0 : i32
    return %c0_i32, %c0_i32_0 : i32, i32
  }
  func.func @transform_24(%arg0: i32) -> (i32, i32) {
    %c0_i32 = arith.constant 0 : i32
    %c0_i32_0 = arith.constant 0 : i32
    %c0_i32_1 = arith.constant 0 : i32
    return %c0_i32, %c0_i32_0 : i32, i32
  }
  func.func @transform_25(%arg0: i32) -> (i32, i32) {
    %c0_i32 = arith.constant 0 : i32
    %c0_i32_0 = arith.constant 0 : i32
    %c0_i32_1 = arith.constant 0 : i32
    return %c0_i32, %c0_i32_0 : i32, i32
  }
  func.func @transform_26(%arg0: i32) -> (i32, i32) {
    %c0_i32 = arith.constant 0 : i32
    %c0_i32_0 = arith.constant 0 : i32
    %c0_i32_1 = arith.constant 0 : i32
    return %c0_i32, %c0_i32_0 : i32, i32
  }
  func.func @transform_27(%arg0: i32) -> (i32, i32, i32) {
    %c0_i32 = arith.constant 0 : i32
    %c0_i32_0 = arith.constant 0 : i32
    %c0_i32_1 = arith.constant 0 : i32
    %c0_i32_2 = arith.constant 0 : i32
    return %c0_i32, %c0_i32_0, %c0_i32_1 : i32, i32, i32
  }
  func.func @transform_28(%arg0: i32) -> (i32, i32) {
    %c0_i32 = arith.constant 0 : i32
    %c0_i32_0 = arith.constant 0 : i32
    %c0_i32_1 = arith.constant 0 : i32
    return %c0_i32, %c0_i32_0 : i32, i32
  }
  func.func @transform_29(%arg0: i32) -> (i32, i32) {
    %c0_i32 = arith.constant 0 : i32
    %c0_i32_0 = arith.constant 0 : i32
    %c0_i32_1 = arith.constant 0 : i32
    return %c0_i32, %c0_i32_0 : i32, i32
  }
  func.func @transform_30(%arg0: i32) -> (i32, i32) {
    %c0_i32 = arith.constant 0 : i32
    %c0_i32_0 = arith.constant 0 : i32
    %c0_i32_1 = arith.constant 0 : i32
    return %c0_i32, %c0_i32_0 : i32, i32
  }
  func.func @transform_31(%arg0: i32) -> (i32, i32) {
    %c0_i32 = arith.constant 0 : i32
    %c0_i32_0 = arith.constant 0 : i32
    %c0_i32_1 = arith.constant 0 : i32
    return %c0_i32, %c0_i32_0 : i32, i32
  }
  func.func @transform_32(%arg0: i32) -> (i32, i32) {
    %c0_i32 = arith.constant 0 : i32
    %c0_i32_0 = arith.constant 0 : i32
    %c0_i32_1 = arith.constant 0 : i32
    return %c0_i32, %c0_i32_0 : i32, i32
  }
  func.func @transform_33(%arg0: i32) -> (i32, i32) {
    %c0_i32 = arith.constant 0 : i32
    %c0_i32_0 = arith.constant 0 : i32
    %c0_i32_1 = arith.constant 0 : i32
    return %c0_i32, %c0_i32_0 : i32, i32
  }
  func.func @transform_34(%arg0: i32) -> (i32, i32) {
    %c0_i32 = arith.constant 0 : i32
    %c0_i32_0 = arith.constant 0 : i32
    %c0_i32_1 = arith.constant 0 : i32
    return %c0_i32, %c0_i32_0 : i32, i32
  }
  func.func @transform_35(%arg0: i32) -> (i32, i32) {
    %c0_i32 = arith.constant 0 : i32
    %c0_i32_0 = arith.constant 0 : i32
    %c0_i32_1 = arith.constant 0 : i32
    return %c0_i32, %c0_i32_0 : i32, i32
  }
  func.func @transform_36(%arg0: i32) -> (i32, i32) {
    %c0_i32 = arith.constant 0 : i32
    %c0_i32_0 = arith.constant 0 : i32
    %c0_i32_1 = arith.constant 0 : i32
    return %c0_i32, %c0_i32_0 : i32, i32
  }
  func.func @transform_37(%arg0: i32) -> (i32, i32, i32) {
    %c0_i32 = arith.constant 0 : i32
    %c0_i32_0 = arith.constant 0 : i32
    %c0_i32_1 = arith.constant 0 : i32
    %c0_i32_2 = arith.constant 0 : i32
    return %c0_i32, %c0_i32_0, %c0_i32_1 : i32, i32, i32
  }
  func.func @transform_38(%arg0: i32) -> (i32, i32) {
    %c0_i32 = arith.constant 0 : i32
    %c0_i32_0 = arith.constant 0 : i32
    %c0_i32_1 = arith.constant 0 : i32
    return %c0_i32, %c0_i32_0 : i32, i32
  }
  func.func @transform_39(%arg0: i32) -> (i32, i32) {
    %c0_i32 = arith.constant 0 : i32
    %c0_i32_0 = arith.constant 0 : i32
    %c0_i32_1 = arith.constant 0 : i32
    return %c0_i32, %c0_i32_0 : i32, i32
  }
  func.func @transform_40(%arg0: i32) -> (i32, i32) {
    %c0_i32 = arith.constant 0 : i32
    %c0_i32_0 = arith.constant 0 : i32
    %c0_i32_1 = arith.constant 0 : i32
    return %c0_i32, %c0_i32_0 : i32, i32
  }
  func.func @transform_41(%arg0: i32) -> (i32, i32) {
    %c0_i32 = arith.constant 0 : i32
    %c0_i32_0 = arith.constant 0 : i32
    %c0_i32_1 = arith.constant 0 : i32
    return %c0_i32, %c0_i32_0 : i32, i32
  }
  func.func @transform_42(%arg0: i32) -> (i32, i32, i32) {
    %c0_i32 = arith.constant 0 : i32
    %c0_i32_0 = arith.constant 0 : i32
    %c0_i32_1 = arith.constant 0 : i32
    %c0_i32_2 = arith.constant 0 : i32
    return %c0_i32, %c0_i32_0, %c0_i32_1 : i32, i32, i32
  }
  func.func @transform_43(%arg0: i32) -> (i32, i32) {
    %c0_i32 = arith.constant 0 : i32
    %c0_i32_0 = arith.constant 0 : i32
    %c0_i32_1 = arith.constant 0 : i32
    return %c0_i32, %c0_i32_0 : i32, i32
  }
  func.func @transform_44(%arg0: i32) -> (i32, i32) {
    %c0_i32 = arith.constant 0 : i32
    %c0_i32_0 = arith.constant 0 : i32
    %c0_i32_1 = arith.constant 0 : i32
    return %c0_i32, %c0_i32_0 : i32, i32
  }
  func.func @transform_45(%arg0: i32) -> (i32, i32) {
    %c0_i32 = arith.constant 0 : i32
    %c0_i32_0 = arith.constant 0 : i32
    %c0_i32_1 = arith.constant 0 : i32
    return %c0_i32, %c0_i32_0 : i32, i32
  }
  func.func @transform_46(%arg0: i32) -> (i32, i32, i32) {
    %c0_i32 = arith.constant 0 : i32
    %c0_i32_0 = arith.constant 0 : i32
    %c0_i32_1 = arith.constant 0 : i32
    return %arg0, %c0_i32, %c0_i32_0 : i32, i32, i32
  }
}

</mosaic_0001>

<bundles_post_ra>
// kernel: forward.1
= control target key start
LH: loop header
LB: loop body
LE: loop exit
PB: predicated region body
PF: predicated region fallthrough
CT: control target
= control target key end

     0   :  { %s4401_s6 = smov 1   ;;  %s4402_s10 = smov 2   ;;  %s5204_s0 = inlined_call_operand.smem [shape: u32[47], index: -1, kind: input, shape index: {}] }
   0x1   :  { %s4461_s5 = sld [smem:[%s5204_s0]]   ;;  %s4403_s14 = smov 3  }
   0x2   :  { %s4466_s9 = sld [smem:[%s5204_s0 + %s4401_s6]]   ;;  %s4404_s18 = smov 4  }
   0x3   :  { %s4471_s13 = sld [smem:[%s5204_s0 + %s4402_s10]]   ;;  %s4405_s22 = smov 5  }
   0x4   :  { %s4476_s17 = sld [smem:[%s5204_s0 + %s4403_s14]]   ;;  %s4406_s26 = smov 6  }
   0x5   :  { %s4481_s21 = sld [smem:[%s5204_s0 + %s4404_s18]]   ;;  %s4407_s30 = smov 7  }
   0x6   :  { %s4486_s25 = sld [smem:[%s5204_s0 + %s4405_s22]]   ;;  %s4408_s4 = smov 8  }
   0x7   :  { %5243 = sst [smem:[#allocation13_spill]] %s4461_s5  ;;  %s4409_s10 = smov 9  }
   0x8   :  { %5244 = sst [smem:[#allocation14_spill]] %s4466_s9  ;;  %s4410_s15 = smov 10  }
   0x9   :  { %5245 = sst [smem:[#allocation15_spill]] %s4471_s13  ;;  %s4411_s20 = smov 11  }
   0xa   :  { %s4491_s29 = sld [smem:[%s5204_s0 + %s4406_s26]]   ;;  %s4412_s26 = smov 12  }
   0xb   :  { %5246 = sst [smem:[#allocation16_spill]] %s4481_s21  ;;  %s4413_s1 = smov 13  }
   0xc   :  { %5247 = sst [smem:[#allocation17_spill]] %s4486_s25  ;;  %s4414_s7 = smov 14  }
   0xd   :  { %s4496_s3 = sld [smem:[%s5204_s0 + %s4407_s30]]   ;;  %s4416_s22 = smov 16  }
   0xe   :  { %s4501_s8 = sld [smem:[%s5204_s0 + %s4408_s4]]   ;;  %s4417_s28 = smov 17  }
   0xf   :  { %s4506_s14 = sld [smem:[%s5204_s0 + %s4409_s10]]  }
  0x10   :  { %5248 = sst [smem:[#allocation18_spill]] %s4491_s29 }
  0x11   :  { %s4511_s19 = sld [smem:[%s5204_s0 + %s4410_s15]]   ;;  %s4415_s15 = smov 15  }
  0x12   :  { %s4516_s24 = sld [smem:[%s5204_s0 + %s4411_s20]]  }
  0x13   :  { %5249 = sst [smem:[#allocation19_spill]] %s4496_s3 }
  0x14   :  { %5250 = sst [smem:[#allocation20_spill]] %s4501_s8 }
  0x15   :  { %5251 = sst [smem:[#allocation21_spill]] %s4506_s14 }
  0x16   :  { %s4521_s30 = sld [smem:[%s5204_s0 + %s4412_s26]]  }
  0x17   :  { %5252 = sst [smem:[#allocation22_spill]] %s4511_s19 }
  0x18   :  { %5253 = sst [smem:[#allocation23_spill]] %s4516_s24 }
  0x19   :  { %s4526_s6 = sld [smem:[%s5204_s0 + %s4413_s1]]  }
  0x1a   :  { %s4531_s12 = sld [smem:[%s5204_s0 + %s4414_s7]]   ;;  %s4418_s7 = smov 18  }
  0x1b   :  { %s4536_s20 = sld [smem:[%s5204_s0 + %s4415_s15]]   ;;  %s4419_s15 = smov 19  }
  0x1c   :  { %s4541_s27 = sld [smem:[%s5204_s0 + %s4416_s22]]   ;;  %s4420_s22 = smov 20  }
  0x1d   :  { %s4546_s4 = sld [smem:[%s5204_s0 + %s4417_s28]]   ;;  %s4421_s28 = smov 21  }
  0x1e   :  { %s4551_s24 = sld [smem:[%s5204_s0 + %s4418_s7]]   ;;  %s4422_s7 = smov 22  }
  0x1f   :  { %5254 = sst [smem:[#allocation24_spill]] %s4526_s6 }
  0x20   :  { %5255 = sst [smem:[#allocation25_spill]] %s4531_s12 }
  0x21   :  { %5256 = sst [smem:[#allocation26_spill]] %s4536_s20 }
  0x22   :  { %5257 = sst [smem:[#allocation27_spill]] %s4541_s27 }
  0x23   :  { %5258 = sst [smem:[#allocation28_spill]] %s4546_s4 }
  0x24   :  { %5259 = sst [smem:[#allocation29_spill]] %s4551_s24 }
  0x25   :  { %s4556_s20 = sld [smem:[%s5204_s0 + %s4419_s15]]   ;;  %s4423_s15 = smov 23  }
  0x26   :  { %s4561_s12 = sld [smem:[%s5204_s0 + %s4420_s22]]   ;;  %s4424_s22 = smov 24  }
  0x27   :  { %s4566_s3 = sld [smem:[%s5204_s0 + %s4421_s28]]   ;;  %s4425_s28 = smov 25  }
  0x28   :  { %s4571_s6 = sld [smem:[%s5204_s0 + %s4422_s7]]   ;;  %s4426_s7 = smov 26  }
  0x29   :  { %s4576_s19 = sld [smem:[%s5204_s0 + %s4423_s15]]   ;;  %s4427_s15 = smov 27  }
  0x2a   :  { %s4581_s29 = sld [smem:[%s5204_s0 + %s4424_s22]]   ;;  %s4428_s22 = smov 28  }
  0x2b   :  { %5260 = sst [smem:[#allocation30_spill]] %s4556_s20 }
  0x2c   :  { %s4586_s14 = sld [smem:[%s5204_s0 + %s4425_s28]]   ;;  %s4429_s28 = smov 29  }
  0x2d   :  { %5261 = sst [smem:[#allocation31_spill]] %s4566_s3 }
  0x2e   :  { %5262 = sst [smem:[#allocation32_spill]] %s4571_s6 }
  0x2f   :  { %5263 = sst [smem:[#allocation33_spill]] %s4576_s19 }
  0x30   :  { %5264 = sst [smem:[#allocation34_spill]] %s4581_s29 }
  0x31   :  { %s4591_s8 = sld [smem:[%s5204_s0 + %s4426_s7]]   ;;  %s4430_s7 = smov 30  }
  0x32   :  { %s4596_s24 = sld [smem:[%s5204_s0 + %s4427_s15]]   ;;  %s4431_s15 = smov 31  }
  0x33   :  { %s4601_s29 = sld [smem:[%s5204_s0 + %s4428_s22]]   ;;  %s4432_s22 = smov 32  }
  0x34   :  { %s4606_s4 = sld [smem:[%s5204_s0 + %s4429_s28]]   ;;  %s4433_s28 = smov 33  }
  0x37   :  { %5265 = sst [smem:[#allocation35_spill]] %s4591_s8 }
  0x38   :  { %5266 = sst [smem:[#allocation36_spill]] %s4596_s24 }
  0x39   :  { %5267 = sst [smem:[#allocation37_spill]] %s4601_s29 }
  0x3a   :  { %5268 = sst [smem:[#allocation38_spill]] %s4606_s4 }
  0x3b   :  { %s4611_s8 = sld [smem:[%s5204_s0 + %s4430_s7]]   ;;  %s4434_s7 = smov 34  }
  0x3c   :  { %s4616_s24 = sld [smem:[%s5204_s0 + %s4431_s15]]   ;;  %s4435_s15 = smov 35  }
  0x3d   :  { %s4621_s29 = sld [smem:[%s5204_s0 + %s4432_s22]]   ;;  %s4436_s22 = smov 36  }
  0x3e   :  { %s4626_s4 = sld [smem:[%s5204_s0 + %s4433_s28]]   ;;  %s4437_s28 = smov 37  }
  0x3f   :  { %s4636_s19 = sld [smem:[%s5204_s0 + %s4435_s15]]   ;;  %s4439_s15 = smov 39  }
  0x40   :  { %s4641_s27 = sld [smem:[%s5204_s0 + %s4436_s22]]   ;;  %s4440_s22 = smov 40  }
  0x41   :  { %5269 = sst [smem:[#allocation39_spill]] %s4611_s8 }
  0x42   :  { %s4631_s8 = sld [smem:[%s5204_s0 + %s4434_s7]]   ;;  %s4438_s7 = smov 38  }
  0x43   :  { %s4646_s20 = sld [smem:[%s5204_s0 + %s4437_s28]]   ;;  %s4441_s28 = smov 41  }
  0x44   :  { %5270 = sst [smem:[#allocation40_spill]] %s4626_s4 }
  0x45   :  { %s4651_s13 = sld [smem:[%s5204_s0 + %s4438_s7]]   ;;  %s4442_s7 = smov 42  }
  0x46   :  { %s4656_s6 = sld [smem:[%s5204_s0 + %s4439_s15]]   ;;  %s4443_s15 = smov 43  }
  0x47   :  { %s4661_s3 = sld [smem:[%s5204_s0 + %s4440_s22]]   ;;  %s4444_s22 = smov 44  }
  0x48   :  { %s4666_s25 = sld [smem:[%s5204_s0 + %s4441_s28]]   ;;  %s4445_s28 = smov 45  }
  0x49   :  { %s4671_s9 = sld [smem:[%s5204_s0 + %s4442_s7]]   ;;  %s4446_s7 = smov 46  }
  0x4a   :  { %s4681_s21 = sld [smem:[%s5204_s0 + %s4444_s22]]  }
  0x4c   :  { %5271 = sst [smem:[#allocation41_spill]] %s4656_s6 }
  0x4d   :  { %5272 = sst [smem:[#allocation42_spill]] %s4661_s3 }
  0x4e   :  { %5273 = sst [smem:[#allocation43_spill]] %s4666_s25 }
  0x4f   :  { %5274 = sst [smem:[#allocation44_spill]] %s4671_s9 }
  0x50   :  { %s4676_s6 = sld [smem:[%s5204_s0 + %s4443_s15]]  }
  0x51   :  { %s4686_s25 = sld [smem:[%s5204_s0 + %s4445_s28]]  }
  0x52   :  { %s4691_s9 = sld [smem:[%s5204_s0 + %s4446_s7]]  }
  0x58   :  { %5275 = sst [smem:[#allocation45_spill]] %s4691_s9 }
  0x59   :  { %98 = vsyncpa [#allocation3], 0 }
  0x5a   :  { %99 = vsyncpa [#allocation5], 0 }
  0x5b   :  { %100 = vsyncpa [#allocation8], 0  ;;  %s4693_s15 = smov 0  }
  0x5c LB: > { %s5276_s4 = sld [smem:[#allocation40_spill]]  ;;  %s1186_s16 = sshll.u32 %s4561_s12, 4  ;;  %s4399_s15 = sphi %s4693_s15, %s106_s15   ;;  %s4699_s16 = int_to_ptr.hbm [resolvable:$true] %s1186_s16 }
  0x5d   : > { %s5277_s3 = sld [smem:[#allocation42_spill]]  ;;  %s4702_s0 = sadd.s32 4294967295, %s4399_s15  }
  0x5e   : > { %5278 = sst [smem:[#allocation46_spill]] %s4399_s15  ;;  %p3563_p0 = scmp.ge.s32.totalorder %s4399_s15, 1 }
  0x5f   : > { %p1108_p1 = scmp.lt.s32.totalorder %s4399_s15, 3  ;;  %p4122_p2 = scmp.eq.s32.totalorder %s4702_s0, 0 }
  0x60   : > { %s4447_s22 = smov [#allocation4]   ;;  %s1249_s26 = sshll.u32 %s4636_s19, 4  ;;  %s4714_s26 = int_to_ptr.hbm [resolvable:$true] %s1249_s26 }
  0x61   : > { %p4707_p3 = pnand %p3563_p0, %p1108_p1  ;;  %s1188_s23 = sshll.u32 %s4447_s22, 4  ;;  %s1189_s23 = int_to_ptr.vmem [resolvable:$true] %s1188_s23 }
  0x62   : > { %s1153_s28 = sshll.u32 %s4521_s30, 4  ;;  %s4448_s2 = smov [#allocation7]   ;;  %s4726_s28 = int_to_ptr.hbm [resolvable:$true] %s1153_s28 }
  0x63   : > { %p4106_p4 = pneg %p4707_p3  ;;  %s4723_s7 = sshll.u32 %s4448_s2, 4  ;;  %s1252_s7 = int_to_ptr.vmem [resolvable:$true] %s4723_s7 }
  0x64   : > { %s4231_s10 = sshra.s32 %s4699_s16, 4  ;;  %s4238_s15 = scalar_lea.hbm %s4561_s12, 1  ;;  %s4232_s10 = int_to_ptr.hbm [resolvable:$true] %s4231_s10 }
  0x65   : > { %p4719_p5 = pnand %p4122_p2, %p4106_p4  ;;  %s4233_s11 = scalar_lea.hbm %s4232_s10, 1 }
  0x66   : > { %p4234_p6 = scmp.ne.s32.totalorder %s4232_s10, %s4233_s11  ;;  %p4239_p10 = scmp.lt.s32.totalorder %s4232_s10, %s4561_s12 }
  0x67   : > { %p4731_p7 = pneg %p4719_p5  ;;  %p4240_p11 = scmp.lt.s32.totalorder %s4238_s15, %s4233_s11 }
  0x69   : > { %p4236_p8 = pnand %p4731_p7, %p4234_p6  ;;  %p4241_p12 = por %p4240_p11, %p4239_p10 }
  0x6b   : > { %p4237_p9 = pneg %p4236_p8 }
  0x6d   : > { %p4242_p13 = pnand %p4241_p12, %p4237_p9 }
  0x6f   : > { %4245 = shalt.err (!%p4242_p13)
}
  0x70   : > { %4112 = dma.hbm_to_vmem [thread:$0]  (!%p4719_p5), %s4699_s16, 16, %s1189_s23, [#allocation5]  }
  0x71   : > { %s4261_s2 = sshra.s32 %s4714_s26, 4  ;;  %s4268_s10 = scalar_lea.hbm %s4636_s19, 1  ;;  %s4262_s2 = int_to_ptr.hbm [resolvable:$true] %s4261_s2 }
  0x72   : > { %s4263_s9 = scalar_lea.hbm %s4262_s2, 1  ;;  %p4269_p6 = scmp.lt.s32.totalorder %s4262_s2, %s4636_s19 }
  0x73   : > { %p4264_p0 = scmp.ne.s32.totalorder %s4262_s2, %s4263_s9  ;;  %p4270_p8 = scmp.lt.s32.totalorder %s4268_s10, %s4263_s9 }
  0x75   : > { %p4266_p1 = pnand %p4264_p0, %p4731_p7  ;;  %p4271_p9 = por %p4270_p8, %p4269_p6 }
  0x77   : > { %p4267_p4 = pneg %p4266_p1 }
  0x79   : > { %p4272_p10 = pnand %p4271_p9, %p4267_p4 }
  0x7b   : > { %4275 = shalt.err (!%p4272_p10)
}
  0x7c   : > { %4118 = dma.hbm_to_vmem [thread:$0]  (!%p4719_p5), %s4714_s26, 16, %s1252_s7, [#allocation8]  }
  0x7d   : > { %s4449_s15 = smov [#allocation2]   ;;  %s1210_s23 = sshll.u32 %s4586_s14, 4  ;;  %s4751_s23 = int_to_ptr.hbm [resolvable:$true] %s1210_s23 }
  0x7e   : > { %s1155_s16 = sshll.u32 %s4449_s15, 4  ;;  %s4291_s11 = sshra.s32 %s4726_s28, 4  ;;  %s1156_s16 = int_to_ptr.vmem [resolvable:$true] %s1155_s16  ;;  %s4292_s11 = int_to_ptr.hbm [resolvable:$true] %s4291_s11 }
  0x7f   : > { %s4293_s9 = scalar_lea.hbm %s4292_s11, 1  ;;  %s4298_s2 = scalar_lea.hbm %s4521_s30, 1 }
  0x80   : > { %p4294_p11 = scmp.ne.s32.totalorder %s4292_s11, %s4293_s9  ;;  %p4299_p0 = scmp.lt.s32.totalorder %s4292_s11, %s4521_s30 }
  0x81   : > { %p4300_p1 = scmp.lt.s32.totalorder %s4298_s2, %s4293_s9 }
  0x82   : > { %p4296_p12 = pnand %p4294_p11, %p4731_p7 }
  0x83   : > { %p4301_p4 = por %p4300_p1, %p4299_p0 }
  0x84   : > { %p4297_p13 = pneg %p4296_p12 }
  0x86   : > { %p4302_p6 = pnand %p4301_p4, %p4297_p13 }
  0x88   : > { %4305 = shalt.err (!%p4302_p6)
}
  0x89   : > { %4109 = dma.hbm_to_vmem [thread:$0]  (!%p4719_p5), %s4726_s28, 16, %s1156_s16, [#allocation3]  }
  0x8a   : > { %s1273_s26 = sshll.u32 %s5277_s3, 4  ;;  %s4450_s7 = smov [#allocation6]   ;;  %s4762_s26 = int_to_ptr.hbm [resolvable:$true] %s1273_s26 }
  0x8b   : > { %s1212_s10 = sshll.u32 %s4450_s7, 4  ;;  %s4321_s15 = sshra.s32 %s4751_s23, 4  ;;  %s1213_s10 = int_to_ptr.vmem [resolvable:$true] %s1212_s10  ;;  %s4322_s15 = int_to_ptr.hbm [resolvable:$true] %s4321_s15 }
  0x8c   : > { %s4323_s11 = scalar_lea.hbm %s4322_s15, 1  ;;  %s4328_s9 = scalar_lea.hbm %s4586_s14, 1 }
  0x8d   : > { %p4324_p8 = scmp.ne.s32.totalorder %s4322_s15, %s4323_s11  ;;  %p4329_p11 = scmp.lt.s32.totalorder %s4322_s15, %s4586_s14 }
  0x8e   : > { %p4330_p12 = scmp.lt.s32.totalorder %s4328_s9, %s4323_s11 }
  0x8f   : > { %p4326_p9 = pnand %p4324_p8, %p4731_p7 }
  0x90   : > { %p4331_p13 = por %p4330_p12, %p4329_p11 }
  0x91   : > { %p4327_p10 = pneg %p4326_p9 }
  0x93   : > { %p4332_p0 = pnand %p4331_p13, %p4327_p10 }
  0x95   : > { %4335 = shalt.err (!%p4332_p0)
}
  0x96   : > { %4115 = dma.hbm_to_vmem [thread:$0]  (!%p4719_p5), %s4751_s23, 16, %s1213_s10, [#allocation5]  }
  0x97   : > { %s4451_s28 = smov [#allocation9]   ;;  %s4351_s2 = sshra.s32 %s4762_s26, 4  ;;  %s4352_s2 = int_to_ptr.hbm [resolvable:$true] %s4351_s2 }
  0x98   : > { %s1275_s16 = sshll.u32 %s4451_s28, 4  ;;  %s4353_s7 = scalar_lea.hbm %s4352_s2, 1  ;;  %s1276_s16 = int_to_ptr.vmem [resolvable:$true] %s1275_s16 }
  0x99   : > { %p4354_p1 = scmp.ne.s32.totalorder %s4352_s2, %s4353_s7  ;;  %s4358_s15 = scalar_lea.hbm %s5277_s3, 1 }
  0x9a   : > { %p4359_p8 = scmp.lt.s32.totalorder %s4352_s2, %s5277_s3  ;;  %p4360_p9 = scmp.lt.s32.totalorder %s4358_s15, %s4353_s7 }
  0x9b   : > { %p4356_p4 = pnand %p4354_p1, %p4731_p7 }
  0x9c   : > { %p4361_p10 = por %p4360_p9, %p4359_p8 }
  0x9d   : > { %p4357_p6 = pneg %p4356_p4 }
  0x9f   : > { %p4362_p11 = pnand %p4361_p10, %p4357_p6 }
  0xa1   : > { %4365 = shalt.err (!%p4362_p11)
}
  0xa2   : > { %4121 = dma.hbm_to_vmem [thread:$0]  (!%p4719_p5), %s4762_s26, 16, %s1276_s16, [#allocation8]  }
  0xa3   : > { %1311 = sbr.rel (%p4707_p3) target bundleno = 3856 (0xf10), region = 204 }
  0xa8   : > { %4386 = dma.done.wait (%p4122_p2), [#allocation3], 16  }
  0xa9   : > { %4388 = vsyncadd (%p4122_p2), [#allocation3], 4294967280 }
  0xaa   : > { %4390 = dma.done.wait (%p4122_p2), [#allocation5], 32  }
  0xab   : > { %4392 = vsyncadd (%p4122_p2), [#allocation5], 4294967264 }
  0xac   : > { %4394 = dma.done.wait (%p4122_p2), [#allocation8], 32  }
  0xad   : > { %4396 = vsyncadd (%p4122_p2), [#allocation8], 4294967264  ;;  %v4011_v0 = vld [vmem:[%s4641_s27 + $0x38] sm:$0xff]  ;;  %s5282_s5 = sld [smem:[#allocation13_spill]]  ;;  %v4010_v1 = vld [vmem:[%s4641_s27 + $0x30] sm:$0xff]  ;;  %p1442_p3 = scmp.lt.s32.totalorder %s4702_s0, 1  ;;  %v1457_v40 = vlaneseq }
  0xae   : > { %1560 = vmatpush.bf16.msra.mxu0 %v4011_v0  ;;  %v4009_v2 = vld [vmem:[%s4641_s27 + $0x28] sm:$0xff]  ;;  %v4008_v3 = vld [vmem:[%s4641_s27 + $0x20] sm:$0xff]  ;;  %v4007_v4 = vld [vmem:[%s4641_s27 + $0x18] sm:$0xff]  ;;  %vm1666_vm0 = vcmask 523264   ;;  %vm1900_vm5 = vcmask 261120   ;;  %s5283_s22 = sld [smem:[#allocation16_spill]] }
  0xaf   : > { %s5322_s0 = smov (!%p1442_p3, %s4702_s0), 1  ;;  %v4006_v5 = vld [vmem:[%s4641_s27 + $0x10] sm:$0xff]  ;;  %v4005_v6 = vld [vmem:[%s4641_s27 + $0x8] sm:$0xff]  ;;  %v4004_v7 = vld [vmem:[%s4641_s27] sm:$0xff]  ;;  %v4850_v44 = vshrl.u32 %v1457_v40, 7  ;;  %s5284_s23 = sld [smem:[#allocation14_spill]] }
  0xb0   : > { %s5229_s18 = sshll.u32 %s5322_s0, 5  ;;  %v4019_v14 = vld [vmem:[%s4646_s20 + $0x38] sm:$0xff]  ;;  %v4018_v15 = vld [vmem:[%s4646_s20 + $0x30] sm:$0xff]  ;;  %v4017_v16 = vld [vmem:[%s4646_s20 + $0x28] sm:$0xff]  ;;  %s5285_s26 = sld [smem:[#allocation17_spill]]  ;;  %vm2476_vm7 = vcmask 130048  }
  0xb1   : > { %1677 = vmatpush.bf16.msra.mxu1 %v4019_v14  ;;  %4082 = vmatpush.bf16.msra.mxu2 %v4019_v14  ;;  %v4023_v17 = vld [vmem:[%s4646_s20 + $0x58] sm:$0xff]  ;;  %v4016_v18 = vld [vmem:[%s4646_s20 + $0x20] sm:$0xff]  ;;  %v4022_v19 = vld [vmem:[%s4646_s20 + $0x50] sm:$0xff]  ;;  %vm1612_vm1 = vcmp.lt.s32.totalorder %v4850_v44, 7  ;;  %v1461_v60 = vadd.s32 24, %v4850_v44  ;;  %vm1462_vm3 = vcmp.ne.s32.totalorder %v4850_v44, 0 }
  0xb2   : > { %1561 = vmatpush.bf16.msra.mxu0 %v4010_v1  ;;  %1786 = vmatpush.bf16.msra.mxu3 %v4023_v17  ;;  %v4021_v20 = vld [vmem:[%s4646_s20 + $0x48] sm:$0xff]  ;;  %v4020_v21 = vld [vmem:[%s4646_s20 + $0x40] sm:$0xff]  ;;  %v4015_v24 = vld [vmem:[%s4646_s20 + $0x18] sm:$0xff]  ;;  %vm1599_vm4 = vcmp.lt.s32.totalorder %v4850_v44, 1  ;;  %s5286_s10 = sld [smem:[#allocation31_spill]]  ;;  %vm2238_vm8 = vcmp.ne.s32.totalorder %v4850_v44, 7 }
  0xb3   : > { %s4809_s1 = scalar_lea.vmem %s5282_s5, %s5229_s18  ;;  %v4192_v22 = vld [vmem:[%s4631_s8] ss:$0 sm:$0xff]  ;;  %v4014_v26 = vld [vmem:[%s4646_s20 + $0x10] sm:$0xff]  ;;  %v4193_v28 = vld [vmem:[%s4631_s8 + $0x1] ss:$0 sm:$0xff]  ;;  %vm1477_vm2 = vcmp.ne.s32.totalorder %v1461_v60, 31 }
  0xb4   : > { %v4813_v8 = vld [vmem:[%s4809_s1] sm:$0xff]  ;;  %v4816_v9 = vld [vmem:[%s4809_s1 + $0x8] sm:$0xff]  ;;  %v4821_v11 = vld [vmem:[%s4809_s1 + $0x10] sm:$0xff]  ;;  %s5287_s11 = sld [smem:[#allocation32_spill]]  ;;  %vm3066_vm9 = vcmask 64512  }
  0xb5   : > { %v1492_v10 = vpack.c.bf16 %v4816_v9, %v4813_v8  ;;  %v4824_v12 = vld [vmem:[%s4809_s1 + $0x18] sm:$0xff]  ;;  %1678 = vmatpush.bf16.msra.mxu1 %v4018_v15  ;;  %4083 = vmatpush.bf16.msra.mxu2 %v4018_v15  ;;  %v4013_v30 = vld [vmem:[%s4646_s20 + $0x8] sm:$0xff]  ;;  %v4194_v33 = vld [vmem:[%s4631_s8 + $0x2] ss:$0 sm:$0xff]  ;;  %v1886_v48 = vrot.slane %v4813_v8, 1  ;;  %v1888_v1 = vrot.slane %v4821_v11, 1 }
  0xb6   : > { %1562 = vmatpush.bf16.msra.mxu0 %v4009_v2  ;;  %v1493_v13 = vpack.c.bf16 %v4824_v12, %v4821_v11  ;;  %1787 = vmatpush.bf16.msra.mxu3 %v4022_v19  ;;  %v4012_v36 = vld [vmem:[%s4646_s20] sm:$0xff]  ;;  %v1889_v50 = vrot.slane %v4824_v12, 1  ;;  %v4452_v2 = vmov 0.0   ;;  %v1980_v40 = vld [vmem:[%s5276_s4 + $0x58] sm:$0xff]  ;;  %s5288_s9 = sld [smem:[#allocation15_spill]] }
  0xb7   : > { %v1933_v60 = vld [vmem:[%s4621_s29 + $0x18] sm:$0xff]  ;;  %s5289_s28 = sld [smem:[#allocation30_spill]] }
  0xb8   : > { %v1893_v59 = vsel %vm1612_vm1, %v1889_v50, %v1886_v48  ;;  %s5290_s16 = sld [smem:[#allocation27_spill]] }
  0xb9   : > { %1679 = vmatpush.bf16.msra.mxu1 %v4017_v16  ;;  %4084 = vmatpush.bf16.msra.mxu2 %v4017_v16  ;;  %v1897_v62 = vmax.f32 %v4824_v12, %v1893_v59  ;;  %s5291_s2 = sld [smem:[#allocation33_spill]] }
  0xba   : > { %1563 = vmatpush.bf16.msra.mxu0 %v4008_v3  ;;  %1788 = vmatpush.bf16.msra.mxu3 %v4021_v20  ;;  %v3581_v3 = vsel %vm1477_vm2, 1.0, %v4452_v2  ;;  %s5292_s7 = sld [smem:[#allocation28_spill]] }
  0xbb   : > { %s5293_s15 = sld [smem:[#allocation29_spill]] }
  0xbc   : > { %s5299_s3 = sld [smem:[#allocation22_spill]] }
  0xbd   : > { %1680 = vmatpush.bf16.msra.mxu1 %v4016_v18  ;;  %4085 = vmatpush.bf16.msra.mxu2 %v4016_v18  ;;  %v4885_v18 = vsel %vm1462_vm3, 1.0, %v4452_v2  ;;  %s5302_s5 = sld [smem:[#allocation19_spill]] }
  0xbe   : > { %1564 = vmatpush.bf16.msra.mxu0 %v4007_v4  ;;  %1789 = vmatpush.bf16.msra.mxu3 %v4020_v21 }
  0xc1   : > { %1726 = vmatpush.bf16.msrb.mxu2 %v4015_v24 }
  0xc2   : > { %1565 = vmatpush.bf16.msra.mxu0 %v4006_v5  ;;  %v1887_v5 = vrot.slane %v4816_v9, 1 }
  0xc4   : > { %v1891_v12 = vsel %vm1612_vm1, %v1887_v5, %v1888_v1 }
  0xc5   : > { %1727 = vmatpush.bf16.msrb.mxu2 %v4014_v26  ;;  %v1895_v16 = vmax.f32 %v4816_v9, %v1891_v12 }
  0xc6   : > { %1566 = vmatpush.bf16.msra.mxu0 %v4005_v6 }
  0xc9   : > { %1728 = vmatpush.bf16.msrb.mxu2 %v4013_v30  ;;  %v1984_v30 = vld [vmem:[%s5276_s4 + $0x78] sm:$0xff] }
  0xca   : > { %1567 = vmatpush.bf16.msra.mxu0 %v4004_v7  ;;  %v1890_v7 = vsel %vm1612_vm1, %v1888_v1, %v1889_v50  ;;  %v1931_v1 = vld [vmem:[%s4621_s29 + $0x8] sm:$0xff] }
  0xcd   : > { %1568 = vmatmul.bf16.vlgmr.msra.gmra.mxu0 %v1492_v10  ;;  %1729 = vmatpush.bf16.msrb.mxu2 %v4012_v36  ;;  %v1896_v10 = vmax.f32 %v4821_v11, %v1890_v7  ;;  %v4026_v36 = vld [vmem:[%s4651_s13 + $0x10] sm:$0xff] }
  0xce   : > { %1985 = vmatpush.msrb.mxu0 %v1984_v30 }
  0xdd   : > { %1573 = vmatmul.bf16.gmra.mxu0 %v1493_v13  ;;  %v1892_v13 = vsel %vm1612_vm1, %v1886_v48, %v1887_v5  ;;  %v1938_v48 = vld [vmem:[%s4621_s29 + $0x40] sm:$0xff] }
  0xde   : > { %v1894_v17 = vmax.f32 %v4813_v8, %v1892_v13  ;;  %v1930_v5 = vld [vmem:[%s4621_s29] sm:$0xff] }
 0x14a   : > { %v1569_v23 = vpop.f32.mrf.mxu0 }
 0x14b   : > { %v1570_v25 = vadd.f32 %v4192_v22, %v1569_v23 }
 0x14d   : > { %v1579_v27 = vmax.f32 %v1570_v25, 0.0 }
 0x14f   : > { %v1585_v32 = vmul.f32 %v4193_v28, %v1579_v27  ;;  %v1898_v27 = vld [vmem:[%s4616_s24] sm:$0xff] }
 0x151   : > { %v4843_v37 = vadd.f32 %v4194_v33, %v1585_v32  ;;  %v1944_v32 = vld [vmem:[%s4621_s29 + $0x70] sm:$0xff] }
 0x152   : > { %v1571_v29 = vpop.f32.mrf.mxu0 }
 0x153   : > { %v1572_v31 = vadd.f32 %v4192_v22, %v1571_v29  ;;  %v1608_v52 = vrot.slane %v4843_v37, 1  ;;  %v1595_v14 = vrot.slane %v4843_v37, 7  ;;  %v1945_v29 = vld [vmem:[%s4621_s29 + $0x78] sm:$0xff] }
 0x154   : > { %1946 = vmatpush.msrb.mxu3 %v1945_v29 }
 0x155   : > { %v1580_v34 = vmax.f32 %v1572_v31, 0.0  ;;  %v4027_v31 = vld [vmem:[%s4651_s13 + $0x18] sm:$0xff] }
 0x156   : > { %1863 = vmatpush.bf16.msrb.mxu1 %v4027_v31  ;;  %1947 = vmatpush.msrb.mxu3 %v1944_v32 }
 0x157   : > { %v1586_v35 = vmul.f32 %v4193_v28, %v1580_v34  ;;  %v1943_v34 = vld [vmem:[%s4621_s29 + $0x68] sm:$0xff] }
 0x158   : > { %1948 = vmatpush.msrb.mxu3 %v1943_v34 }
 0x159   : > { %v4845_v38 = vadd.f32 %v4194_v33, %v1586_v35  ;;  %v1982_v35 = vld [vmem:[%s5276_s4 + $0x68] sm:$0xff] }
 0x15a   : > { %v1574_v39 = vpop.f32.mrf.mxu0  ;;  %1864 = vmatpush.bf16.msrb.mxu1 %v4026_v36 }
 0x15b   : > { %v1575_v41 = vadd.f32 %v4192_v22, %v1574_v39  ;;  %v1631_v42 = vpack.c.bf16 %v4845_v38, %v4843_v37  ;;  %v1609_v47 = vrot.slane %v4845_v38, 1  ;;  %v1596_v20 = vrot.slane %v4845_v38, 7  ;;  %v1942_v37 = vld [vmem:[%s4621_s29 + $0x60] sm:$0xff]  ;;  %v1941_v39 = vld [vmem:[%s4621_s29 + $0x58] sm:$0xff] }
 0x15c   : > { %v1981_v38 = vld [vmem:[%s5276_s4 + $0x60] sm:$0xff]  ;;  %1949 = vmatpush.msrb.mxu3 %v1942_v37  ;;  %v4031_v37 = vld [vmem:[%s4476_s17 + $0x18] sm:$0xff] }
 0x15d   : > { %v1581_v43 = vmax.f32 %v1575_v41, 0.0  ;;  %3639 = vmatmul.msk.bf16.vlgmr.msra.gmra.mxu1 %vm1666_vm0, %v1631_v42  ;;  %v1615_v56 = vsel %vm1612_vm1, %v1608_v52, %v1609_v47  ;;  %v1602_v8 = vsel %vm1599_vm4, %v1595_v14, %v1596_v20  ;;  %v4025_v41 = vld [vmem:[%s4651_s13 + $0x8] sm:$0xff]  ;;  %v1940_v42 = vld [vmem:[%s4621_s29 + $0x50] sm:$0xff] }
 0x15e   : > { %1950 = vmatpush.msrb.mxu3 %v1941_v39  ;;  %1865 = vmatpush.bf16.msrb.mxu1 %v4025_v41  ;;  %v4029_v39 = vld [vmem:[%s4476_s17 + $0x8] sm:$0xff] }
 0x15f   : > { %v1587_v45 = vmul.f32 %v4193_v28, %v1581_v43  ;;  %v1979_v43 = vld [vmem:[%s5276_s4 + $0x50] sm:$0xff] }
 0x160   : > { %1951 = vmatpush.msrb.mxu3 %v1940_v42 }
 0x161   : > { %v1593_v46 = vadd.f32 %v4194_v33, %v1587_v45  ;;  %v1939_v45 = vld [vmem:[%s4621_s29 + $0x48] sm:$0xff] }
 0x162   : > { %v1576_v49 = vpop.f32.mrf.mxu0  ;;  %1952 = vmatpush.msrb.mxu3 %v1939_v45 }
 0x163   : > { %v1577_v51 = vadd.f32 %v4192_v22, %v1576_v49  ;;  %v1610_v53 = vrot.slane %v1593_v46, 1  ;;  %v1597_v23 = vrot.slane %v1593_v46, 7  ;;  %v1977_v49 = vld [vmem:[%s5276_s4 + $0x40] sm:$0xff] }
 0x164   : > { %1953 = vmatpush.msrb.mxu3 %v1938_v48 }
 0x165   : > { %v1582_v54 = vmax.f32 %v1577_v51, 0.0  ;;  %v1614_v55 = vsel %vm1612_vm1, %v1609_v47, %v1610_v53  ;;  %v1601_v25 = vsel %vm1599_vm4, %v1596_v20, %v1597_v23  ;;  %v4024_v47 = vld [vmem:[%s4651_s13] sm:$0xff]  ;;  %v1937_v51 = vld [vmem:[%s4621_s29 + $0x38] sm:$0xff] }
 0x166   : > { %v1741_v57 = vpack.c.bf16 %v1614_v55, %v1615_v56  ;;  %1866 = vmatpush.bf16.msrb.mxu1 %v4024_v47  ;;  %1954 = vmatpush.msrb.mxu3 %v1937_v51  ;;  %v1935_v55 = vld [vmem:[%s4621_s29 + $0x28] sm:$0xff] }
 0x167   : > { %v1588_v58 = vmul.f32 %v4193_v28, %v1582_v54  ;;  %v1899_v28 = vld [vmem:[%s4616_s24 + $0x8] sm:$0xff]  ;;  %v1975_v54 = vld [vmem:[%s5276_s4 + $0x30] sm:$0xff] }
 0x168   : > { %3683 = vmatmul.msk.bf16.vlgmr.msra.gmra.mxu3 %vm1666_vm0, %v1741_v57  ;;  %v1974_v56 = vld [vmem:[%s5276_s4 + $0x28] sm:$0xff]  ;;  %v1934_v57 = vld [vmem:[%s4621_s29 + $0x20] sm:$0xff] }
 0x169   : > { %v1594_v61 = vadd.f32 %v4194_v33, %v1588_v58  ;;  %v1983_v33 = vld [vmem:[%s5276_s4 + $0x70] sm:$0xff]  ;;  %v1973_v58 = vld [vmem:[%s5276_s4 + $0x20] sm:$0xff]  ;;  %v4037_v51 = vld [vmem:[%s5283_s22 + $0x28] sm:$0xff] }
 0x16a   : > { %1986 = vmatpush.msrb.mxu0 %v1983_v33  ;;  %2180 = vmatpush.bf16.msra.mxu1 %v4037_v51  ;;  %v4046_v51 = vld [vmem:[%s5287_s11 + $0x10] sm:$0xff] }
 0x16b   : > { %v1632_v63 = vpack.c.bf16 %v1594_v61, %v1593_v46  ;;  %v1611_v0 = vrot.slane %v1594_v61, 1  ;;  %v1598_v6 = vrot.slane %v1594_v61, 7  ;;  %v1978_v46 = vld [vmem:[%s5276_s4 + $0x48] sm:$0xff]  ;;  %v1972_v61 = vld [vmem:[%s5276_s4 + $0x18] sm:$0xff] }
 0x16c   : > { %1987 = vmatpush.msrb.mxu0 %v1982_v35 }
 0x16d   : > { %3640 = vmatmul.msk.bf16.vlgmr.msra.gmra.mxu2 %vm1666_vm0, %v1632_v63  ;;  %v1616_v4 = vsel %vm1612_vm1, %v1611_v0, %v1608_v52  ;;  %v1603_v11 = vsel %vm1599_vm4, %v1598_v6, %v1595_v14  ;;  %v1613_v19 = vsel %vm1612_vm1, %v1610_v53, %v1611_v0  ;;  %v1600_v24 = vsel %vm1599_vm4, %v1597_v23, %v1598_v6  ;;  %v1976_v52 = vld [vmem:[%s5276_s4 + $0x38] sm:$0xff]  ;;  %v1936_v53 = vld [vmem:[%s4621_s29 + $0x30] sm:$0xff]  ;;  %v1969_v6 = vld [vmem:[%s5276_s4] sm:$0xff] }
 0x16e   : > { %1919 = vmatpush.msra.mxu2 %v1897_v62  ;;  %v1620_v15 = vmul.f32 %v3581_v3, %v1616_v4  ;;  %v1604_v21 = vmul.f32 %v4885_v18, %v1603_v11  ;;  %v1622_v26 = vpack.c.bf16 %v1600_v24, %v1601_v25  ;;  %1988 = vmatpush.msrb.mxu0 %v1981_v38  ;;  %v1932_v62 = vld [vmem:[%s4621_s29 + $0x10] sm:$0xff]  ;;  %v1970_v3 = vld [vmem:[%s5276_s4 + $0x8] sm:$0xff]  ;;  %v4195_v14 = vld [vmem:[%s4631_s8 + $0x3] ss:$0 sm:$0xff] }
 0x16f   : > { %1955 = vmatpush.msrb.mxu3 %v1936_v53  ;;  %v1971_v63 = vld [vmem:[%s5276_s4 + $0x10] sm:$0xff]  ;;  %v4032_v53 = vld [vmem:[%s5283_s22] sm:$0xff] }
 0x170   : > { %1920 = vmatpush.msra.mxu2 %v1896_v10  ;;  %v1742_v9 = vpack.c.bf16 %v1620_v15, %v1613_v19  ;;  %v1621_v22 = vpack.c.bf16 %v1602_v8, %v1604_v21  ;;  %1989 = vmatpush.msrb.mxu0 %v1980_v40  ;;  %v4030_v38 = vld [vmem:[%s4476_s17 + $0x10] sm:$0xff]  ;;  %v4028_v40 = vld [vmem:[%s4476_s17] sm:$0xff] }
 0x171   : > { %1956 = vmatpush.msrb.mxu3 %v1935_v55  ;;  %v4197_v55 = vld [vmem:[%s5284_s23] ss:$0 sm:$0xff] }
 0x172   : > { %1921 = vmatpush.msra.mxu2 %v1895_v16  ;;  %1990 = vmatpush.msrb.mxu0 %v1979_v43 }
 0x173   : > { %1957 = vmatpush.msrb.mxu3 %v1934_v57 }
 0x174   : > { %1922 = vmatpush.msra.mxu2 %v1894_v17  ;;  %1991 = vmatpush.msrb.mxu0 %v1978_v46 }
 0x175   : > { %1958 = vmatpush.msrb.mxu3 %v1933_v60 }
 0x176   : > { %1992 = vmatpush.msrb.mxu0 %v1977_v49  ;;  %v4035_v49 = vld [vmem:[%s5283_s22 + $0x18] sm:$0xff] }
 0x177   : > { %1959 = vmatpush.msrb.mxu3 %v1932_v62 }
 0x178   : > { %3684 = vmatmul.msk.bf16.gmra.mxu3 %vm1666_vm0, %v1742_v9  ;;  %1993 = vmatpush.msrb.mxu0 %v1976_v52  ;;  %v4033_v52 = vld [vmem:[%s5283_s22 + $0x8] sm:$0xff] }
 0x179   : > { %1960 = vmatpush.msrb.mxu3 %v1931_v1 }
 0x17a   : > { %1994 = vmatpush.msrb.mxu0 %v1975_v54  ;;  %v4036_v54 = vld [vmem:[%s5283_s22 + $0x20] sm:$0xff] }
 0x17b   : > { %1961 = vmatpush.msrb.mxu3 %v1930_v5  ;;  %2181 = vmatpush.bf16.msra.mxu1 %v4036_v54 }
 0x17c   : > { %1995 = vmatpush.msrb.mxu0 %v1974_v56 }
 0x17d   : > { %3657 = vmatmul.msk.bf16.vlgmr.msrb.gmra.mxu2 %vm1666_vm0, %v1621_v22  ;;  %2116 = vmatpush.bf16.msra.mxu3 %v4035_v49  ;;  %v4040_v49 = vld [vmem:[%s5286_s10] sm:$0xff] }
 0x17e   : > { %1996 = vmatpush.msrb.mxu0 %v1973_v58  ;;  %2052 = vmatpush.bf16.msrb.mxu2 %v4031_v37 }
 0x180   : > { %1997 = vmatpush.msrb.mxu0 %v1972_v61  ;;  %v4199_v61 = vld [vmem:[%s5284_s23 + $0x2] ss:$0 sm:$0xff] }
 0x182   : > { %1998 = vmatpush.msrb.mxu0 %v1971_v63  ;;  %2053 = vmatpush.bf16.msrb.mxu2 %v4030_v38  ;;  %v1459_v63 = vadd.s32 8, %v4850_v44 }
 0x184   : > { %1999 = vmatpush.msrb.mxu0 %v1970_v3  ;;  %vm1487_vm6 = vcmp.ne.s32.totalorder %v1459_v63, 15 }
 0x186   : > { %2000 = vmatpush.msrb.mxu0 %v1969_v6  ;;  %2054 = vmatpush.bf16.msrb.mxu2 %v4029_v39  ;;  %v4967_v6 = vsel %vm1487_vm6, 1.0, %v4452_v2 }
 0x188   : > { %2145 = vmatpush.bf16.msra.mxu0 %v4033_v52  ;;  %v4201_v52 = vld [vmem:[%s5288_s9] ss:$0 sm:$0xff]  ;;  %s5294_s9 = smov %s5293_s15 }
 0x18a   : > { %2055 = vmatpush.bf16.msrb.mxu2 %v4028_v40 }
 0x18c   : > { %2146 = vmatpush.bf16.msra.mxu0 %v4032_v53 }
 0x18d   : > { %3658 = vmatmul.msk.bf16.gmra.mxu2 %vm1666_vm0, %v1622_v26 }
 0x19d   : > { %3703 = vmatmul.msk.f32.vlgmr.msra.gmra.mxu2 %vm1900_vm5, %v1898_v27 }
 0x1a5   : > { %3704 = vmatmul.msk.f32.gmra.mxu2 %vm1900_vm5, %v1899_v28 }
 0x1da   : > { %v1682_v4 = vpop.f32.mrf.mxu1 }
 0x1e2   : > { %v1684_v15 = vpop.f32.mrf.mxu1 }
 0x1eb   : > { %v1791_v0 = vpop.f32.mrf.mxu3 }
 0x1f0   : > { %v1687_v50 = vpop.f32.mrf.mxu2 }
 0x1f3   : > { %v1793_v12 = vpop.f32.mrf.mxu3 }
 0x1f8   : > { %v1689_v59 = vpop.f32.mrf.mxu2 }
 0x1fb   : > { %v1796_v8 = vpop.f32.mrf.mxu3 }
 0x200   : > { %v1731_v7 = vpop.f32.mrf.mxu2 }
 0x201   : > { %v1732_v10 = vadd.f32 %v1731_v7, %v1682_v4 }
 0x203   : > { %v1801_v13 = vadd.f32 %v1791_v0, %v1732_v10  ;;  %v1798_v28 = vpop.f32.mrf.mxu3 }
 0x205   : > { %v1807_v11 = vadd.f32 %v4195_v14, %v1801_v13 }
 0x207   : > { %v1811_v9 = vmax.f32 %v1807_v11, 0.0 }
 0x208   : > { %v1733_v16 = vpop.f32.mrf.mxu2 }
 0x209   : > { %v1734_v17 = vadd.f32 %v1733_v16, %v1684_v15 }
 0x20b   : > { %v1802_v19 = vadd.f32 %v1793_v12, %v1734_v17 }
 0x20d   : > { %v1808_v20 = vadd.f32 %v4195_v14, %v1802_v19 }
 0x20f   : > { %v1812_v21 = vmax.f32 %v1808_v20, 0.0 }
 0x210   : > { %v1736_v22 = vpop.f32.mrf.mxu2 }
 0x211   : > { %v1815_v23 = vpack.c.bf16 %v1812_v21, %v1811_v9  ;;  %v1737_v24 = vadd.f32 %v1736_v22, %v1687_v50  ;;  %v4034_v50 = vld [vmem:[%s5283_s22 + $0x10] sm:$0xff] }
 0x212   : > { %2117 = vmatpush.bf16.msra.mxu3 %v4034_v50  ;;  %v4047_v50 = vld [vmem:[%s5287_s11 + $0x18] sm:$0xff] }
 0x213   : > { %3701 = vmatmul.msk.bf16.vlgmr.msrb.gmra.mxu1 %vm1666_vm0, %v1815_v23  ;;  %v1803_v25 = vadd.f32 %v1796_v8, %v1737_v24  ;;  %v4039_v23 = vld [vmem:[%s5285_s26 + $0x8] sm:$0xff] }
 0x214   : > { %2226 = vmatpush.bf16.msra.mxu2 %v4039_v23 }
 0x215   : > { %v1809_v29 = vadd.f32 %v4195_v14, %v1803_v25  ;;  %v4038_v25 = vld [vmem:[%s5285_s26] sm:$0xff] }
 0x217   : > { %v1813_v32 = vmax.f32 %v1809_v29, 0.0 }
 0x218   : > { %v1738_v26 = vpop.f32.mrf.mxu2  ;;  %2227 = vmatpush.bf16.msra.mxu2 %v4038_v25 }
 0x219   : > { %v1739_v27 = vadd.f32 %v1738_v26, %v1689_v59  ;;  %v4198_v59 = vld [vmem:[%s5284_s23 + $0x1] ss:$0 sm:$0xff] }
 0x21b   : > { %v1804_v30 = vadd.f32 %v1798_v28, %v1739_v27 }
 0x21d   : > { %v1810_v31 = vadd.f32 %v4195_v14, %v1804_v30 }
 0x21f   : > { %v1814_v33 = vmax.f32 %v1810_v31, 0.0 }
 0x220   : > { %v1924_v34 = vpop.f32.mrf.mxu2 }
 0x221   : > { %1962 = vmatmul.f32.vlgmr.msrb.gmra.mxu3 %v1924_v34  ;;  %2001 = vmatmul.f32.vlgmr.msrb.gmra.mxu0 %v1924_v34  ;;  %v1816_v35 = vpack.c.bf16 %v1814_v33, %v1813_v32  ;;  %v4200_v32 = vld [vmem:[%s5284_s23 + $0x3] ss:$0 sm:$0xff] }
 0x222   : > { %2347 = vmatpush.bf16.msrb.mxu0 %v4047_v50  ;;  %v2536_v50 = vld [vmem:[%s5294_s9 + $0x28] sm:$0xff] }
 0x223   : > { %3702 = vmatmul.msk.bf16.gmra.mxu1 %vm1666_vm0, %v1816_v35 }
 0x226   : > { %2348 = vmatpush.bf16.msrb.mxu0 %v4046_v51 }
 0x228   : > { %v1927_v36 = vpop.f32.mrf.mxu2 }
 0x229   : > { %1965 = vmatmul.f32.gmra.mxu3 %v1927_v36  ;;  %2004 = vmatmul.f32.gmra.mxu0 %v1927_v36 }
 0x290   : > { %v4982_v8 = vpop.f32.mrf.mxu1 }
 0x298   : > { %v4984_v22 = vpop.f32.mrf.mxu1 }
 0x29e   : > { %v2002_v41 = vpop.f32.mrf.mxu0 }
 0x2a0   : > { %v4987_v24 = vpop.f32.mrf.mxu1 }
 0x2a4   : > { %v1963_v42 = vpop.f32.mrf.mxu3 }
 0x2a5   : > { %v4949_v46 = vmax.f32 %v1963_v42, %v2002_v41 }
 0x2a6   : > { %v2005_v43 = vpop.f32.mrf.mxu0 }
 0x2a8   : > { %v4990_v26 = vpop.f32.mrf.mxu1 }
 0x2ac   : > { %v1966_v45 = vpop.f32.mrf.mxu3 }
 0x2ad   : > { %v4951_v47 = vmax.f32 %v1966_v45, %v2005_v43  ;;  %v4043_v43 = vld [vmem:[%s5286_s10 + $0x18] sm:$0xff]  ;;  %v4042_v45 = vld [vmem:[%s5286_s10 + $0x10] sm:$0xff] }
 0x2ae   : > { %2283 = vmatpush.bf16.msrb.mxu3 %v4043_v43  ;;  %v2538_v43 = vld [vmem:[%s5293_s15 + $0x38] sm:$0xff]  ;;  %s5296_s15 = sld [smem:[#allocation21_spill]] }
 0x2af   : > { %v2010_v48 = vpack.c.bf16 %v4951_v47, %v4949_v46 }
 0x2b1   : > { %3721 = vmatmul.msk.bf16.vlgmr.msrb.gmra.mxu2 %vm1666_vm0, %v2010_v48  ;;  %v4041_v48 = vld [vmem:[%s5286_s10 + $0x8] sm:$0xff] }
 0x2b2   : > { %2284 = vmatpush.bf16.msrb.mxu3 %v4042_v45  ;;  %v2506_v45 = vld [vmem:[%s5292_s7 + $0x30] sm:$0xff] }
 0x2b4   : > { %s5297_s18 = smov %s5296_s15 }
 0x2b6   : > { %2285 = vmatpush.bf16.msrb.mxu3 %v4041_v48  ;;  %v2537_v48 = vld [vmem:[%s5294_s9 + $0x30] sm:$0xff] }
 0x2ba   : > { %2286 = vmatpush.bf16.msrb.mxu3 %v4040_v49  ;;  %v2505_v49 = vld [vmem:[%s5292_s7 + $0x28] sm:$0xff] }
 0x334   : > { %v2057_v56 = vpop.f32.mrf.mxu2 }
 0x335   : > { %v2058_v57 = vadd.f32 %v4197_v55, %v2057_v56 }
 0x337   : > { %v2062_v58 = vmax.f32 %v2058_v57, 0.0 }
 0x339   : > { %v2066_v60 = vmul.f32 %v4198_v59, %v2062_v58 }
 0x33b   : > { %v2070_v3 = vadd.f32 %v4199_v61, %v2066_v60 }
 0x33c   : > { %v2059_v62 = vpop.f32.mrf.mxu2 }
 0x33d   : > { %v2060_v0 = vadd.f32 %v4197_v55, %v2059_v62  ;;  %v2072_v7 = vrot.slane %v2070_v3, 7  ;;  %v2078_v10 = vrot.slane %v2070_v3, 1 }
 0x33f   : > { %v2063_v1 = vmax.f32 %v2060_v0, 0.0 }
 0x341   : > { %v2067_v4 = vmul.f32 %v4198_v59, %v2063_v1 }
 0x343   : > { %v2071_v5 = vadd.f32 %v4199_v61, %v2067_v4  ;;  %v4049_v4 = vld [vmem:[%s5287_s11 + $0x28] sm:$0xff] }
 0x344   : > { %2411 = vmatpush.bf16.msrb.mxu2 %v4049_v4 }
 0x345   : > { %v2073_v12 = vrot.slane %v2071_v5, 7  ;;  %v2079_v13 = vrot.slane %v2071_v5, 1  ;;  %v2089_v14 = vpack.c.bf16 %v2071_v5, %v2070_v3  ;;  %v4045_v3 = vld [vmem:[%s5287_s11 + $0x8] sm:$0xff]  ;;  %v4044_v5 = vld [vmem:[%s5287_s11] sm:$0xff] }
 0x346   : > { %2376 = vmatpush.bf16.msrb.mxu1 %v4045_v3 }
 0x347   : > { %v2075_v15 = vsel %vm1599_vm4, %v2073_v12, %v2072_v7  ;;  %v2081_v16 = vsel %vm1612_vm1, %v2079_v13, %v2078_v10  ;;  %3734 = vmatmul.msk.bf16.vlgmr.msra.gmra.mxu3 %vm1900_vm5, %v2089_v14  ;;  %v2074_v19 = vsel %vm1599_vm4, %v2072_v7, %v2073_v12  ;;  %v2080_v20 = vsel %vm1612_vm1, %v2078_v10, %v2079_v13  ;;  %v4048_v7 = vld [vmem:[%s5287_s11 + $0x20] sm:$0xff] }
 0x348   : > { %v2076_v17 = vmul.f32 %v4885_v18, %v2075_v15  ;;  %v2083_v11 = vmul.f32 %v4967_v6, %v2081_v16  ;;  %2412 = vmatpush.bf16.msrb.mxu2 %v4048_v7  ;;  %v4202_v10 = vld [vmem:[%s5289_s28] ss:$0 sm:$0xff]  ;;  %v4203_v15 = vld [vmem:[%s5289_s28 + $0x1] ss:$0 sm:$0xff] }
 0x34a   : > { %v2084_v9 = vpack.c.bf16 %v2074_v19, %v2076_v17  ;;  %v2153_v21 = vpack.c.bf16 %v2083_v11, %v2080_v20  ;;  %2377 = vmatpush.bf16.msrb.mxu1 %v4044_v5  ;;  %v4204_v17 = vld [vmem:[%s5289_s28 + $0x2] ss:$0 sm:$0xff]  ;;  %v4205_v5 = vld [vmem:[%s5289_s28 + $0x3] ss:$0 sm:$0xff] }
 0x34c   : > { %3743 = vmatmul.msk.bf16.vlgmr.msra.gmra.mxu0 %vm1900_vm5, %v2084_v9  ;;  %3756 = vmatmul.msk.bf16.vlgmr.msra.gmra.mxu1 %vm1900_vm5, %v2153_v21 }
 0x3c9   : > { %v2148_v27 = vpop.f32.mrf.mxu0  ;;  %v2183_v28 = vpop.f32.mrf.mxu1 }
 0x3ca   : > { %v2119_v29 = vpop.f32.mrf.mxu3 }
 0x3cb   : > { %v2149_v30 = vadd.f32 %v2148_v27, %v2119_v29 }
 0x3cd   : > { %v2188_v31 = vadd.f32 %v2183_v28, %v2149_v30 }
 0x3cf   : > { %v2192_v37 = vadd.f32 %v4200_v32, %v2188_v31 }
 0x3d1   : > { %v2150_v33 = vpop.f32.mrf.mxu0  ;;  %v2185_v36 = vpop.f32.mrf.mxu1  ;;  %v2194_v40 = vmax.f32 %v2192_v37, 0.0 }
 0x3d2   : > { %v2121_v34 = vpop.f32.mrf.mxu3 }
 0x3d3   : > { %v2151_v35 = vadd.f32 %v2150_v33, %v2121_v34 }
 0x3d5   : > { %v2189_v38 = vadd.f32 %v2185_v36, %v2151_v35 }
 0x3d7   : > { %v2193_v39 = vadd.f32 %v4200_v32, %v2189_v38 }
 0x3d9   : > { %v2195_v41 = vmax.f32 %v2193_v39, 0.0  ;;  %v2475_v39 = vld [vmem:[%s5290_s16] sm:$0xff]  ;;  %s5295_s16 = sld [smem:[#allocation20_spill]] }
 0x3db   : > { %v2196_v42 = vpack.c.bf16 %v2195_v41, %v2194_v40  ;;  %v4051_v40 = vld [vmem:[%s5291_s2 + $0x8] sm:$0xff]  ;;  %v4050_v41 = vld [vmem:[%s5291_s2] sm:$0xff]  ;;  %s5298_s2 = sld [smem:[#allocation18_spill]] }
 0x3dc   : > { %2457 = vmatpush.bf16.msra.mxu3 %v4051_v40  ;;  %v5077_v40 = vsel %vm2238_vm8, 1.0, %v4452_v2  ;;  %v4057_v2 = vld [vmem:[%s5299_s3] sm:$0xff]  ;;  %s5304_s3 = sld [smem:[#allocation23_spill]] }
 0x3dd   : > { %3765 = vmatmul.msk.bf16.vlgmr.msra.gmra.mxu2 %vm1900_vm5, %v2196_v42  ;;  %v2507_v42 = vld [vmem:[%s5292_s7 + $0x38] sm:$0xff] }
 0x3de   : > { %2519 = vmatpush.msra.mxu1 %v2507_v42 }
 0x3e0   : > { %2458 = vmatpush.bf16.msra.mxu3 %v4050_v41  ;;  %2520 = vmatpush.msra.mxu1 %v2506_v45 }
 0x3e2   : > { %2521 = vmatpush.msra.mxu1 %v2505_v49 }
 0x460   : > { %v2229_v53 = vpop.f32.mrf.mxu2 }
 0x461   : > { %v2230_v54 = vadd.f32 %v4201_v52, %v2229_v53  ;;  %v2535_v53 = vld [vmem:[%s5294_s9 + $0x20] sm:$0xff] }
 0x463   : > { %v2234_v55 = vmax.f32 %v2230_v54, 0.0  ;;  %v2503_v54 = vld [vmem:[%s5292_s7 + $0x18] sm:$0xff] }
 0x465   : > { %v5002_v58 = vadd.f32 %v2234_v55, %v4949_v46  ;;  %v2534_v55 = vld [vmem:[%s5294_s9 + $0x18] sm:$0xff] }
 0x467   : > { %v2469_v61 = vrot.slane %v5002_v58, 1 }
 0x468   : > { %v2231_v56 = vpop.f32.mrf.mxu2 }
 0x469   : > { %v2232_v57 = vadd.f32 %v4201_v52, %v2231_v56  ;;  %v2504_v52 = vld [vmem:[%s5292_s7 + $0x20] sm:$0xff]  ;;  %v2502_v56 = vld [vmem:[%s5292_s7 + $0x10] sm:$0xff] }
 0x46a   : > { %2522 = vmatpush.msra.mxu1 %v2504_v52 }
 0x46b   : > { %v2235_v59 = vmax.f32 %v2232_v57, 0.0  ;;  %v2533_v57 = vld [vmem:[%s5294_s9 + $0x10] sm:$0xff] }
 0x46c   : > { %2523 = vmatpush.msra.mxu1 %v2503_v54 }
 0x46d   : > { %v5005_v60 = vadd.f32 %v2235_v59, %v4951_v47 }
 0x46e   : > { %2524 = vmatpush.msra.mxu1 %v2502_v56  ;;  %v4210_v56 = vld [vmem:[%s5298_s2 + $0x3] ss:$0 sm:$0xff] }
 0x46f   : > { %v2241_v62 = vpack.c.bf16 %v5005_v60, %v5002_v58  ;;  %v2470_v63 = vrot.slane %v5005_v60, 1 }
 0x471   : > { %3783 = vmatmul.msk.bf16.vlgmr.msrb.gmra.mxu3 %vm1666_vm0, %v2241_v62  ;;  %v2472_v46 = vsel %vm1612_vm1, %v2470_v63, %v2469_v61  ;;  %v2471_v0 = vsel %vm1612_vm1, %v2469_v61, %v2470_v63  ;;  %v2501_v61 = vld [vmem:[%s5292_s7 + $0x8] sm:$0xff] }
 0x472   : > { %v2474_v47 = vmax.f32 %v5005_v60, %v2472_v46  ;;  %v2473_v1 = vmax.f32 %v5002_v58, %v2471_v0  ;;  %2547 = vmatpush.msrb.mxu3 %v2538_v43  ;;  %v2532_v62 = vld [vmem:[%s5294_s9 + $0x8] sm:$0xff]  ;;  %v2500_v46 = vld [vmem:[%s5292_s7] sm:$0xff]  ;;  %2525 = vmatpush.msra.mxu1 %v2501_v61  ;;  %s5303_s7 = sld [smem:[#allocation25_spill]] }
 0x473   : > { %v2531_v0 = vld [vmem:[%s5294_s9] sm:$0xff] }
 0x474   : > { %2494 = vmatpush.msra.mxu0 %v2474_v47  ;;  %2548 = vmatpush.msrb.mxu3 %v2537_v48 }
 0x475   : > { %2526 = vmatpush.msra.mxu1 %v2500_v46 }
 0x476   : > { %2495 = vmatpush.msra.mxu0 %v2473_v1  ;;  %2549 = vmatpush.msrb.mxu3 %v2536_v50 }
 0x478   : > { %2550 = vmatpush.msrb.mxu3 %v2535_v53 }
 0x47a   : > { %2551 = vmatpush.msrb.mxu3 %v2534_v55 }
 0x47c   : > { %2552 = vmatpush.msrb.mxu3 %v2533_v57 }
 0x47e   : > { %2553 = vmatpush.msrb.mxu3 %v2532_v62 }
 0x480   : > { %2554 = vmatpush.msrb.mxu3 %v2531_v0 }
 0x4f4   : > { %v2288_v12 = vpop.f32.mrf.mxu3 }
 0x4f5   : > { %v2289_v13 = vadd.f32 %v4202_v10, %v2288_v12 }
 0x4f7   : > { %v2293_v14 = vmax.f32 %v2289_v13, 0.0 }
 0x4f9   : > { %v2297_v16 = vmul.f32 %v4203_v15, %v2293_v14 }
 0x4fb   : > { %v2301_v9 = vadd.f32 %v4204_v17, %v2297_v16 }
 0x4fc   : > { %v2290_v11 = vpop.f32.mrf.mxu3 }
 0x4fd   : > { %v2291_v19 = vadd.f32 %v4202_v10, %v2290_v11  ;;  %v2303_v25 = vrot.slane %v2301_v9, 7  ;;  %v2309_v27 = vrot.slane %v2301_v9, 1 }
 0x4ff   : > { %v2294_v20 = vmax.f32 %v2291_v19, 0.0  ;;  %v4053_v19 = vld [vmem:[%s5295_s16 + $0x8] sm:$0xff] }
 0x501   : > { %v2298_v21 = vmul.f32 %v4203_v15, %v2294_v20  ;;  %v4052_v20 = vld [vmem:[%s5295_s16] sm:$0xff] }
 0x503   : > { %v2302_v23 = vadd.f32 %v4204_v17, %v2298_v21 }
 0x505   : > { %v2304_v28 = vrot.slane %v2302_v23, 7  ;;  %v2310_v29 = vrot.slane %v2302_v23, 1  ;;  %v2320_v30 = vpack.c.bf16 %v2302_v23, %v2301_v9 }
 0x507   : > { %v2306_v31 = vsel %vm1599_vm4, %v2304_v28, %v2303_v25  ;;  %v2312_v32 = vsel %vm1612_vm1, %v2310_v29, %v2309_v27  ;;  %3796 = vmatmul.msk.bf16.vlgmr.msrb.gmra.mxu0 %vm1900_vm5, %v2320_v30  ;;  %v2305_v35 = vsel %vm1599_vm4, %v2303_v25, %v2304_v28  ;;  %v2311_v36 = vsel %vm1612_vm1, %v2309_v27, %v2310_v29  ;;  %v4055_v29 = vld [vmem:[%s5296_s15 + $0x8] sm:$0xff]  ;;  %v4054_v30 = vld [vmem:[%s5297_s18] sm:$0xff]  ;;  %s5300_s15 = sld [smem:[#allocation24_spill]] }
 0x508   : > { %v2307_v33 = vmul.f32 %v4885_v18, %v2306_v31  ;;  %v2314_v34 = vmul.f32 %v4967_v6, %v2312_v32  ;;  %2629 = vmatpush.bf16.msrb.mxu0 %v4055_v29  ;;  %v4056_v31 = vld [vmem:[%s5297_s18 + $0x10] sm:$0xff]  ;;  %v4207_v32 = vld [vmem:[%s5298_s2] ss:$0 sm:$0xff] }
 0x509   : > { %2677 = vmatpush.bf16.msra.mxu2 %v4056_v31 }
 0x50a   : > { %v2315_v37 = vpack.c.bf16 %v2305_v35, %v2307_v33  ;;  %v2384_v38 = vpack.c.bf16 %v2314_v34, %v2311_v36  ;;  %v4208_v35 = vld [vmem:[%s5298_s2 + $0x1] ss:$0 sm:$0xff] }
 0x50c   : > { %3805 = vmatmul.msk.bf16.vlgmr.msrb.gmra.mxu1 %vm1900_vm5, %v2315_v37  ;;  %3818 = vmatmul.msk.bf16.vlgmr.msrb.gmra.mxu2 %vm1900_vm5, %v2384_v38  ;;  %v4209_v37 = vld [vmem:[%s5298_s2 + $0x2] ss:$0 sm:$0xff] }
 0x50d   : > { %2651 = vmatpush.bf16.msrb.mxu1 %v4054_v30  ;;  %s5301_s4 = smov %s5300_s15 }
 0x517   : > { %3828 = vmatmul.msk.f32.vlgmr.msra.gmra.mxu0 %vm2476_vm7, %v2475_v39 }
 0x584   : > { %v2350_v51 = vpop.f32.mrf.mxu0 }
 0x589   : > { %v2379_v59 = vpop.f32.mrf.mxu1 }
 0x58a   : > { %v2380_v1 = vadd.f32 %v2379_v59, %v2350_v51 }
 0x58c   : > { %v2352_v63 = vpop.f32.mrf.mxu0 }
 0x58f   : > { %v2414_v47 = vpop.f32.mrf.mxu2 }
 0x590   : > { %v2419_v4 = vadd.f32 %v2414_v47, %v2380_v1  ;;  %v4059_v47 = vld [vmem:[%s5300_s15 + $0x8] sm:$0xff]  ;;  %v4058_v1 = vld [vmem:[%s5301_s4] sm:$0xff]  ;;  %s5306_s15 = sld [smem:[#allocation35_spill]] }
 0x591   : > { %v2381_v3 = vpop.f32.mrf.mxu1  ;;  %2747 = vmatpush.bf16.msra.mxu0 %v4059_v47  ;;  %s5308_s4 = sld [smem:[#allocation36_spill]] }
 0x592   : > { %v2382_v10 = vadd.f32 %v2381_v3, %v2352_v63  ;;  %v2423_v13 = vadd.f32 %v4205_v5, %v2419_v4  ;;  %v4211_v3 = vld [vmem:[%s5302_s5] ss:$0 sm:$0xff]  ;;  %s5305_s5 = sld [smem:[#allocation26_spill]] }
 0x594   : > { %v2497_v7 = vpop.f32.mrf.mxu0  ;;  %v2425_v16 = vmax.f32 %v2423_v13, 0.0 }
 0x595   : > { %3829 = vmatmul.msk.f32.vlgmr.msra.gmra.mxu1 %vm1666_vm0, %v2497_v7  ;;  %2748 = vmatpush.bf16.msra.mxu0 %v4058_v1 }
 0x596   : > { %s5307_s2 = smov %s5306_s15 }
 0x597   : > { %v2416_v12 = vpop.f32.mrf.mxu2  ;;  %v4068_v47 = vld [vmem:[%s5308_s4 + $0x10] sm:$0xff] }
 0x598   : > { %v2420_v14 = vadd.f32 %v2416_v12, %v2382_v10 }
 0x59a   : > { %v2424_v15 = vadd.f32 %v4205_v5, %v2420_v14  ;;  %v4061_v14 = vld [vmem:[%s5303_s7 + $0x8] sm:$0xff] }
 0x59b   : > { %2788 = vmatpush.bf16.msra.mxu1 %v4061_v14 }
 0x59c   : > { %v2426_v17 = vmax.f32 %v2424_v15, 0.0  ;;  %v4060_v15 = vld [vmem:[%s5303_s7] sm:$0xff] }
 0x59d   : > { %2810 = vmatpush.bf16.msrb.mxu2 %v4060_v15 }
 0x59e   : > { %v2427_v11 = vpack.c.bf16 %v2426_v17, %v2425_v16  ;;  %v4062_v16 = vld [vmem:[%s5303_s7 + $0x10] sm:$0xff]  ;;  %v4212_v17 = vld [vmem:[%s5304_s3] ss:$0 sm:$0xff] }
 0x5a0   : > { %3827 = vmatmul.msk.bf16.vlgmr.msra.gmra.mxu3 %vm1900_vm5, %v2427_v11 }
 0x5a1   : > { %2588 = vmatpush.bf16.msra.mxu3 %v4053_v19 }
 0x5a5   : > { %2589 = vmatpush.bf16.msra.mxu3 %v4052_v20  ;;  %v4213_v20 = vld [vmem:[%s5304_s3 + $0x1] ss:$0 sm:$0xff] }
 0x5b0   : > { %3830 = vmatmul.msk.f32.vlgmr.msrb.gmra.mxu3 %vm1666_vm0, %v2497_v7 }
 0x5b1   : > { %2711 = vmatpush.bf16.msrb.mxu3 %v4057_v2 }
 0x612   : > { %v2528_v23 = vpop.f32.mrf.mxu1 }
 0x623   : > { %v5064_v9 = vpop.f32.mrf.mxu3 }
 0x62b   : > { %v5066_v21 = vpop.f32.mrf.mxu3 }
 0x633   : > { %v2556_v25 = vpop.f32.mrf.mxu3 }
 0x634   : > { %v2559_v27 = vmax.f32 %v2528_v23, %v2556_v25  ;;  %v4214_v25 = vld [vmem:[%s5304_s3 + $0x2] ss:$0 sm:$0xff] }
 0x636   : > { %v2560_v28 = vpack.c.bf16 %v2559_v27, %v2559_v27 }
 0x638   : > { %3839 = vmatmul.msk.bf16.vlgmr.msra.gmra.mxu3 %vm1900_vm5, %v2560_v28 }
 0x639   : > { %2836 = vmatpush.bf16.msra.mxu3 %v4062_v16 }
 0x6bb   : > { %v2591_v33 = vpop.f32.mrf.mxu3 }
 0x6bc   : > { %v2592_v34 = vadd.f32 %v4207_v32, %v2591_v33 }
 0x6be   : > { %v2595_v36 = vmax.f32 %v2592_v34, 0.0 }
 0x6c0   : > { %v2598_v38 = vmul.f32 %v4208_v35, %v2595_v36 }
 0x6c2   : > { %v2601_v39 = vadd.f32 %v4209_v37, %v2598_v38  ;;  %v4063_v37 = vld [vmem:[%s5305_s5] sm:$0xff]  ;;  %s5309_s5 = sld [smem:[#allocation34_spill]] }
 0x6c3   : > { %v2593_v41 = vpop.f32.mrf.mxu3 }
 0x6c4   : > { %v2602_v42 = vrot.slane %v2601_v39, 7  ;;  %v2604_v43 = vrot.slane %v2601_v39, 1  ;;  %v2609_v45 = vpack.c.bf16 %v2601_v39, %v2601_v39 }
 0x6c6   : > { %v2603_v48 = vmul.f32 %v4885_v18, %v2602_v42  ;;  %v2605_v49 = vmul.f32 %v5077_v40, %v2604_v43  ;;  %3846 = vmatmul.msk.bf16.vlgmr.msrb.gmra.mxu0 %vm2476_vm7, %v2609_v45  ;;  %v4215_v45 = vld [vmem:[%s5304_s3 + $0x3] ss:$0 sm:$0xff]  ;;  %s5312_s3 = sld [smem:[#allocation43_spill]] }
 0x6c7   : > { %2870 = vmatpush.bf16.msrb.mxu0 %v4063_v37 }
 0x6c8   : > { %v2606_v50 = vpack.c.bf16 %v2603_v48, %v2603_v48  ;;  %v2657_v51 = vpack.c.bf16 %v2605_v49, %v2605_v49  ;;  %v4217_v1 = vld [vmem:[%s5309_s5] ss:$0 sm:$0xff] }
 0x6ca   : > { %3851 = vmatmul.msk.bf16.vlgmr.msrb.gmra.mxu1 %vm2476_vm7, %v2606_v50  ;;  %3858 = vmatmul.msk.bf16.vlgmr.msra.gmra.mxu2 %vm2476_vm7, %v2657_v51 }
 0x743   : > { %v2631_v52 = vpop.f32.mrf.mxu0 }
 0x747   : > { %v2653_v53 = vpop.f32.mrf.mxu1 }
 0x748   : > { %v2654_v55 = vadd.f32 %v2653_v53, %v2631_v52  ;;  %v4065_v53 = vld [vmem:[%s5306_s15 + $0x8] sm:$0xff]  ;;  %s5310_s15 = sld [smem:[#allocation37_spill]] }
 0x749   : > { %2906 = vmatpush.bf16.msrb.mxu1 %v4065_v53 }
 0x74b   : > { %v2633_v54 = vpop.f32.mrf.mxu0 }
 0x74c   : > { %v4064_v54 = vld [vmem:[%s5307_s2] sm:$0xff]  ;;  %s5311_s2 = sld [smem:[#allocation38_spill]] }
 0x74d   : > { %v2679_v57 = vpop.f32.mrf.mxu2  ;;  %2907 = vmatpush.bf16.msrb.mxu1 %v4064_v54 }
 0x74e   : > { %v2683_v59 = vadd.f32 %v2679_v57, %v2654_v55  ;;  %v4216_v55 = vld [vmem:[#allocation2] ss:$0 sm:$0xff] }
 0x74f   : > { %v2655_v61 = vpop.f32.mrf.mxu1 }
 0x750   : > { %v2686_v62 = vadd.f32 %v4210_v56, %v2683_v59 }
 0x752   : > { %v2687_v63 = vmax.f32 %v2686_v62, 0.0 }
 0x754   : > { %v2688_v46 = vpack.c.bf16 %v2687_v63, %v2687_v63 }
 0x755   : > { %v2681_v0 = vpop.f32.mrf.mxu2 }
 0x756   : > { %3863 = vmatmul.msk.bf16.vlgmr.msrb.gmra.mxu3 %vm2476_vm7, %v2688_v46  ;;  %v4067_v46 = vld [vmem:[%s5308_s4 + $0x8] sm:$0xff]  ;;  %v4066_v0 = vld [vmem:[%s5308_s4] sm:$0xff] }
 0x757   : > { %2947 = vmatpush.bf16.msra.mxu2 %v4067_v46  ;;  %2969 = vmatpush.bf16.msrb.mxu3 %v4066_v0 }
 0x7d9   : > { %v2713_v4 = vpop.f32.mrf.mxu3 }
 0x7da   : > { %v2714_v5 = vadd.f32 %v4211_v3, %v2713_v4 }
 0x7dc   : > { %v2717_v7 = vmax.f32 %v2714_v5, 0.0  ;;  %v4218_v5 = vld [vmem:[%s5309_s5 + $0x1] ss:$0 sm:$0xff] }
 0x7de   : > { %v2718_v10 = vadd.f32 %v2717_v7, %v2559_v27 }
 0x7e0   : > { %v2719_v12 = vpack.c.bf16 %v2718_v10, %v2718_v10 }
 0x7e1   : > { %v2715_v13 = vpop.f32.mrf.mxu3 }
 0x7e2   : > { %3872 = vmatmul.msk.bf16.vlgmr.msra.gmra.mxu0 %vm1900_vm5, %v2719_v12  ;;  %v4219_v12 = vld [vmem:[%s5309_s5 + $0x2] ss:$0 sm:$0xff] }
 0x7e3   : > { %2995 = vmatpush.bf16.msra.mxu0 %v4068_v47 }
 0x85f   : > { %v2750_v11 = vpop.f32.mrf.mxu0 }
 0x860   : > { %v2751_v19 = vadd.f32 %v4212_v17, %v2750_v11 }
 0x862   : > { %v2754_v23 = vmax.f32 %v2751_v19, 0.0 }
 0x864   : > { %v2757_v28 = vmul.f32 %v4213_v20, %v2754_v23 }
 0x866   : > { %v2760_v29 = vadd.f32 %v4214_v25, %v2757_v28  ;;  %v4069_v25 = vld [vmem:[%s5310_s15] sm:$0xff]  ;;  %s5313_s15 = sld [smem:[#allocation39_spill]] }
 0x867   : > { %v2752_v27 = vpop.f32.mrf.mxu0 }
 0x868   : > { %v2761_v30 = vrot.slane %v2760_v29, 7  ;;  %v2763_v31 = vrot.slane %v2760_v29, 1  ;;  %v2768_v32 = vpack.c.bf16 %v2760_v29, %v2760_v29 }
 0x86a   : > { %v2762_v33 = vmul.f32 %v4885_v18, %v2761_v30  ;;  %v2764_v34 = vmul.f32 %v5077_v40, %v2763_v31  ;;  %3879 = vmatmul.msk.bf16.vlgmr.msra.gmra.mxu1 %vm2476_vm7, %v2768_v32  ;;  %v4220_v31 = vld [vmem:[%s5309_s5 + $0x3] ss:$0 sm:$0xff] }
 0x86b   : > { %3029 = vmatpush.bf16.msra.mxu1 %v4069_v25 }
 0x86c   : > { %v2765_v35 = vpack.c.bf16 %v2762_v33, %v2762_v33  ;;  %v2816_v36 = vpack.c.bf16 %v2764_v34, %v2764_v34  ;;  %s5314_s4 = smov %s5313_s15 }
 0x86d   : > { %v3065_v54 = vld [vmem:[%s5314_s4 + $0x8] sm:$0xff] }
 0x86e   : > { %3884 = vmatmul.msk.bf16.vlgmr.msrb.gmra.mxu2 %vm2476_vm7, %v2765_v35  ;;  %3891 = vmatmul.msk.bf16.vlgmr.msra.gmra.mxu3 %vm2476_vm7, %v2816_v36 }
 0x8e7   : > { %v2790_v38 = vpop.f32.mrf.mxu1 }
 0x8ef   : > { %v2792_v39 = vpop.f32.mrf.mxu1 }
 0x8f0   : > { %v3039_v39 = vld [vmem:[%s5311_s2 + $0x10] sm:$0xff] }
 0x8f1   : > { %v2812_v41 = vpop.f32.mrf.mxu2  ;;  %v2838_v42 = vpop.f32.mrf.mxu3 }
 0x8f2   : > { %v2813_v43 = vadd.f32 %v2812_v41, %v2790_v38  ;;  %v3040_v38 = vld [vmem:[%s5311_s2 + $0x18] sm:$0xff]  ;;  %v3038_v41 = vld [vmem:[%s5311_s2 + $0x8] sm:$0xff] }
 0x8f3   : > { %3056 = vmatpush.msrb.mxu2 %v3040_v38 }
 0x8f4   : > { %v2842_v48 = vadd.f32 %v2838_v42, %v2813_v43  ;;  %v3037_v42 = vld [vmem:[%s5311_s2] sm:$0xff]  ;;  %s5315_s2 = sld [smem:[#allocation44_spill]] }
 0x8f5   : > { %3057 = vmatpush.msrb.mxu2 %v3039_v39  ;;  %v4221_v43 = vld [vmem:[#allocation6] ss:$0 sm:$0xff] }
 0x8f6   : > { %v2845_v49 = vadd.f32 %v4215_v45, %v2842_v48 }
 0x8f7   : > { %3058 = vmatpush.msrb.mxu2 %v3038_v41 }
 0x8f8   : > { %v2846_v50 = vmax.f32 %v2845_v49, 0.0 }
 0x8f9   : > { %v2814_v51 = vpop.f32.mrf.mxu2  ;;  %v2840_v2 = vpop.f32.mrf.mxu3  ;;  %3059 = vmatpush.msrb.mxu2 %v3037_v42 }
 0x8fa   : > { %v2847_v52 = vpack.c.bf16 %v2846_v50, %v2846_v50  ;;  %v4073_v2 = vld [vmem:[%s5312_s3 + $0x18] sm:$0xff] }
 0x8fb   : > { %3138 = vmatpush.bf16.msra.mxu3 %v4073_v2 }
 0x8fc   : > { %3896 = vmatmul.msk.bf16.vlgmr.msrb.gmra.mxu0 %vm2476_vm7, %v2847_v52  ;;  %v3064_v52 = vld [vmem:[%s5313_s15] sm:$0xff]  ;;  %s5316_s15 = sld [smem:[#allocation41_spill]] }
 0x979   : > { %v2872_v56 = vpop.f32.mrf.mxu0 }
 0x97a   : > { %v2873_v57 = vadd.f32 %v4216_v55, %v2872_v56  ;;  %v4072_v55 = vld [vmem:[%s5312_s3 + $0x10] sm:$0xff]  ;;  %v4071_v56 = vld [vmem:[%s5312_s3 + $0x8] sm:$0xff] }
 0x97b   : > { %3139 = vmatpush.bf16.msra.mxu3 %v4072_v55 }
 0x97c   : > { %v2876_v59 = vmax.f32 %v2873_v57, 0.0  ;;  %v4070_v57 = vld [vmem:[%s5312_s3] sm:$0xff]  ;;  %s5317_s3 = smov %s5316_s15 }
 0x97e   : > { %v2877_v61 = vadd.f32 %v2876_v59, %v2718_v10  ;;  %v4206_v59 = vld [vmem:[#allocation4] ss:$0 sm:$0xff] }
 0x97f   : > { %3140 = vmatpush.bf16.msra.mxu3 %v4071_v56 }
 0x980   : > { %v2878_v62 = vpack.c.bf16 %v2877_v61, %v2877_v61 }
 0x981   : > { %v2874_v63 = vpop.f32.mrf.mxu0 }
 0x982   : > { %3905 = vmatmul.msk.bf16.vlgmr.msrb.gmra.mxu1 %vm1900_vm5, %v2878_v62  ;;  %v2463_v62 = vadd.f32 %v4206_v59, %v5066_v21  ;;  %v4077_v21 = vld [vmem:[%s5315_s2 + $0x18] sm:$0xff] }
 0x983   : > { %3141 = vmatpush.bf16.msra.mxu3 %v4070_v57  ;;  %3202 = vmatpush.bf16.msrb.mxu0 %v4077_v21  ;;  %v4226_v21 = vld [vmem:[#allocation9] ss:$0 sm:$0xff] }
 0x984   : > { %v2466_v0 = vmax.f32 %v2463_v62, 0.0 }
 0x9ff   : > { %v2909_v3 = vpop.f32.mrf.mxu1 }
 0xa00   : > { %v2910_v4 = vadd.f32 %v4217_v1, %v2909_v3  ;;  %v2468_v1 = vadd.f32 %v2466_v0, %v5005_v60  ;;  %v4074_v60 = vld [vmem:[%s5315_s2] sm:$0xff] }
 0xa02   : > { %v2913_v7 = vmax.f32 %v2910_v4, 0.0 }
 0xa04   : > { %v2916_v13 = vmul.f32 %v4218_v5, %v2913_v7  ;;  %v4076_v7 = vld [vmem:[%s5315_s2 + $0x10] sm:$0xff] }
 0xa05   : > { %3203 = vmatpush.bf16.msrb.mxu0 %v4076_v7 }
 0xa06   : > { %v2919_v14 = vadd.f32 %v4219_v12, %v2916_v13  ;;  %v4079_v12 = vld [vmem:[%s5315_s2 + $0x28] sm:$0xff]  ;;  %v4078_v13 = vld [vmem:[%s5315_s2 + $0x20] sm:$0xff] }
 0xa07   : > { %v2911_v10 = vpop.f32.mrf.mxu1 }
 0xa08   : > { %v2920_v15 = vrot.slane %v2919_v14, 7  ;;  %v2922_v16 = vrot.slane %v2919_v14, 1  ;;  %v2927_v17 = vpack.c.bf16 %v2919_v14, %v2919_v14  ;;  %v4222_v14 = vld [vmem:[%s5316_s15] ss:$0 sm:$0xff]  ;;  %s5318_s15 = sld [smem:[#allocation45_spill]] }
 0xa0a   : > { %v2921_v11 = vmul.f32 %v4885_v18, %v2920_v15  ;;  %v2923_v19 = vmul.f32 %v5077_v40, %v2922_v16  ;;  %3912 = vmatmul.msk.bf16.vlgmr.msra.gmra.mxu2 %vm2476_vm7, %v2927_v17  ;;  %v4223_v17 = vld [vmem:[%s5317_s3 + $0x1] ss:$0 sm:$0xff] }
 0xa0c   : > { %v2924_v20 = vpack.c.bf16 %v2921_v11, %v2921_v11  ;;  %v2975_v23 = vpack.c.bf16 %v2923_v19, %v2923_v19  ;;  %v4224_v19 = vld [vmem:[%s5317_s3 + $0x2] ss:$0 sm:$0xff] }
 0xa0e   : > { %3917 = vmatmul.msk.bf16.vlgmr.msrb.gmra.mxu3 %vm2476_vm7, %v2924_v20  ;;  %3924 = vmatmul.msk.bf16.vlgmr.msra.gmra.mxu0 %vm2476_vm7, %v2975_v23 }
 0xa8b   : > { %v2997_v28 = vpop.f32.mrf.mxu0 }
 0xa8d   : > { %v2949_v29 = vpop.f32.mrf.mxu2 }
 0xa91   : > { %v2971_v27 = vpop.f32.mrf.mxu3 }
 0xa92   : > { %v2972_v30 = vadd.f32 %v2971_v27, %v2949_v29 }
 0xa93   : > { %v2999_v40 = vpop.f32.mrf.mxu0 }
 0xa94   : > { %v3001_v32 = vadd.f32 %v2997_v28, %v2972_v30 }
 0xa95   : > { %v2951_v33 = vpop.f32.mrf.mxu2 }
 0xa96   : > { %v3004_v34 = vadd.f32 %v4220_v31, %v3001_v32 }
 0xa98   : > { %v3005_v35 = vmax.f32 %v3004_v34, 0.0 }
 0xa99   : > { %v2973_v36 = vpop.f32.mrf.mxu3 }
 0xa9a   : > { %v3006_v37 = vpack.c.bf16 %v3005_v35, %v3005_v35 }
 0xa9c   : > { %3929 = vmatmul.msk.bf16.vlgmr.msra.gmra.mxu1 %vm2476_vm7, %v3006_v37 }
 0xb19   : > { %v3031_v45 = vpop.f32.mrf.mxu1 }
 0xb1a   : > { %v3032_v48 = vadd.f32 %v4221_v43, %v3031_v45  ;;  %v4081_v43 = vld [vmem:[%s4676_s6 + $0x8] sm:$0xff]  ;;  %v4080_v45 = vld [vmem:[%s4676_s6] sm:$0xff] }
 0xb1b   : > { %3312 = vmatpush.bf16.msrb.mxu3 %v4081_v43  ;;  %v4230_v43 = vld [vmem:[%s4809_s1 + $0x18] sm:$0xff] }
 0xb1c   : > { %v3035_v49 = vmax.f32 %v3032_v48, 0.0  ;;  %v3329_v48 = vld [vmem:[%s4681_s21 + $0x28] sm:$0xff] }
 0xb1e   : > { %v3036_v50 = vadd.f32 %v3035_v49, %v2877_v61  ;;  %v2461_v61 = vadd.f32 %v4206_v59, %v5064_v9  ;;  %v3328_v49 = vld [vmem:[%s4681_s21 + $0x20] sm:$0xff] }
 0xb1f   : > { %3313 = vmatpush.bf16.msrb.mxu3 %v4080_v45 }
 0xb20   : > { %3930 = vmatmul.msk.f32.vlgmr.msrb.gmra.mxu2 %vm1900_vm5, %v3036_v50  ;;  %v2465_v46 = vmax.f32 %v2461_v61, 0.0 }
 0xb21   : > { %v3033_v51 = vpop.f32.mrf.mxu1 }
 0xb22   : > { %v2467_v47 = vadd.f32 %v2465_v46, %v5002_v58  ;;  %v4075_v58 = vld [vmem:[%s5315_s2 + $0x8] sm:$0xff]  ;;  %s5319_s2 = sshll.u32 %s5322_s0, 5 }
 0xb23   : > { %3231 = vmatpush.bf16.msrb.mxu1 %v4075_v58 }
 0xb27   : > { %3232 = vmatpush.bf16.msrb.mxu1 %v4074_v60 }
 0xba3   : > { %v3061_v53 = vpop.f32.mrf.mxu2 }
 0xba4   : > { %3088 = vmatpush.msra.mxu2 %v3061_v53 }
 0xba5   : > { %3931 = vmatmul.msk.f32.vlgmr.msra.gmra.mxu2 %vm3066_vm9, %v3064_v52 }
 0xba6   : > { %3266 = vmatpush.bf16.msrb.mxu2 %v4079_v12 }
 0xbaa   : > { %3267 = vmatpush.bf16.msrb.mxu2 %v4078_v13 }
 0xbad   : > { %3932 = vmatmul.msk.f32.gmra.mxu2 %vm3066_vm9, %v3065_v54  ;;  %v4225_v54 = vld [vmem:[%s5317_s3 + $0x3] ss:$0 sm:$0xff]  ;;  %s1451_s3 = scalar_lea.vmem %s5318_s15, %s5319_s2 }
 0xc28   : > { %v3090_v63 = vpop.f32.mrf.mxu2 }
 0xc29   : > { %v5137_v4 = vadd.f32 %v3090_v63, %v2467_v47  ;;  %v3327_v47 = vld [vmem:[%s4681_s21 + $0x18] sm:$0xff] }
 0xc30   : > { %v3093_v3 = vpop.f32.mrf.mxu2 }
 0xc31   : > { %v5139_v5 = vadd.f32 %v3093_v3, %v2468_v1  ;;  %v3326_v1 = vld [vmem:[%s4681_s21 + $0x10] sm:$0xff]  ;;  %v3325_v3 = vld [vmem:[%s4681_s21 + $0x8] sm:$0xff] }
 0xc33   : > { %v3096_v9 = vpack.c.bf16 %v5139_v5, %v5137_v4 }
 0xc35   : > { %3949 = vmatmul.msk.bf16.vlgmr.msra.gmra.mxu3 %vm1666_vm0, %v3096_v9  ;;  %v3324_v9 = vld [vmem:[%s4681_s21] sm:$0xff] }
 0xcb8   : > { %v3143_v10 = vpop.f32.mrf.mxu3 }
 0xcb9   : > { %v3144_v15 = vadd.f32 %v4222_v14, %v3143_v10 }
 0xcbb   : > { %v3148_v16 = vmax.f32 %v3144_v15, 0.0 }
 0xcbd   : > { %v3152_v11 = vmul.f32 %v4223_v17, %v3148_v16 }
 0xcbf   : > { %v3156_v28 = vadd.f32 %v4224_v19, %v3152_v11  ;;  %v3361_v11 = vld [vmem:[%s4686_s25] sm:$0xff] }
 0xcc0   : > { %v3145_v20 = vpop.f32.mrf.mxu3 }
 0xcc1   : > { %v3146_v23 = vadd.f32 %v4222_v14, %v3145_v20  ;;  %v3158_v30 = vrot.slane %v3156_v28, 7  ;;  %v3164_v31 = vrot.slane %v3156_v28, 1  ;;  %v4196_v20 = vld [vmem:[#allocation7] ss:$0 sm:$0xff] }
 0xcc3   : > { %v3149_v25 = vmax.f32 %v3146_v23, 0.0  ;;  %v1869_v23 = vadd.f32 %v4196_v20, %v4982_v8 }
 0xcc5   : > { %v3153_v29 = vmul.f32 %v4223_v17, %v3149_v25  ;;  %v1878_v25 = vmax.f32 %v1869_v23, 0.0 }
 0xcc7   : > { %v3157_v27 = vadd.f32 %v4224_v19, %v3153_v29  ;;  %v3363_v19 = vld [vmem:[%s4686_s25 + $0x10] sm:$0xff]  ;;  %v4227_v29 = vld [vmem:[%s4809_s1] sm:$0xff] }
 0xcc9   : > { %v3159_v40 = vrot.slane %v3157_v27, 7  ;;  %v3165_v32 = vrot.slane %v3157_v27, 1  ;;  %v3175_v33 = vpack.c.bf16 %v3157_v27, %v3156_v28  ;;  %v1871_v28 = vadd.f32 %v4196_v20, %v4984_v22 }
 0xcca   : > { %v1882_v27 = vadd.f32 %v4227_v29, %v1878_v25  ;;  %v1876_v22 = vadd.f32 %v4196_v20, %v4990_v26 }
 0xccb   : > { %v3161_v34 = vsel %vm1599_vm4, %v3159_v40, %v3158_v30  ;;  %v3167_v35 = vsel %vm1612_vm1, %v3165_v32, %v3164_v31  ;;  %3962 = vmatmul.msk.bf16.vlgmr.msrb.gmra.mxu0 %vm1900_vm5, %v3175_v33  ;;  %v3166_v38 = vsel %vm1612_vm1, %v3164_v31, %v3165_v32  ;;  %v3160_v39 = vsel %vm1599_vm4, %v3158_v30, %v3159_v40  ;;  %v4228_v33 = vld [vmem:[%s4809_s1 + $0x8] sm:$0xff] }
 0xccc   : > { %v3169_v36 = vmul.f32 %v4967_v6, %v3167_v35  ;;  %v3162_v37 = vmul.f32 %v4885_v18, %v3161_v34  ;;  %v3331_v6 = vld [vmem:[%s4681_s21 + $0x38] sm:$0xff]  ;;  %v3330_v18 = vld [vmem:[%s4681_s21 + $0x30] sm:$0xff]  ;;  %v1879_v40 = vmax.f32 %v1871_v28, 0.0  ;;  %v1874_v32 = vadd.f32 %v4196_v20, %v4987_v24 }
 0xccd   : > { %3346 = vmatpush.msra.mxu0 %v3331_v6 }
 0xcce   : > { %v3239_v41 = vpack.c.bf16 %v3169_v36, %v3166_v38  ;;  %v3170_v42 = vpack.c.bf16 %v3160_v39, %v3162_v37  ;;  %v1883_v34 = vadd.f32 %v4228_v33, %v1879_v40  ;;  %v1880_v8 = vmax.f32 %v1874_v32, 0.0  ;;  %v4229_v37 = vld [vmem:[%s4809_s1 + $0x10] sm:$0xff] }
 0xccf   : > { %3347 = vmatpush.msra.mxu0 %v3330_v18 }
 0xcd0   : > { %3971 = vmatmul.msk.bf16.vlgmr.msrb.gmra.mxu1 %vm1900_vm5, %v3170_v42  ;;  %3984 = vmatmul.msk.bf16.vlgmr.msrb.gmra.mxu2 %vm1900_vm5, %v3239_v41  ;;  %v1884_v38 = vadd.f32 %v4229_v37, %v1880_v8  ;;  %v1881_v42 = vmax.f32 %v1876_v22, 0.0 }
 0xcd1   : > { %3348 = vmatpush.msra.mxu0 %v3329_v48 }
 0xcd2   : > { %v1885_v45 = vadd.f32 %v4230_v43, %v1881_v42 }
 0xcd3   : > { %3349 = vmatpush.msra.mxu0 %v3328_v49 }
 0xcd5   : > { %3350 = vmatpush.msra.mxu0 %v3327_v47 }
 0xcd7   : > { %3351 = vmatpush.msra.mxu0 %v3326_v1 }
 0xcd9   : > { %3352 = vmatpush.msra.mxu0 %v3325_v3 }
 0xcdb   : > { %3353 = vmatpush.msra.mxu0 %v3324_v9 }
 0xd48   : > { %v3205_v50 = vpop.f32.mrf.mxu0 }
 0xd4d   : > { %v3234_v44 = vpop.f32.mrf.mxu1 }
 0xd4e   : > { %v3235_v2 = vadd.f32 %v3234_v44, %v3205_v50 }
 0xd50   : > { %v3207_v55 = vpop.f32.mrf.mxu0 }
 0xd53   : > { %v3269_v51 = vpop.f32.mrf.mxu2 }
 0xd54   : > { %v3274_v53 = vadd.f32 %v3269_v51, %v3235_v2 }
 0xd55   : > { %v3236_v52 = vpop.f32.mrf.mxu1 }
 0xd56   : > { %v3237_v56 = vadd.f32 %v3236_v52, %v3207_v55  ;;  %v3278_v59 = vadd.f32 %v4225_v54, %v3274_v53 }
 0xd58   : > { %v3280_v63 = vmax.f32 %v3278_v59, 0.0 }
 0xd5b   : > { %v3271_v57 = vpop.f32.mrf.mxu2 }
 0xd5c   : > { %v3275_v61 = vadd.f32 %v3271_v57, %v3237_v56 }
 0xd5e   : > { %v3279_v62 = vadd.f32 %v4225_v54, %v3275_v61 }
 0xd60   : > { %v3281_v46 = vmax.f32 %v3279_v62, 0.0 }
 0xd62   : > { %v3282_v0 = vpack.c.bf16 %v3281_v46, %v3280_v63 }
 0xd64   : > { %3993 = vmatmul.msk.bf16.vlgmr.msrb.gmra.mxu3 %vm1900_vm5, %v3282_v0 }
 0xde7   : > { %v3315_v7 = vpop.f32.mrf.mxu3 }
 0xde8   : > { %v3316_v58 = vadd.f32 %v4226_v21, %v3315_v7 }
 0xdea   : > { %v3320_v12 = vmax.f32 %v3316_v58, 0.0 }
 0xdec   : > { %v3322_v60 = vadd.f32 %v3320_v12, %v5137_v4  ;;  %v3362_v4 = vld [vmem:[%s4686_s25 + $0x8] sm:$0xff] }
 0xdee   : > { %3994 = vmatmul.msk.f32.vlgmr.msra.gmra.mxu0 %vm1666_vm0, %v3322_v60 }
 0xdef   : > { %v3317_v13 = vpop.f32.mrf.mxu3 }
 0xdf0   : > { %v3318_v14 = vadd.f32 %v4226_v21, %v3317_v13 }
 0xdf2   : > { %v3321_v10 = vmax.f32 %v3318_v14, 0.0 }
 0xdf4   : > { %v3323_v15 = vadd.f32 %v3321_v10, %v5139_v5  ;;  %v3364_v5 = vld [vmem:[%s4686_s25 + $0x18] sm:$0xff] }
 0xdf6   : > { %3995 = vmatmul.msk.f32.gmra.mxu0 %vm1666_vm0, %v3323_v15 }
 0xe6b   : > { %v3355_v16 = vpop.f32.mrf.mxu0 }
 0xe73   : > { %v3358_v17 = vpop.f32.mrf.mxu0 }
 0xe74   : > { %3391 = vmatpush.msra.mxu1 %v3358_v17 }
 0xe76   : > { %3392 = vmatpush.msra.mxu1 %v3355_v16 }
 0xe77   : > { %3996 = vmatmul.msk.f32.vlgmr.msra.gmra.mxu1 %vm2476_vm7, %v3361_v11 }
 0xe7f   : > { %3997 = vmatmul.msk.f32.gmra.mxu1 %vm2476_vm7, %v3362_v4 }
 0xe87   : > { %3998 = vmatmul.msk.f32.gmra.mxu1 %vm2476_vm7, %v3363_v19 }
 0xe8f   : > { %3999 = vmatmul.msk.f32.gmra.mxu1 %vm2476_vm7, %v3364_v5 }
 0xef4   : > { %v3394_v30 = vpop.f32.mrf.mxu1 }
 0xef5   : > { %v3395_v31 = vadd.f32 %v3394_v30, %v1882_v27 }
 0xef7   : > { %3406 = vst [vmem:[%s1451_s3] sm:$0xff] %v3395_v31 }
 0xefc   : > { %v3397_v35 = vpop.f32.mrf.mxu1 }
 0xefd   : > { %v3398_v36 = vadd.f32 %v3397_v35, %v1883_v34 }
 0xeff   : > { %3407 = vst [vmem:[%s1451_s3 + $0x8] sm:$0xff] %v3398_v36 }
 0xf04   : > { %v3400_v39 = vpop.f32.mrf.mxu1 }
 0xf05   : > { %v3401_v41 = vadd.f32 %v3400_v39, %v1884_v38 }
 0xf07   : > { %3408 = vst [vmem:[%s1451_s3 + $0x10] sm:$0xff] %v3401_v41 }
 0xf0c   : > { %v3403_v6 = vpop.f32.mrf.mxu1 }
 0xf0d   : > { %v3404_v18 = vadd.f32 %v3403_v6, %v1885_v45 }
 0xf0f   : > { %3409 = vst [vmem:[%s1451_s3 + $0x18] sm:$0xff] %v3404_v18 }
 0xf10 PF: > { %s5320_s0 = sld [smem:[#allocation46_spill]] }
 0xf16   : > { %s106_s15 = sadd.s32 1, %s5320_s0  }
 0xf17   : > { %p103_p2 = scmp.ge.s32.totalorder %s106_s15, 4  }
 0xf19   :  { %105 = sbr.rel (!%p103_p2) target bundleno = 92 (0x5c), region = 315 }
 0xf1e   :  { %3431 = vsyncpa [#allocation3], 1 }
 0xf1f   :  { %3433 = vsyncpa [#allocation3 + $0x1], 1 }
 0xf20   :  { %3434 = vsyncpa [#allocation5], 1 }
 0xf21   :  { %3435 = vsyncpa [#allocation8], 1 }

</bundles_post_ra>
